<compile_context>
chip_gen: v6e
topology: v6e:2x2x1
jax: 0.10.0
libtpu: 0.0.40
codegen_flags: <defaults>
</compile_context>

<pallas_src>
import jax
import jax.numpy as jnp
from jax import lax
from jax.experimental import pallas as pl
from jax.experimental.pallas import tpu as pltpu

NSTEPS = 8  # fixed RK4 steps over t in [0, 1]


def _round_up(n, m):
    return ((n + m - 1) // m) * m


def _s_node_cnn_kernel(x_ref, wconv_ref, wp_ref, wf_ref, bias_ref, out_ref):
    # x_ref block: (B_tile, T, F); out_ref block: (B_tile, T, Cp).
    Bt, T, F = x_ref.shape
    H = wp_ref.shape[1]
    Cp = wf_ref.shape[1]
    rows = Bt * T

    # Flatten the batch block into the matmul M dimension (T is a multiple of 8
    # so this reshape does not cross (8,128) tile boundaries).
    x = x_ref[...].reshape(rows, F)                     # (rows, F) f32
    w = wconv_ref[...]                                  # (3, F, F) bf16 conv taps
    biases = bias_ref[...]                              # (3, Pb) f32 packed biases

    # ---- loop invariants (hoisted out of the unrolled RK4 body) ----
    bc_b = jnp.broadcast_to(biases[0:1, :F], (rows, F))          # conv bias
    bp = biases[1:2, :H]                                         # (1, H)
    bf = biases[2:3, :Cp]                                        # (1, Cp)
    w0, w1, w2 = w[0], w[1], w[2]                                # (F, F) slabs

    # Local time index within each batch element; masks zero the rows that the
    # flattened roll would otherwise leak across batch boundaries (== zero pad).
    local_t = lax.broadcasted_iota(jnp.int32, (Bt, T, F), 1).reshape(rows, F)
    mask_prev = local_t >= 1
    mask_next = local_t <= T - 2

    fused = (F % 128) == 0
    wcat = w.reshape(3 * F, F) if fused else None        # only when lane-aligned

    def func(z):
        # Conv1d(F -> F, kernel_size=3, padding=1) along time via time-shifted
        # rows, then tanh. z stays f32; only matmul operands are bf16.
        z_prev = jnp.where(mask_prev, pltpu.roll(z, shift=1, axis=0), 0.0)
        z_next = jnp.where(mask_next, pltpu.roll(z, shift=rows - 1, axis=0), 0.0)
        if fused:
            # 3F is lane-aligned: the concatenate is a cheap tile placement and
            # a single MXU push is worth it.
            z_cat = jnp.concatenate([z_prev, z, z_next], axis=-1).astype(jnp.bfloat16)
            y = jnp.dot(z_cat, wcat, preferred_element_type=jnp.float32)
        else:
            # Not lane-aligned: skip the lane-relayout concatenate, accumulate
            # three small dots in f32 instead.
            y = (jnp.dot(z_prev.astype(jnp.bfloat16), w0,
                         preferred_element_type=jnp.float32)
                 + jnp.dot(z.astype(jnp.bfloat16), w1,
                           preferred_element_type=jnp.float32)
                 + jnp.dot(z_next.astype(jnp.bfloat16), w2,
                           preferred_element_type=jnp.float32))
        return jnp.tanh(y + bc_b)

    dt = 1.0 / NSTEPS

    def rk4_step(_, z):
        k1 = func(z)
        k2 = func(z + (0.5 * dt) * k1)
        k3 = func(z + (0.5 * dt) * k2)
        k4 = func(z + dt * k3)
        return z + (dt / 6.0) * (k1 + 2.0 * k2 + 2.0 * k3 + k4)

    # Full unroll for LLO visibility at small tiles; partial unroll once rows*F
    # is large enough that the live temporaries would spill the 64-vreg file.
    unroll = True if rows * F <= 64 * 1024 else 2
    z = lax.fori_loop(0, NSTEPS, rk4_step, x, unroll=unroll)

    # Residual + MLP head for the whole (rows, .) block, single lane-dense store.
    h = z + x
    h = jnp.maximum(
        jnp.dot(h.astype(jnp.bfloat16), wp_ref[...],
                preferred_element_type=jnp.float32) + bp, 0.0)
    out = jnp.dot(h.astype(jnp.bfloat16), wf_ref[...],
                  preferred_element_type=jnp.float32) + bf
    out_ref[...] = out.reshape(Bt, T, Cp).astype(out_ref.dtype)


def _tpu_defaults():
    """Best-effort (VMEM bytes, #TensorCores) query with safe fallbacks."""
    vmem_bytes = 128 << 20
    num_tc = 1
    try:
        info = pltpu.get_tpu_info()
        vmem_bytes = int(getattr(info, "vmem_capacity_bytes", vmem_bytes))
    except Exception:
        pass
    try:
        kind = jax.devices()[0].device_kind.lower()
        if "v7" in kind or "7x" in kind:
            num_tc = 2
    except Exception:
        pass
    return vmem_bytes, num_tc


def _step_vmem_bytes(b_tile, T, F, Cp):
    rows = b_tile * T
    io = 2 * rows * (F + Cp) * 4          # double-buffered x / out blocks
    tmp = 12 * rows * F * 4               # RK4 state + k's + shifted copies (f32)
    return io + tmp


def _choose_b_tile(B, T, F, Cp, vmem_bytes, num_tc):
    budget = max(4 << 20, int(0.35 * vmem_bytes))   # headroom for weights/pipeline
    max_rows = 1024                                  # 512-1024 rows/step target
    divisors = [d for d in range(1, B + 1) if B % d == 0]
    valid = [d for d in divisors
             if _step_vmem_bytes(d, T, F, Cp) <= budget and d * T <= max_rows]
    if not valid:
        valid = [1]
    if num_tc >= 2 and B >= 2:
        # v7x only: keep an even number of equal-sized grid steps so both
        # TensorCores get work and no core idles on a tail step.
        even = [d for d in valid if (B // d) >= 2 and (B // d) % 2 == 0]
        if even:
            valid = even
    # Prefer M-friendly row counts (multiples of 128 rows) when available.
    aligned = [d for d in valid if (d * T) % 128 == 0]
    pool = aligned if aligned else valid
    return max(pool)


def s_node_cnn_forward(x, params, *, b_tile=None):
    B, T, F = x.shape
    wconv, wp, wf, biases = (params["wconv"], params["wp"],
                             params["wf"], params["biases"])
    C = params["num_classes"]
    H = wp.shape[1]
    Cp = wf.shape[1]
    Pb = biases.shape[1]

    vmem_bytes, num_tc = _tpu_defaults()
    if b_tile is None:
        b_tile = _choose_b_tile(B, T, F, Cp, vmem_bytes, num_tc)

    # b_tile is picked from divisors of B, so no wrapper-side pad of x (a whole
    # extra HBM pass) is needed; keep a fallback only for user-supplied tiles.
    if B % b_tile == 0:
        Bp, xp = B, x
    else:
        Bp = _round_up(B, b_tile)
        xp = jnp.pad(x, ((0, Bp - B), (0, 0), (0, 0)))

    def full(shape):
        n = len(shape)
        return pl.BlockSpec(shape, lambda b, _n=n: (0,) * _n)

    rows_total = Bp * T
    evals = NSTEPS * 4
    weight_bytes = wconv.size * 2 + wp.size * 2 + wf.size * 2 + biases.size * 4
    cost = pl.CostEstimate(
        flops=2 * rows_total * (evals * 3 * F * F + F * H + H * Cp),
        transcendentals=evals * rows_total * F,
        bytes_accessed=xp.size * 4 + rows_total * Cp * 4 + weight_bytes,
    )

    # Only raise the scoped-VMEM limit when the estimated resident set exceeds
    # the conservative default; cap well below physical VMEM (64 MiB/TC on v7x,
    # 128 MiB on v5e/v6e).
    compiler_kwargs = dict(dimension_semantics=("parallel",))
    need = weight_bytes + _step_vmem_bytes(b_tile, T, F, Cp)
    if need > (12 << 20):
        compiler_kwargs["vmem_limit_bytes"] = int(
            min(max(2 * need, 32 << 20), 0.7 * vmem_bytes))

    out = pl.pallas_call(
        _s_node_cnn_kernel,
        out_shape=jax.ShapeDtypeStruct((Bp, T, Cp), jnp.float32),
        grid=(Bp // b_tile,),
        in_specs=[
            pl.BlockSpec((b_tile, T, F), lambda b: (b, 0, 0)),  # x block
            full((3, F, F)),                                    # conv tap slabs (bf16)
            full((F, H)),                                       # penultimate W (bf16)
            full((H, Cp)),                                      # final W (bf16, padded)
            full((3, Pb)),                                      # packed biases (f32)
        ],
        out_specs=pl.BlockSpec((b_tile, T, Cp), lambda b: (b, 0, 0)),
        compiler_params=pltpu.CompilerParams(**compiler_kwargs),
        cost_estimate=cost,
    )(xp, wconv, wp, wf, biases)

    return out[:B, :, :C]


def init_params(key, num_features, num_classes, hidden_size):
    F, H, C = num_features, hidden_size, num_classes
    Cp = _round_up(C, 128)
    ks = jax.random.split(key, 6)
    # PyTorch shapes: Conv1d weight (F_out, F_in, 3); Linear weight (out, in).
    wc = jax.random.normal(ks[0], (F, F, 3), jnp.float32) * (1.0 / jnp.sqrt(3.0 * F))
    bc = jax.random.normal(ks[1], (F,), jnp.float32) * 0.05
    wp = jax.random.normal(ks[2], (H, F), jnp.float32) * (1.0 / jnp.sqrt(float(F)))
    bp = jax.random.normal(ks[3], (H,), jnp.float32) * 0.05
    wf = jax.random.normal(ks[4], (C, H), jnp.float32) * (1.0 / jnp.sqrt(float(H)))
    bf = jax.random.normal(ks[5], (C,), jnp.float32) * 0.05

    # Conv taps as three (F_in, F_out) slabs: y = z_prev@W0 + z@W1 + z_next@W2.
    wconv = jnp.stack([wc[:, :, 0].T, wc[:, :, 1].T, wc[:, :, 2].T], axis=0)

    # Final Linear padded to a lane-dense (128-multiple) class dimension.
    wf_pad = jnp.zeros((H, Cp), jnp.float32).at[:, :C].set(wf.T)

    # Pack the three biases (zero-padded) into one lane-aligned slab (f32).
    Pb = max(_round_up(F, 128), _round_up(H, 128), Cp)
    biases = jnp.zeros((3, Pb), jnp.float32)
    biases = biases.at[0, :F].set(bc).at[1, :H].set(bp).at[2, :C].set(bf)

    return {
        "wconv": wconv.astype(jnp.bfloat16),   # (3, F, F)
        "wp": wp.T.astype(jnp.bfloat16),       # (F, H)
        "wf": wf_pad.astype(jnp.bfloat16),     # (H, Cp)
        "biases": biases,                      # (3, Pb) f32
        "num_classes": C,
    }


if __name__ == "__main__":
    num_features, num_classes, hidden_size = 4, 5, 32
    B, T = 2, 16

    key = jax.random.PRNGKey(0)
    k_x, k_p = jax.random.split(key)
    x = jax.random.normal(k_x, (B, T, num_features), jnp.float32)
    params = init_params(k_p, num_features, num_classes, hidden_size)

    out = s_node_cnn_forward(x, params)
    out = jax.block_until_ready(out)
    assert out.shape == (B, T, num_classes)
    assert bool(jnp.all(jnp.isfinite(out)))
    print("KERNEL_OK")
</pallas_src>

<mosaic_0001>
module attributes {stable_mosaic.version = 11 : i64} {
  func.func @_s_node_cnn_kernel(%arg0: i32, %arg1: memref<2x16x4xf32, #tpu.memory_space<vmem>>, %arg2: memref<3x4x4xbf16, #tpu.memory_space<vmem>>, %arg3: memref<4x32xbf16, #tpu.memory_space<vmem>>, %arg4: memref<32x128xbf16, #tpu.memory_space<vmem>>, %arg5: memref<3x128xf32, #tpu.memory_space<vmem>>, %arg6: memref<2x16x128xf32, #tpu.memory_space<vmem>>) attributes {dimension_semantics = [#tpu.dimension_semantics<parallel>], iteration_bounds = array<i64: 1>, scalar_prefetch = 0 : i64, scratch_operands = 0 : i64, tpu.core_type = #tpu.core_type<tc>, window_params = [{transform_indices = @transform_0, window_bounds = array<i64: 2, 16, 4>}, {pipeline_mode = #tpu.pipeline_mode<synchronous>, transform_indices = @transform_1, window_bounds = array<i64: 3, 4, 4>}, {pipeline_mode = #tpu.pipeline_mode<synchronous>, transform_indices = @transform_2, window_bounds = array<i64: 4, 32>}, {pipeline_mode = #tpu.pipeline_mode<synchronous>, transform_indices = @transform_3, window_bounds = array<i64: 32, 128>}, {pipeline_mode = #tpu.pipeline_mode<synchronous>, transform_indices = @transform_4, window_bounds = array<i64: 3, 128>}, {transform_indices = @transform_5, window_bounds = array<i64: 2, 16, 128>}]} {
    %c0 = arith.constant 0 : index
    %c0_0 = arith.constant 0 : index
    %c0_1 = arith.constant 0 : index
    %0 = vector.load %arg1[%c0, %c0_0, %c0_1] : memref<2x16x4xf32, #tpu.memory_space<vmem>>, vector<2x16x4xf32>
    %1 = vector.shape_cast %0 : vector<2x16x4xf32> to vector<32x4xf32>
    %c0_2 = arith.constant 0 : index
    %c0_3 = arith.constant 0 : index
    %c0_4 = arith.constant 0 : index
    %2 = vector.load %arg2[%c0_2, %c0_3, %c0_4] : memref<3x4x4xbf16, #tpu.memory_space<vmem>>, vector<3x4x4xbf16>
    %c0_5 = arith.constant 0 : index
    %c0_6 = arith.constant 0 : index
    %3 = vector.load %arg5[%c0_5, %c0_6] : memref<3x128xf32, #tpu.memory_space<vmem>>, vector<3x128xf32>
    %4 = vector.extract_strided_slice %3 {offsets = [0, 0], sizes = [1, 4], strides = [1, 1]} : vector<3x128xf32> to vector<1x4xf32>
    %5 = vector.shape_cast %4 : vector<1x4xf32> to vector<1x4xf32>
    %6 = vector.broadcast %5 : vector<1x4xf32> to vector<32x4xf32>
    %7 = vector.extract_strided_slice %3 {offsets = [1, 0], sizes = [1, 32], strides = [1, 1]} : vector<3x128xf32> to vector<1x32xf32>
    %8 = vector.extract_strided_slice %3 {offsets = [2, 0], sizes = [1, 128], strides = [1, 1]} : vector<3x128xf32> to vector<1x128xf32>
    %9 = vector.extract_strided_slice %2 {offsets = [0, 0, 0], sizes = [1, 4, 4], strides = [1, 1, 1]} : vector<3x4x4xbf16> to vector<1x4x4xbf16>
    %10 = vector.shape_cast %9 : vector<1x4x4xbf16> to vector<4x4xbf16>
    %11 = vector.extract_strided_slice %2 {offsets = [1, 0, 0], sizes = [1, 4, 4], strides = [1, 1, 1]} : vector<3x4x4xbf16> to vector<1x4x4xbf16>
    %12 = vector.shape_cast %11 : vector<1x4x4xbf16> to vector<4x4xbf16>
    %13 = vector.extract_strided_slice %2 {offsets = [2, 0, 0], sizes = [1, 4, 4], strides = [1, 1, 1]} : vector<3x4x4xbf16> to vector<1x4x4xbf16>
    %14 = vector.shape_cast %13 : vector<1x4x4xbf16> to vector<4x4xbf16>
    %15 = tpu.iota {dimensions = array<i32: 1>} : vector<2x16x4xi32>
    %16 = vector.shape_cast %15 : vector<2x16x4xi32> to vector<32x4xi32>
    %c1_i32 = arith.constant 1 : i32
    %17 = vector.broadcast %c1_i32 : i32 to vector<32x4xi32>
    %18 = arith.cmpi sge, %16, %17 : vector<32x4xi32>
    %c14_i32 = arith.constant 14 : i32
    %19 = vector.broadcast %c14_i32 : i32 to vector<32x4xi32>
    %20 = arith.cmpi sle, %16, %19 : vector<32x4xi32>
    %c0_i32 = arith.constant 0 : i32
    %c1_i32_7 = arith.constant 1 : i32
    %21 = tpu.dynamic_rotate %1 by %c1_i32_7 dim 0 : vector<32x4xf32>, i32 -> vector<32x4xf32>
    %cst = arith.constant 0.000000e+00 : f32
    %22 = vector.broadcast %cst : f32 to vector<32x4xf32>
    %23 = arith.select %18, %21, %22 : vector<32x4xi1>, vector<32x4xf32>
    %c31_i32 = arith.constant 31 : i32
    %24 = tpu.dynamic_rotate %1 by %c31_i32 dim 0 : vector<32x4xf32>, i32 -> vector<32x4xf32>
    %cst_8 = arith.constant 0.000000e+00 : f32
    %25 = vector.broadcast %cst_8 : f32 to vector<32x4xf32>
    %26 = arith.select %20, %24, %25 : vector<32x4xi1>, vector<32x4xf32>
    %27 = arith.truncf %23 : vector<32x4xf32> to vector<32x4xbf16>
    %cst_9 = arith.constant dense<0.000000e+00> : vector<32x4xf32>
    %28 = tpu.matmul %27, %10, %cst_9 {dimension_numbers = #tpu.dot_dimension_numbers<[1], [0], [0], [1], [0, 0, 1, 1], [], []>} : vector<32x4xbf16>, vector<4x4xbf16>, vector<32x4xf32> -> vector<32x4xf32>
    %29 = arith.truncf %1 : vector<32x4xf32> to vector<32x4xbf16>
    %cst_10 = arith.constant dense<0.000000e+00> : vector<32x4xf32>
    %30 = tpu.matmul %29, %12, %cst_10 {dimension_numbers = #tpu.dot_dimension_numbers<[1], [0], [0], [1], [0, 0, 1, 1], [], []>} : vector<32x4xbf16>, vector<4x4xbf16>, vector<32x4xf32> -> vector<32x4xf32>
    %31 = arith.addf %28, %30 : vector<32x4xf32>
    %32 = arith.truncf %26 : vector<32x4xf32> to vector<32x4xbf16>
    %cst_11 = arith.constant dense<0.000000e+00> : vector<32x4xf32>
    %33 = tpu.matmul %32, %14, %cst_11 {dimension_numbers = #tpu.dot_dimension_numbers<[1], [0], [0], [1], [0, 0, 1, 1], [], []>} : vector<32x4xbf16>, vector<4x4xbf16>, vector<32x4xf32> -> vector<32x4xf32>
    %34 = arith.addf %31, %33 : vector<32x4xf32>
    %35 = arith.addf %34, %6 : vector<32x4xf32>
    %36 = math.tanh %35 : vector<32x4xf32>
    %cst_12 = arith.constant 6.250000e-02 : f32
    %37 = vector.broadcast %cst_12 : f32 to vector<32x4xf32>
    %38 = arith.mulf %37, %36 : vector<32x4xf32>
    %39 = arith.addf %1, %38 : vector<32x4xf32>
    %c1_i32_13 = arith.constant 1 : i32
    %40 = tpu.dynamic_rotate %39 by %c1_i32_13 dim 0 : vector<32x4xf32>, i32 -> vector<32x4xf32>
    %cst_14 = arith.constant 0.000000e+00 : f32
    %41 = vector.broadcast %cst_14 : f32 to vector<32x4xf32>
    %42 = arith.select %18, %40, %41 : vector<32x4xi1>, vector<32x4xf32>
    %c31_i32_15 = arith.constant 31 : i32
    %43 = tpu.dynamic_rotate %39 by %c31_i32_15 dim 0 : vector<32x4xf32>, i32 -> vector<32x4xf32>
    %cst_16 = arith.constant 0.000000e+00 : f32
    %44 = vector.broadcast %cst_16 : f32 to vector<32x4xf32>
    %45 = arith.select %20, %43, %44 : vector<32x4xi1>, vector<32x4xf32>
    %46 = arith.truncf %42 : vector<32x4xf32> to vector<32x4xbf16>
    %cst_17 = arith.constant dense<0.000000e+00> : vector<32x4xf32>
    %47 = tpu.matmul %46, %10, %cst_17 {dimension_numbers = #tpu.dot_dimension_numbers<[1], [0], [0], [1], [0, 0, 1, 1], [], []>} : vector<32x4xbf16>, vector<4x4xbf16>, vector<32x4xf32> -> vector<32x4xf32>
    %48 = arith.truncf %39 : vector<32x4xf32> to vector<32x4xbf16>
    %cst_18 = arith.constant dense<0.000000e+00> : vector<32x4xf32>
    %49 = tpu.matmul %48, %12, %cst_18 {dimension_numbers = #tpu.dot_dimension_numbers<[1], [0], [0], [1], [0, 0, 1, 1], [], []>} : vector<32x4xbf16>, vector<4x4xbf16>, vector<32x4xf32> -> vector<32x4xf32>
    %50 = arith.addf %47, %49 : vector<32x4xf32>
    %51 = arith.truncf %45 : vector<32x4xf32> to vector<32x4xbf16>
    %cst_19 = arith.constant dense<0.000000e+00> : vector<32x4xf32>
    %52 = tpu.matmul %51, %14, %cst_19 {dimension_numbers = #tpu.dot_dimension_numbers<[1], [0], [0], [1], [0, 0, 1, 1], [], []>} : vector<32x4xbf16>, vector<4x4xbf16>, vector<32x4xf32> -> vector<32x4xf32>
    %53 = arith.addf %50, %52 : vector<32x4xf32>
    %54 = arith.addf %53, %6 : vector<32x4xf32>
    %55 = math.tanh %54 : vector<32x4xf32>
    %cst_20 = arith.constant 6.250000e-02 : f32
    %56 = vector.broadcast %cst_20 : f32 to vector<32x4xf32>
    %57 = arith.mulf %56, %55 : vector<32x4xf32>
    %58 = arith.addf %1, %57 : vector<32x4xf32>
    %c1_i32_21 = arith.constant 1 : i32
    %59 = tpu.dynamic_rotate %58 by %c1_i32_21 dim 0 : vector<32x4xf32>, i32 -> vector<32x4xf32>
    %cst_22 = arith.constant 0.000000e+00 : f32
    %60 = vector.broadcast %cst_22 : f32 to vector<32x4xf32>
    %61 = arith.select %18, %59, %60 : vector<32x4xi1>, vector<32x4xf32>
    %c31_i32_23 = arith.constant 31 : i32
    %62 = tpu.dynamic_rotate %58 by %c31_i32_23 dim 0 : vector<32x4xf32>, i32 -> vector<32x4xf32>
    %cst_24 = arith.constant 0.000000e+00 : f32
    %63 = vector.broadcast %cst_24 : f32 to vector<32x4xf32>
    %64 = arith.select %20, %62, %63 : vector<32x4xi1>, vector<32x4xf32>
    %65 = arith.truncf %61 : vector<32x4xf32> to vector<32x4xbf16>
    %cst_25 = arith.constant dense<0.000000e+00> : vector<32x4xf32>
    %66 = tpu.matmul %65, %10, %cst_25 {dimension_numbers = #tpu.dot_dimension_numbers<[1], [0], [0], [1], [0, 0, 1, 1], [], []>} : vector<32x4xbf16>, vector<4x4xbf16>, vector<32x4xf32> -> vector<32x4xf32>
    %67 = arith.truncf %58 : vector<32x4xf32> to vector<32x4xbf16>
    %cst_26 = arith.constant dense<0.000000e+00> : vector<32x4xf32>
    %68 = tpu.matmul %67, %12, %cst_26 {dimension_numbers = #tpu.dot_dimension_numbers<[1], [0], [0], [1], [0, 0, 1, 1], [], []>} : vector<32x4xbf16>, vector<4x4xbf16>, vector<32x4xf32> -> vector<32x4xf32>
    %69 = arith.addf %66, %68 : vector<32x4xf32>
    %70 = arith.truncf %64 : vector<32x4xf32> to vector<32x4xbf16>
    %cst_27 = arith.constant dense<0.000000e+00> : vector<32x4xf32>
    %71 = tpu.matmul %70, %14, %cst_27 {dimension_numbers = #tpu.dot_dimension_numbers<[1], [0], [0], [1], [0, 0, 1, 1], [], []>} : vector<32x4xbf16>, vector<4x4xbf16>, vector<32x4xf32> -> vector<32x4xf32>
    %72 = arith.addf %69, %71 : vector<32x4xf32>
    %73 = arith.addf %72, %6 : vector<32x4xf32>
    %74 = math.tanh %73 : vector<32x4xf32>
    %cst_28 = arith.constant 1.250000e-01 : f32
    %75 = vector.broadcast %cst_28 : f32 to vector<32x4xf32>
    %76 = arith.mulf %75, %74 : vector<32x4xf32>
    %77 = arith.addf %1, %76 : vector<32x4xf32>
    %c1_i32_29 = arith.constant 1 : i32
    %78 = tpu.dynamic_rotate %77 by %c1_i32_29 dim 0 : vector<32x4xf32>, i32 -> vector<32x4xf32>
    %cst_30 = arith.constant 0.000000e+00 : f32
    %79 = vector.broadcast %cst_30 : f32 to vector<32x4xf32>
    %80 = arith.select %18, %78, %79 : vector<32x4xi1>, vector<32x4xf32>
    %c31_i32_31 = arith.constant 31 : i32
    %81 = tpu.dynamic_rotate %77 by %c31_i32_31 dim 0 : vector<32x4xf32>, i32 -> vector<32x4xf32>
    %cst_32 = arith.constant 0.000000e+00 : f32
    %82 = vector.broadcast %cst_32 : f32 to vector<32x4xf32>
    %83 = arith.select %20, %81, %82 : vector<32x4xi1>, vector<32x4xf32>
    %84 = arith.truncf %80 : vector<32x4xf32> to vector<32x4xbf16>
    %cst_33 = arith.constant dense<0.000000e+00> : vector<32x4xf32>
    %85 = tpu.matmul %84, %10, %cst_33 {dimension_numbers = #tpu.dot_dimension_numbers<[1], [0], [0], [1], [0, 0, 1, 1], [], []>} : vector<32x4xbf16>, vector<4x4xbf16>, vector<32x4xf32> -> vector<32x4xf32>
    %86 = arith.truncf %77 : vector<32x4xf32> to vector<32x4xbf16>
    %cst_34 = arith.constant dense<0.000000e+00> : vector<32x4xf32>
    %87 = tpu.matmul %86, %12, %cst_34 {dimension_numbers = #tpu.dot_dimension_numbers<[1], [0], [0], [1], [0, 0, 1, 1], [], []>} : vector<32x4xbf16>, vector<4x4xbf16>, vector<32x4xf32> -> vector<32x4xf32>
    %88 = arith.addf %85, %87 : vector<32x4xf32>
    %89 = arith.truncf %83 : vector<32x4xf32> to vector<32x4xbf16>
    %cst_35 = arith.constant dense<0.000000e+00> : vector<32x4xf32>
    %90 = tpu.matmul %89, %14, %cst_35 {dimension_numbers = #tpu.dot_dimension_numbers<[1], [0], [0], [1], [0, 0, 1, 1], [], []>} : vector<32x4xbf16>, vector<4x4xbf16>, vector<32x4xf32> -> vector<32x4xf32>
    %91 = arith.addf %88, %90 : vector<32x4xf32>
    %92 = arith.addf %91, %6 : vector<32x4xf32>
    %93 = math.tanh %92 : vector<32x4xf32>
    %cst_36 = arith.constant 2.000000e+00 : f32
    %94 = vector.broadcast %cst_36 : f32 to vector<32x4xf32>
    %95 = arith.mulf %94, %55 : vector<32x4xf32>
    %96 = arith.addf %36, %95 : vector<32x4xf32>
    %cst_37 = arith.constant 2.000000e+00 : f32
    %97 = vector.broadcast %cst_37 : f32 to vector<32x4xf32>
    %98 = arith.mulf %97, %74 : vector<32x4xf32>
    %99 = arith.addf %96, %98 : vector<32x4xf32>
    %100 = arith.addf %99, %93 : vector<32x4xf32>
    %cst_38 = arith.constant 0.020833334 : f32
    %101 = vector.broadcast %cst_38 : f32 to vector<32x4xf32>
    %102 = arith.mulf %101, %100 : vector<32x4xf32>
    %103 = arith.addf %1, %102 : vector<32x4xf32>
    %c1_i32_39 = arith.constant 1 : i32
    %c1_i32_40 = arith.constant 1 : i32
    %104 = tpu.dynamic_rotate %103 by %c1_i32_40 dim 0 : vector<32x4xf32>, i32 -> vector<32x4xf32>
    %cst_41 = arith.constant 0.000000e+00 : f32
    %105 = vector.broadcast %cst_41 : f32 to vector<32x4xf32>
    %106 = arith.select %18, %104, %105 : vector<32x4xi1>, vector<32x4xf32>
    %c31_i32_42 = arith.constant 31 : i32
    %107 = tpu.dynamic_rotate %103 by %c31_i32_42 dim 0 : vector<32x4xf32>, i32 -> vector<32x4xf32>
    %cst_43 = arith.constant 0.000000e+00 : f32
    %108 = vector.broadcast %cst_43 : f32 to vector<32x4xf32>
    %109 = arith.select %20, %107, %108 : vector<32x4xi1>, vector<32x4xf32>
    %110 = arith.truncf %106 : vector<32x4xf32> to vector<32x4xbf16>
    %cst_44 = arith.constant dense<0.000000e+00> : vector<32x4xf32>
    %111 = tpu.matmul %110, %10, %cst_44 {dimension_numbers = #tpu.dot_dimension_numbers<[1], [0], [0], [1], [0, 0, 1, 1], [], []>} : vector<32x4xbf16>, vector<4x4xbf16>, vector<32x4xf32> -> vector<32x4xf32>
    %112 = arith.truncf %103 : vector<32x4xf32> to vector<32x4xbf16>
    %cst_45 = arith.constant dense<0.000000e+00> : vector<32x4xf32>
    %113 = tpu.matmul %112, %12, %cst_45 {dimension_numbers = #tpu.dot_dimension_numbers<[1], [0], [0], [1], [0, 0, 1, 1], [], []>} : vector<32x4xbf16>, vector<4x4xbf16>, vector<32x4xf32> -> vector<32x4xf32>
    %114 = arith.addf %111, %113 : vector<32x4xf32>
    %115 = arith.truncf %109 : vector<32x4xf32> to vector<32x4xbf16>
    %cst_46 = arith.constant dense<0.000000e+00> : vector<32x4xf32>
    %116 = tpu.matmul %115, %14, %cst_46 {dimension_numbers = #tpu.dot_dimension_numbers<[1], [0], [0], [1], [0, 0, 1, 1], [], []>} : vector<32x4xbf16>, vector<4x4xbf16>, vector<32x4xf32> -> vector<32x4xf32>
    %117 = arith.addf %114, %116 : vector<32x4xf32>
    %118 = arith.addf %117, %6 : vector<32x4xf32>
    %119 = math.tanh %118 : vector<32x4xf32>
    %cst_47 = arith.constant 6.250000e-02 : f32
    %120 = vector.broadcast %cst_47 : f32 to vector<32x4xf32>
    %121 = arith.mulf %120, %119 : vector<32x4xf32>
    %122 = arith.addf %103, %121 : vector<32x4xf32>
    %c1_i32_48 = arith.constant 1 : i32
    %123 = tpu.dynamic_rotate %122 by %c1_i32_48 dim 0 : vector<32x4xf32>, i32 -> vector<32x4xf32>
    %cst_49 = arith.constant 0.000000e+00 : f32
    %124 = vector.broadcast %cst_49 : f32 to vector<32x4xf32>
    %125 = arith.select %18, %123, %124 : vector<32x4xi1>, vector<32x4xf32>
    %c31_i32_50 = arith.constant 31 : i32
    %126 = tpu.dynamic_rotate %122 by %c31_i32_50 dim 0 : vector<32x4xf32>, i32 -> vector<32x4xf32>
    %cst_51 = arith.constant 0.000000e+00 : f32
    %127 = vector.broadcast %cst_51 : f32 to vector<32x4xf32>
    %128 = arith.select %20, %126, %127 : vector<32x4xi1>, vector<32x4xf32>
    %129 = arith.truncf %125 : vector<32x4xf32> to vector<32x4xbf16>
    %cst_52 = arith.constant dense<0.000000e+00> : vector<32x4xf32>
    %130 = tpu.matmul %129, %10, %cst_52 {dimension_numbers = #tpu.dot_dimension_numbers<[1], [0], [0], [1], [0, 0, 1, 1], [], []>} : vector<32x4xbf16>, vector<4x4xbf16>, vector<32x4xf32> -> vector<32x4xf32>
    %131 = arith.truncf %122 : vector<32x4xf32> to vector<32x4xbf16>
    %cst_53 = arith.constant dense<0.000000e+00> : vector<32x4xf32>
    %132 = tpu.matmul %131, %12, %cst_53 {dimension_numbers = #tpu.dot_dimension_numbers<[1], [0], [0], [1], [0, 0, 1, 1], [], []>} : vector<32x4xbf16>, vector<4x4xbf16>, vector<32x4xf32> -> vector<32x4xf32>
    %133 = arith.addf %130, %132 : vector<32x4xf32>
    %134 = arith.truncf %128 : vector<32x4xf32> to vector<32x4xbf16>
    %cst_54 = arith.constant dense<0.000000e+00> : vector<32x4xf32>
    %135 = tpu.matmul %134, %14, %cst_54 {dimension_numbers = #tpu.dot_dimension_numbers<[1], [0], [0], [1], [0, 0, 1, 1], [], []>} : vector<32x4xbf16>, vector<4x4xbf16>, vector<32x4xf32> -> vector<32x4xf32>
    %136 = arith.addf %133, %135 : vector<32x4xf32>
    %137 = arith.addf %136, %6 : vector<32x4xf32>
    %138 = math.tanh %137 : vector<32x4xf32>
    %cst_55 = arith.constant 6.250000e-02 : f32
    %139 = vector.broadcast %cst_55 : f32 to vector<32x4xf32>
    %140 = arith.mulf %139, %138 : vector<32x4xf32>
    %141 = arith.addf %103, %140 : vector<32x4xf32>
    %c1_i32_56 = arith.constant 1 : i32
    %142 = tpu.dynamic_rotate %141 by %c1_i32_56 dim 0 : vector<32x4xf32>, i32 -> vector<32x4xf32>
    %cst_57 = arith.constant 0.000000e+00 : f32
    %143 = vector.broadcast %cst_57 : f32 to vector<32x4xf32>
    %144 = arith.select %18, %142, %143 : vector<32x4xi1>, vector<32x4xf32>
    %c31_i32_58 = arith.constant 31 : i32
    %145 = tpu.dynamic_rotate %141 by %c31_i32_58 dim 0 : vector<32x4xf32>, i32 -> vector<32x4xf32>
    %cst_59 = arith.constant 0.000000e+00 : f32
    %146 = vector.broadcast %cst_59 : f32 to vector<32x4xf32>
    %147 = arith.select %20, %145, %146 : vector<32x4xi1>, vector<32x4xf32>
    %148 = arith.truncf %144 : vector<32x4xf32> to vector<32x4xbf16>
    %cst_60 = arith.constant dense<0.000000e+00> : vector<32x4xf32>
    %149 = tpu.matmul %148, %10, %cst_60 {dimension_numbers = #tpu.dot_dimension_numbers<[1], [0], [0], [1], [0, 0, 1, 1], [], []>} : vector<32x4xbf16>, vector<4x4xbf16>, vector<32x4xf32> -> vector<32x4xf32>
    %150 = arith.truncf %141 : vector<32x4xf32> to vector<32x4xbf16>
    %cst_61 = arith.constant dense<0.000000e+00> : vector<32x4xf32>
    %151 = tpu.matmul %150, %12, %cst_61 {dimension_numbers = #tpu.dot_dimension_numbers<[1], [0], [0], [1], [0, 0, 1, 1], [], []>} : vector<32x4xbf16>, vector<4x4xbf16>, vector<32x4xf32> -> vector<32x4xf32>
    %152 = arith.addf %149, %151 : vector<32x4xf32>
    %153 = arith.truncf %147 : vector<32x4xf32> to vector<32x4xbf16>
    %cst_62 = arith.constant dense<0.000000e+00> : vector<32x4xf32>
    %154 = tpu.matmul %153, %14, %cst_62 {dimension_numbers = #tpu.dot_dimension_numbers<[1], [0], [0], [1], [0, 0, 1, 1], [], []>} : vector<32x4xbf16>, vector<4x4xbf16>, vector<32x4xf32> -> vector<32x4xf32>
    %155 = arith.addf %152, %154 : vector<32x4xf32>
    %156 = arith.addf %155, %6 : vector<32x4xf32>
    %157 = math.tanh %156 : vector<32x4xf32>
    %cst_63 = arith.constant 1.250000e-01 : f32
    %158 = vector.broadcast %cst_63 : f32 to vector<32x4xf32>
    %159 = arith.mulf %158, %157 : vector<32x4xf32>
    %160 = arith.addf %103, %159 : vector<32x4xf32>
    %c1_i32_64 = arith.constant 1 : i32
    %161 = tpu.dynamic_rotate %160 by %c1_i32_64 dim 0 : vector<32x4xf32>, i32 -> vector<32x4xf32>
    %cst_65 = arith.constant 0.000000e+00 : f32
    %162 = vector.broadcast %cst_65 : f32 to vector<32x4xf32>
    %163 = arith.select %18, %161, %162 : vector<32x4xi1>, vector<32x4xf32>
    %c31_i32_66 = arith.constant 31 : i32
    %164 = tpu.dynamic_rotate %160 by %c31_i32_66 dim 0 : vector<32x4xf32>, i32 -> vector<32x4xf32>
    %cst_67 = arith.constant 0.000000e+00 : f32
    %165 = vector.broadcast %cst_67 : f32 to vector<32x4xf32>
    %166 = arith.select %20, %164, %165 : vector<32x4xi1>, vector<32x4xf32>
    %167 = arith.truncf %163 : vector<32x4xf32> to vector<32x4xbf16>
    %cst_68 = arith.constant dense<0.000000e+00> : vector<32x4xf32>
    %168 = tpu.matmul %167, %10, %cst_68 {dimension_numbers = #tpu.dot_dimension_numbers<[1], [0], [0], [1], [0, 0, 1, 1], [], []>} : vector<32x4xbf16>, vector<4x4xbf16>, vector<32x4xf32> -> vector<32x4xf32>
    %169 = arith.truncf %160 : vector<32x4xf32> to vector<32x4xbf16>
    %cst_69 = arith.constant dense<0.000000e+00> : vector<32x4xf32>
    %170 = tpu.matmul %169, %12, %cst_69 {dimension_numbers = #tpu.dot_dimension_numbers<[1], [0], [0], [1], [0, 0, 1, 1], [], []>} : vector<32x4xbf16>, vector<4x4xbf16>, vector<32x4xf32> -> vector<32x4xf32>
    %171 = arith.addf %168, %170 : vector<32x4xf32>
    %172 = arith.truncf %166 : vector<32x4xf32> to vector<32x4xbf16>
    %cst_70 = arith.constant dense<0.000000e+00> : vector<32x4xf32>
    %173 = tpu.matmul %172, %14, %cst_70 {dimension_numbers = #tpu.dot_dimension_numbers<[1], [0], [0], [1], [0, 0, 1, 1], [], []>} : vector<32x4xbf16>, vector<4x4xbf16>, vector<32x4xf32> -> vector<32x4xf32>
    %174 = arith.addf %171, %173 : vector<32x4xf32>
    %175 = arith.addf %174, %6 : vector<32x4xf32>
    %176 = math.tanh %175 : vector<32x4xf32>
    %cst_71 = arith.constant 2.000000e+00 : f32
    %177 = vector.broadcast %cst_71 : f32 to vector<32x4xf32>
    %178 = arith.mulf %177, %138 : vector<32x4xf32>
    %179 = arith.addf %119, %178 : vector<32x4xf32>
    %cst_72 = arith.constant 2.000000e+00 : f32
    %180 = vector.broadcast %cst_72 : f32 to vector<32x4xf32>
    %181 = arith.mulf %180, %157 : vector<32x4xf32>
    %182 = arith.addf %179, %181 : vector<32x4xf32>
    %183 = arith.addf %182, %176 : vector<32x4xf32>
    %cst_73 = arith.constant 0.020833334 : f32
    %184 = vector.broadcast %cst_73 : f32 to vector<32x4xf32>
    %185 = arith.mulf %184, %183 : vector<32x4xf32>
    %186 = arith.addf %103, %185 : vector<32x4xf32>
    %c2_i32 = arith.constant 2 : i32
    %c1_i32_74 = arith.constant 1 : i32
    %187 = tpu.dynamic_rotate %186 by %c1_i32_74 dim 0 : vector<32x4xf32>, i32 -> vector<32x4xf32>
    %cst_75 = arith.constant 0.000000e+00 : f32
    %188 = vector.broadcast %cst_75 : f32 to vector<32x4xf32>
    %189 = arith.select %18, %187, %188 : vector<32x4xi1>, vector<32x4xf32>
    %c31_i32_76 = arith.constant 31 : i32
    %190 = tpu.dynamic_rotate %186 by %c31_i32_76 dim 0 : vector<32x4xf32>, i32 -> vector<32x4xf32>
    %cst_77 = arith.constant 0.000000e+00 : f32
    %191 = vector.broadcast %cst_77 : f32 to vector<32x4xf32>
    %192 = arith.select %20, %190, %191 : vector<32x4xi1>, vector<32x4xf32>
    %193 = arith.truncf %189 : vector<32x4xf32> to vector<32x4xbf16>
    %cst_78 = arith.constant dense<0.000000e+00> : vector<32x4xf32>
    %194 = tpu.matmul %193, %10, %cst_78 {dimension_numbers = #tpu.dot_dimension_numbers<[1], [0], [0], [1], [0, 0, 1, 1], [], []>} : vector<32x4xbf16>, vector<4x4xbf16>, vector<32x4xf32> -> vector<32x4xf32>
    %195 = arith.truncf %186 : vector<32x4xf32> to vector<32x4xbf16>
    %cst_79 = arith.constant dense<0.000000e+00> : vector<32x4xf32>
    %196 = tpu.matmul %195, %12, %cst_79 {dimension_numbers = #tpu.dot_dimension_numbers<[1], [0], [0], [1], [0, 0, 1, 1], [], []>} : vector<32x4xbf16>, vector<4x4xbf16>, vector<32x4xf32> -> vector<32x4xf32>
    %197 = arith.addf %194, %196 : vector<32x4xf32>
    %198 = arith.truncf %192 : vector<32x4xf32> to vector<32x4xbf16>
    %cst_80 = arith.constant dense<0.000000e+00> : vector<32x4xf32>
    %199 = tpu.matmul %198, %14, %cst_80 {dimension_numbers = #tpu.dot_dimension_numbers<[1], [0], [0], [1], [0, 0, 1, 1], [], []>} : vector<32x4xbf16>, vector<4x4xbf16>, vector<32x4xf32> -> vector<32x4xf32>
    %200 = arith.addf %197, %199 : vector<32x4xf32>
    %201 = arith.addf %200, %6 : vector<32x4xf32>
    %202 = math.tanh %201 : vector<32x4xf32>
    %cst_81 = arith.constant 6.250000e-02 : f32
    %203 = vector.broadcast %cst_81 : f32 to vector<32x4xf32>
    %204 = arith.mulf %203, %202 : vector<32x4xf32>
    %205 = arith.addf %186, %204 : vector<32x4xf32>
    %c1_i32_82 = arith.constant 1 : i32
    %206 = tpu.dynamic_rotate %205 by %c1_i32_82 dim 0 : vector<32x4xf32>, i32 -> vector<32x4xf32>
    %cst_83 = arith.constant 0.000000e+00 : f32
    %207 = vector.broadcast %cst_83 : f32 to vector<32x4xf32>
    %208 = arith.select %18, %206, %207 : vector<32x4xi1>, vector<32x4xf32>
    %c31_i32_84 = arith.constant 31 : i32
    %209 = tpu.dynamic_rotate %205 by %c31_i32_84 dim 0 : vector<32x4xf32>, i32 -> vector<32x4xf32>
    %cst_85 = arith.constant 0.000000e+00 : f32
    %210 = vector.broadcast %cst_85 : f32 to vector<32x4xf32>
    %211 = arith.select %20, %209, %210 : vector<32x4xi1>, vector<32x4xf32>
    %212 = arith.truncf %208 : vector<32x4xf32> to vector<32x4xbf16>
    %cst_86 = arith.constant dense<0.000000e+00> : vector<32x4xf32>
    %213 = tpu.matmul %212, %10, %cst_86 {dimension_numbers = #tpu.dot_dimension_numbers<[1], [0], [0], [1], [0, 0, 1, 1], [], []>} : vector<32x4xbf16>, vector<4x4xbf16>, vector<32x4xf32> -> vector<32x4xf32>
    %214 = arith.truncf %205 : vector<32x4xf32> to vector<32x4xbf16>
    %cst_87 = arith.constant dense<0.000000e+00> : vector<32x4xf32>
    %215 = tpu.matmul %214, %12, %cst_87 {dimension_numbers = #tpu.dot_dimension_numbers<[1], [0], [0], [1], [0, 0, 1, 1], [], []>} : vector<32x4xbf16>, vector<4x4xbf16>, vector<32x4xf32> -> vector<32x4xf32>
    %216 = arith.addf %213, %215 : vector<32x4xf32>
    %217 = arith.truncf %211 : vector<32x4xf32> to vector<32x4xbf16>
    %cst_88 = arith.constant dense<0.000000e+00> : vector<32x4xf32>
    %218 = tpu.matmul %217, %14, %cst_88 {dimension_numbers = #tpu.dot_dimension_numbers<[1], [0], [0], [1], [0, 0, 1, 1], [], []>} : vector<32x4xbf16>, vector<4x4xbf16>, vector<32x4xf32> -> vector<32x4xf32>
    %219 = arith.addf %216, %218 : vector<32x4xf32>
    %220 = arith.addf %219, %6 : vector<32x4xf32>
    %221 = math.tanh %220 : vector<32x4xf32>
    %cst_89 = arith.constant 6.250000e-02 : f32
    %222 = vector.broadcast %cst_89 : f32 to vector<32x4xf32>
    %223 = arith.mulf %222, %221 : vector<32x4xf32>
    %224 = arith.addf %186, %223 : vector<32x4xf32>
    %c1_i32_90 = arith.constant 1 : i32
    %225 = tpu.dynamic_rotate %224 by %c1_i32_90 dim 0 : vector<32x4xf32>, i32 -> vector<32x4xf32>
    %cst_91 = arith.constant 0.000000e+00 : f32
    %226 = vector.broadcast %cst_91 : f32 to vector<32x4xf32>
    %227 = arith.select %18, %225, %226 : vector<32x4xi1>, vector<32x4xf32>
    %c31_i32_92 = arith.constant 31 : i32
    %228 = tpu.dynamic_rotate %224 by %c31_i32_92 dim 0 : vector<32x4xf32>, i32 -> vector<32x4xf32>
    %cst_93 = arith.constant 0.000000e+00 : f32
    %229 = vector.broadcast %cst_93 : f32 to vector<32x4xf32>
    %230 = arith.select %20, %228, %229 : vector<32x4xi1>, vector<32x4xf32>
    %231 = arith.truncf %227 : vector<32x4xf32> to vector<32x4xbf16>
    %cst_94 = arith.constant dense<0.000000e+00> : vector<32x4xf32>
    %232 = tpu.matmul %231, %10, %cst_94 {dimension_numbers = #tpu.dot_dimension_numbers<[1], [0], [0], [1], [0, 0, 1, 1], [], []>} : vector<32x4xbf16>, vector<4x4xbf16>, vector<32x4xf32> -> vector<32x4xf32>
    %233 = arith.truncf %224 : vector<32x4xf32> to vector<32x4xbf16>
    %cst_95 = arith.constant dense<0.000000e+00> : vector<32x4xf32>
    %234 = tpu.matmul %233, %12, %cst_95 {dimension_numbers = #tpu.dot_dimension_numbers<[1], [0], [0], [1], [0, 0, 1, 1], [], []>} : vector<32x4xbf16>, vector<4x4xbf16>, vector<32x4xf32> -> vector<32x4xf32>
    %235 = arith.addf %232, %234 : vector<32x4xf32>
    %236 = arith.truncf %230 : vector<32x4xf32> to vector<32x4xbf16>
    %cst_96 = arith.constant dense<0.000000e+00> : vector<32x4xf32>
    %237 = tpu.matmul %236, %14, %cst_96 {dimension_numbers = #tpu.dot_dimension_numbers<[1], [0], [0], [1], [0, 0, 1, 1], [], []>} : vector<32x4xbf16>, vector<4x4xbf16>, vector<32x4xf32> -> vector<32x4xf32>
    %238 = arith.addf %235, %237 : vector<32x4xf32>
    %239 = arith.addf %238, %6 : vector<32x4xf32>
    %240 = math.tanh %239 : vector<32x4xf32>
    %cst_97 = arith.constant 1.250000e-01 : f32
    %241 = vector.broadcast %cst_97 : f32 to vector<32x4xf32>
    %242 = arith.mulf %241, %240 : vector<32x4xf32>
    %243 = arith.addf %186, %242 : vector<32x4xf32>
    %c1_i32_98 = arith.constant 1 : i32
    %244 = tpu.dynamic_rotate %243 by %c1_i32_98 dim 0 : vector<32x4xf32>, i32 -> vector<32x4xf32>
    %cst_99 = arith.constant 0.000000e+00 : f32
    %245 = vector.broadcast %cst_99 : f32 to vector<32x4xf32>
    %246 = arith.select %18, %244, %245 : vector<32x4xi1>, vector<32x4xf32>
    %c31_i32_100 = arith.constant 31 : i32
    %247 = tpu.dynamic_rotate %243 by %c31_i32_100 dim 0 : vector<32x4xf32>, i32 -> vector<32x4xf32>
    %cst_101 = arith.constant 0.000000e+00 : f32
    %248 = vector.broadcast %cst_101 : f32 to vector<32x4xf32>
    %249 = arith.select %20, %247, %248 : vector<32x4xi1>, vector<32x4xf32>
    %250 = arith.truncf %246 : vector<32x4xf32> to vector<32x4xbf16>
    %cst_102 = arith.constant dense<0.000000e+00> : vector<32x4xf32>
    %251 = tpu.matmul %250, %10, %cst_102 {dimension_numbers = #tpu.dot_dimension_numbers<[1], [0], [0], [1], [0, 0, 1, 1], [], []>} : vector<32x4xbf16>, vector<4x4xbf16>, vector<32x4xf32> -> vector<32x4xf32>
    %252 = arith.truncf %243 : vector<32x4xf32> to vector<32x4xbf16>
    %cst_103 = arith.constant dense<0.000000e+00> : vector<32x4xf32>
    %253 = tpu.matmul %252, %12, %cst_103 {dimension_numbers = #tpu.dot_dimension_numbers<[1], [0], [0], [1], [0, 0, 1, 1], [], []>} : vector<32x4xbf16>, vector<4x4xbf16>, vector<32x4xf32> -> vector<32x4xf32>
    %254 = arith.addf %251, %253 : vector<32x4xf32>
    %255 = arith.truncf %249 : vector<32x4xf32> to vector<32x4xbf16>
    %cst_104 = arith.constant dense<0.000000e+00> : vector<32x4xf32>
    %256 = tpu.matmul %255, %14, %cst_104 {dimension_numbers = #tpu.dot_dimension_numbers<[1], [0], [0], [1], [0, 0, 1, 1], [], []>} : vector<32x4xbf16>, vector<4x4xbf16>, vector<32x4xf32> -> vector<32x4xf32>
    %257 = arith.addf %254, %256 : vector<32x4xf32>
    %258 = arith.addf %257, %6 : vector<32x4xf32>
    %259 = math.tanh %258 : vector<32x4xf32>
    %cst_105 = arith.constant 2.000000e+00 : f32
    %260 = vector.broadcast %cst_105 : f32 to vector<32x4xf32>
    %261 = arith.mulf %260, %221 : vector<32x4xf32>
    %262 = arith.addf %202, %261 : vector<32x4xf32>
    %cst_106 = arith.constant 2.000000e+00 : f32
    %263 = vector.broadcast %cst_106 : f32 to vector<32x4xf32>
    %264 = arith.mulf %263, %240 : vector<32x4xf32>
    %265 = arith.addf %262, %264 : vector<32x4xf32>
    %266 = arith.addf %265, %259 : vector<32x4xf32>
    %cst_107 = arith.constant 0.020833334 : f32
    %267 = vector.broadcast %cst_107 : f32 to vector<32x4xf32>
    %268 = arith.mulf %267, %266 : vector<32x4xf32>
    %269 = arith.addf %186, %268 : vector<32x4xf32>
    %c3_i32 = arith.constant 3 : i32
    %c1_i32_108 = arith.constant 1 : i32
    %270 = tpu.dynamic_rotate %269 by %c1_i32_108 dim 0 : vector<32x4xf32>, i32 -> vector<32x4xf32>
    %cst_109 = arith.constant 0.000000e+00 : f32
    %271 = vector.broadcast %cst_109 : f32 to vector<32x4xf32>
    %272 = arith.select %18, %270, %271 : vector<32x4xi1>, vector<32x4xf32>
    %c31_i32_110 = arith.constant 31 : i32
    %273 = tpu.dynamic_rotate %269 by %c31_i32_110 dim 0 : vector<32x4xf32>, i32 -> vector<32x4xf32>
    %cst_111 = arith.constant 0.000000e+00 : f32
    %274 = vector.broadcast %cst_111 : f32 to vector<32x4xf32>
    %275 = arith.select %20, %273, %274 : vector<32x4xi1>, vector<32x4xf32>
    %276 = arith.truncf %272 : vector<32x4xf32> to vector<32x4xbf16>
    %cst_112 = arith.constant dense<0.000000e+00> : vector<32x4xf32>
    %277 = tpu.matmul %276, %10, %cst_112 {dimension_numbers = #tpu.dot_dimension_numbers<[1], [0], [0], [1], [0, 0, 1, 1], [], []>} : vector<32x4xbf16>, vector<4x4xbf16>, vector<32x4xf32> -> vector<32x4xf32>
    %278 = arith.truncf %269 : vector<32x4xf32> to vector<32x4xbf16>
    %cst_113 = arith.constant dense<0.000000e+00> : vector<32x4xf32>
    %279 = tpu.matmul %278, %12, %cst_113 {dimension_numbers = #tpu.dot_dimension_numbers<[1], [0], [0], [1], [0, 0, 1, 1], [], []>} : vector<32x4xbf16>, vector<4x4xbf16>, vector<32x4xf32> -> vector<32x4xf32>
    %280 = arith.addf %277, %279 : vector<32x4xf32>
    %281 = arith.truncf %275 : vector<32x4xf32> to vector<32x4xbf16>
    %cst_114 = arith.constant dense<0.000000e+00> : vector<32x4xf32>
    %282 = tpu.matmul %281, %14, %cst_114 {dimension_numbers = #tpu.dot_dimension_numbers<[1], [0], [0], [1], [0, 0, 1, 1], [], []>} : vector<32x4xbf16>, vector<4x4xbf16>, vector<32x4xf32> -> vector<32x4xf32>
    %283 = arith.addf %280, %282 : vector<32x4xf32>
    %284 = arith.addf %283, %6 : vector<32x4xf32>
    %285 = math.tanh %284 : vector<32x4xf32>
    %cst_115 = arith.constant 6.250000e-02 : f32
    %286 = vector.broadcast %cst_115 : f32 to vector<32x4xf32>
    %287 = arith.mulf %286, %285 : vector<32x4xf32>
    %288 = arith.addf %269, %287 : vector<32x4xf32>
    %c1_i32_116 = arith.constant 1 : i32
    %289 = tpu.dynamic_rotate %288 by %c1_i32_116 dim 0 : vector<32x4xf32>, i32 -> vector<32x4xf32>
    %cst_117 = arith.constant 0.000000e+00 : f32
    %290 = vector.broadcast %cst_117 : f32 to vector<32x4xf32>
    %291 = arith.select %18, %289, %290 : vector<32x4xi1>, vector<32x4xf32>
    %c31_i32_118 = arith.constant 31 : i32
    %292 = tpu.dynamic_rotate %288 by %c31_i32_118 dim 0 : vector<32x4xf32>, i32 -> vector<32x4xf32>
    %cst_119 = arith.constant 0.000000e+00 : f32
    %293 = vector.broadcast %cst_119 : f32 to vector<32x4xf32>
    %294 = arith.select %20, %292, %293 : vector<32x4xi1>, vector<32x4xf32>
    %295 = arith.truncf %291 : vector<32x4xf32> to vector<32x4xbf16>
    %cst_120 = arith.constant dense<0.000000e+00> : vector<32x4xf32>
    %296 = tpu.matmul %295, %10, %cst_120 {dimension_numbers = #tpu.dot_dimension_numbers<[1], [0], [0], [1], [0, 0, 1, 1], [], []>} : vector<32x4xbf16>, vector<4x4xbf16>, vector<32x4xf32> -> vector<32x4xf32>
    %297 = arith.truncf %288 : vector<32x4xf32> to vector<32x4xbf16>
    %cst_121 = arith.constant dense<0.000000e+00> : vector<32x4xf32>
    %298 = tpu.matmul %297, %12, %cst_121 {dimension_numbers = #tpu.dot_dimension_numbers<[1], [0], [0], [1], [0, 0, 1, 1], [], []>} : vector<32x4xbf16>, vector<4x4xbf16>, vector<32x4xf32> -> vector<32x4xf32>
    %299 = arith.addf %296, %298 : vector<32x4xf32>
    %300 = arith.truncf %294 : vector<32x4xf32> to vector<32x4xbf16>
    %cst_122 = arith.constant dense<0.000000e+00> : vector<32x4xf32>
    %301 = tpu.matmul %300, %14, %cst_122 {dimension_numbers = #tpu.dot_dimension_numbers<[1], [0], [0], [1], [0, 0, 1, 1], [], []>} : vector<32x4xbf16>, vector<4x4xbf16>, vector<32x4xf32> -> vector<32x4xf32>
    %302 = arith.addf %299, %301 : vector<32x4xf32>
    %303 = arith.addf %302, %6 : vector<32x4xf32>
    %304 = math.tanh %303 : vector<32x4xf32>
    %cst_123 = arith.constant 6.250000e-02 : f32
    %305 = vector.broadcast %cst_123 : f32 to vector<32x4xf32>
    %306 = arith.mulf %305, %304 : vector<32x4xf32>
    %307 = arith.addf %269, %306 : vector<32x4xf32>
    %c1_i32_124 = arith.constant 1 : i32
    %308 = tpu.dynamic_rotate %307 by %c1_i32_124 dim 0 : vector<32x4xf32>, i32 -> vector<32x4xf32>
    %cst_125 = arith.constant 0.000000e+00 : f32
    %309 = vector.broadcast %cst_125 : f32 to vector<32x4xf32>
    %310 = arith.select %18, %308, %309 : vector<32x4xi1>, vector<32x4xf32>
    %c31_i32_126 = arith.constant 31 : i32
    %311 = tpu.dynamic_rotate %307 by %c31_i32_126 dim 0 : vector<32x4xf32>, i32 -> vector<32x4xf32>
    %cst_127 = arith.constant 0.000000e+00 : f32
    %312 = vector.broadcast %cst_127 : f32 to vector<32x4xf32>
    %313 = arith.select %20, %311, %312 : vector<32x4xi1>, vector<32x4xf32>
    %314 = arith.truncf %310 : vector<32x4xf32> to vector<32x4xbf16>
    %cst_128 = arith.constant dense<0.000000e+00> : vector<32x4xf32>
    %315 = tpu.matmul %314, %10, %cst_128 {dimension_numbers = #tpu.dot_dimension_numbers<[1], [0], [0], [1], [0, 0, 1, 1], [], []>} : vector<32x4xbf16>, vector<4x4xbf16>, vector<32x4xf32> -> vector<32x4xf32>
    %316 = arith.truncf %307 : vector<32x4xf32> to vector<32x4xbf16>
    %cst_129 = arith.constant dense<0.000000e+00> : vector<32x4xf32>
    %317 = tpu.matmul %316, %12, %cst_129 {dimension_numbers = #tpu.dot_dimension_numbers<[1], [0], [0], [1], [0, 0, 1, 1], [], []>} : vector<32x4xbf16>, vector<4x4xbf16>, vector<32x4xf32> -> vector<32x4xf32>
    %318 = arith.addf %315, %317 : vector<32x4xf32>
    %319 = arith.truncf %313 : vector<32x4xf32> to vector<32x4xbf16>
    %cst_130 = arith.constant dense<0.000000e+00> : vector<32x4xf32>
    %320 = tpu.matmul %319, %14, %cst_130 {dimension_numbers = #tpu.dot_dimension_numbers<[1], [0], [0], [1], [0, 0, 1, 1], [], []>} : vector<32x4xbf16>, vector<4x4xbf16>, vector<32x4xf32> -> vector<32x4xf32>
    %321 = arith.addf %318, %320 : vector<32x4xf32>
    %322 = arith.addf %321, %6 : vector<32x4xf32>
    %323 = math.tanh %322 : vector<32x4xf32>
    %cst_131 = arith.constant 1.250000e-01 : f32
    %324 = vector.broadcast %cst_131 : f32 to vector<32x4xf32>
    %325 = arith.mulf %324, %323 : vector<32x4xf32>
    %326 = arith.addf %269, %325 : vector<32x4xf32>
    %c1_i32_132 = arith.constant 1 : i32
    %327 = tpu.dynamic_rotate %326 by %c1_i32_132 dim 0 : vector<32x4xf32>, i32 -> vector<32x4xf32>
    %cst_133 = arith.constant 0.000000e+00 : f32
    %328 = vector.broadcast %cst_133 : f32 to vector<32x4xf32>
    %329 = arith.select %18, %327, %328 : vector<32x4xi1>, vector<32x4xf32>
    %c31_i32_134 = arith.constant 31 : i32
    %330 = tpu.dynamic_rotate %326 by %c31_i32_134 dim 0 : vector<32x4xf32>, i32 -> vector<32x4xf32>
    %cst_135 = arith.constant 0.000000e+00 : f32
    %331 = vector.broadcast %cst_135 : f32 to vector<32x4xf32>
    %332 = arith.select %20, %330, %331 : vector<32x4xi1>, vector<32x4xf32>
    %333 = arith.truncf %329 : vector<32x4xf32> to vector<32x4xbf16>
    %cst_136 = arith.constant dense<0.000000e+00> : vector<32x4xf32>
    %334 = tpu.matmul %333, %10, %cst_136 {dimension_numbers = #tpu.dot_dimension_numbers<[1], [0], [0], [1], [0, 0, 1, 1], [], []>} : vector<32x4xbf16>, vector<4x4xbf16>, vector<32x4xf32> -> vector<32x4xf32>
    %335 = arith.truncf %326 : vector<32x4xf32> to vector<32x4xbf16>
    %cst_137 = arith.constant dense<0.000000e+00> : vector<32x4xf32>
    %336 = tpu.matmul %335, %12, %cst_137 {dimension_numbers = #tpu.dot_dimension_numbers<[1], [0], [0], [1], [0, 0, 1, 1], [], []>} : vector<32x4xbf16>, vector<4x4xbf16>, vector<32x4xf32> -> vector<32x4xf32>
    %337 = arith.addf %334, %336 : vector<32x4xf32>
    %338 = arith.truncf %332 : vector<32x4xf32> to vector<32x4xbf16>
    %cst_138 = arith.constant dense<0.000000e+00> : vector<32x4xf32>
    %339 = tpu.matmul %338, %14, %cst_138 {dimension_numbers = #tpu.dot_dimension_numbers<[1], [0], [0], [1], [0, 0, 1, 1], [], []>} : vector<32x4xbf16>, vector<4x4xbf16>, vector<32x4xf32> -> vector<32x4xf32>
    %340 = arith.addf %337, %339 : vector<32x4xf32>
    %341 = arith.addf %340, %6 : vector<32x4xf32>
    %342 = math.tanh %341 : vector<32x4xf32>
    %cst_139 = arith.constant 2.000000e+00 : f32
    %343 = vector.broadcast %cst_139 : f32 to vector<32x4xf32>
    %344 = arith.mulf %343, %304 : vector<32x4xf32>
    %345 = arith.addf %285, %344 : vector<32x4xf32>
    %cst_140 = arith.constant 2.000000e+00 : f32
    %346 = vector.broadcast %cst_140 : f32 to vector<32x4xf32>
    %347 = arith.mulf %346, %323 : vector<32x4xf32>
    %348 = arith.addf %345, %347 : vector<32x4xf32>
    %349 = arith.addf %348, %342 : vector<32x4xf32>
    %cst_141 = arith.constant 0.020833334 : f32
    %350 = vector.broadcast %cst_141 : f32 to vector<32x4xf32>
    %351 = arith.mulf %350, %349 : vector<32x4xf32>
    %352 = arith.addf %269, %351 : vector<32x4xf32>
    %c4_i32 = arith.constant 4 : i32
    %c1_i32_142 = arith.constant 1 : i32
    %353 = tpu.dynamic_rotate %352 by %c1_i32_142 dim 0 : vector<32x4xf32>, i32 -> vector<32x4xf32>
    %cst_143 = arith.constant 0.000000e+00 : f32
    %354 = vector.broadcast %cst_143 : f32 to vector<32x4xf32>
    %355 = arith.select %18, %353, %354 : vector<32x4xi1>, vector<32x4xf32>
    %c31_i32_144 = arith.constant 31 : i32
    %356 = tpu.dynamic_rotate %352 by %c31_i32_144 dim 0 : vector<32x4xf32>, i32 -> vector<32x4xf32>
    %cst_145 = arith.constant 0.000000e+00 : f32
    %357 = vector.broadcast %cst_145 : f32 to vector<32x4xf32>
    %358 = arith.select %20, %356, %357 : vector<32x4xi1>, vector<32x4xf32>
    %359 = arith.truncf %355 : vector<32x4xf32> to vector<32x4xbf16>
    %cst_146 = arith.constant dense<0.000000e+00> : vector<32x4xf32>
    %360 = tpu.matmul %359, %10, %cst_146 {dimension_numbers = #tpu.dot_dimension_numbers<[1], [0], [0], [1], [0, 0, 1, 1], [], []>} : vector<32x4xbf16>, vector<4x4xbf16>, vector<32x4xf32> -> vector<32x4xf32>
    %361 = arith.truncf %352 : vector<32x4xf32> to vector<32x4xbf16>
    %cst_147 = arith.constant dense<0.000000e+00> : vector<32x4xf32>
    %362 = tpu.matmul %361, %12, %cst_147 {dimension_numbers = #tpu.dot_dimension_numbers<[1], [0], [0], [1], [0, 0, 1, 1], [], []>} : vector<32x4xbf16>, vector<4x4xbf16>, vector<32x4xf32> -> vector<32x4xf32>
    %363 = arith.addf %360, %362 : vector<32x4xf32>
    %364 = arith.truncf %358 : vector<32x4xf32> to vector<32x4xbf16>
    %cst_148 = arith.constant dense<0.000000e+00> : vector<32x4xf32>
    %365 = tpu.matmul %364, %14, %cst_148 {dimension_numbers = #tpu.dot_dimension_numbers<[1], [0], [0], [1], [0, 0, 1, 1], [], []>} : vector<32x4xbf16>, vector<4x4xbf16>, vector<32x4xf32> -> vector<32x4xf32>
    %366 = arith.addf %363, %365 : vector<32x4xf32>
    %367 = arith.addf %366, %6 : vector<32x4xf32>
    %368 = math.tanh %367 : vector<32x4xf32>
    %cst_149 = arith.constant 6.250000e-02 : f32
    %369 = vector.broadcast %cst_149 : f32 to vector<32x4xf32>
    %370 = arith.mulf %369, %368 : vector<32x4xf32>
    %371 = arith.addf %352, %370 : vector<32x4xf32>
    %c1_i32_150 = arith.constant 1 : i32
    %372 = tpu.dynamic_rotate %371 by %c1_i32_150 dim 0 : vector<32x4xf32>, i32 -> vector<32x4xf32>
    %cst_151 = arith.constant 0.000000e+00 : f32
    %373 = vector.broadcast %cst_151 : f32 to vector<32x4xf32>
    %374 = arith.select %18, %372, %373 : vector<32x4xi1>, vector<32x4xf32>
    %c31_i32_152 = arith.constant 31 : i32
    %375 = tpu.dynamic_rotate %371 by %c31_i32_152 dim 0 : vector<32x4xf32>, i32 -> vector<32x4xf32>
    %cst_153 = arith.constant 0.000000e+00 : f32
    %376 = vector.broadcast %cst_153 : f32 to vector<32x4xf32>
    %377 = arith.select %20, %375, %376 : vector<32x4xi1>, vector<32x4xf32>
    %378 = arith.truncf %374 : vector<32x4xf32> to vector<32x4xbf16>
    %cst_154 = arith.constant dense<0.000000e+00> : vector<32x4xf32>
    %379 = tpu.matmul %378, %10, %cst_154 {dimension_numbers = #tpu.dot_dimension_numbers<[1], [0], [0], [1], [0, 0, 1, 1], [], []>} : vector<32x4xbf16>, vector<4x4xbf16>, vector<32x4xf32> -> vector<32x4xf32>
    %380 = arith.truncf %371 : vector<32x4xf32> to vector<32x4xbf16>
    %cst_155 = arith.constant dense<0.000000e+00> : vector<32x4xf32>
    %381 = tpu.matmul %380, %12, %cst_155 {dimension_numbers = #tpu.dot_dimension_numbers<[1], [0], [0], [1], [0, 0, 1, 1], [], []>} : vector<32x4xbf16>, vector<4x4xbf16>, vector<32x4xf32> -> vector<32x4xf32>
    %382 = arith.addf %379, %381 : vector<32x4xf32>
    %383 = arith.truncf %377 : vector<32x4xf32> to vector<32x4xbf16>
    %cst_156 = arith.constant dense<0.000000e+00> : vector<32x4xf32>
    %384 = tpu.matmul %383, %14, %cst_156 {dimension_numbers = #tpu.dot_dimension_numbers<[1], [0], [0], [1], [0, 0, 1, 1], [], []>} : vector<32x4xbf16>, vector<4x4xbf16>, vector<32x4xf32> -> vector<32x4xf32>
    %385 = arith.addf %382, %384 : vector<32x4xf32>
    %386 = arith.addf %385, %6 : vector<32x4xf32>
    %387 = math.tanh %386 : vector<32x4xf32>
    %cst_157 = arith.constant 6.250000e-02 : f32
    %388 = vector.broadcast %cst_157 : f32 to vector<32x4xf32>
    %389 = arith.mulf %388, %387 : vector<32x4xf32>
    %390 = arith.addf %352, %389 : vector<32x4xf32>
    %c1_i32_158 = arith.constant 1 : i32
    %391 = tpu.dynamic_rotate %390 by %c1_i32_158 dim 0 : vector<32x4xf32>, i32 -> vector<32x4xf32>
    %cst_159 = arith.constant 0.000000e+00 : f32
    %392 = vector.broadcast %cst_159 : f32 to vector<32x4xf32>
    %393 = arith.select %18, %391, %392 : vector<32x4xi1>, vector<32x4xf32>
    %c31_i32_160 = arith.constant 31 : i32
    %394 = tpu.dynamic_rotate %390 by %c31_i32_160 dim 0 : vector<32x4xf32>, i32 -> vector<32x4xf32>
    %cst_161 = arith.constant 0.000000e+00 : f32
    %395 = vector.broadcast %cst_161 : f32 to vector<32x4xf32>
    %396 = arith.select %20, %394, %395 : vector<32x4xi1>, vector<32x4xf32>
    %397 = arith.truncf %393 : vector<32x4xf32> to vector<32x4xbf16>
    %cst_162 = arith.constant dense<0.000000e+00> : vector<32x4xf32>
    %398 = tpu.matmul %397, %10, %cst_162 {dimension_numbers = #tpu.dot_dimension_numbers<[1], [0], [0], [1], [0, 0, 1, 1], [], []>} : vector<32x4xbf16>, vector<4x4xbf16>, vector<32x4xf32> -> vector<32x4xf32>
    %399 = arith.truncf %390 : vector<32x4xf32> to vector<32x4xbf16>
    %cst_163 = arith.constant dense<0.000000e+00> : vector<32x4xf32>
    %400 = tpu.matmul %399, %12, %cst_163 {dimension_numbers = #tpu.dot_dimension_numbers<[1], [0], [0], [1], [0, 0, 1, 1], [], []>} : vector<32x4xbf16>, vector<4x4xbf16>, vector<32x4xf32> -> vector<32x4xf32>
    %401 = arith.addf %398, %400 : vector<32x4xf32>
    %402 = arith.truncf %396 : vector<32x4xf32> to vector<32x4xbf16>
    %cst_164 = arith.constant dense<0.000000e+00> : vector<32x4xf32>
    %403 = tpu.matmul %402, %14, %cst_164 {dimension_numbers = #tpu.dot_dimension_numbers<[1], [0], [0], [1], [0, 0, 1, 1], [], []>} : vector<32x4xbf16>, vector<4x4xbf16>, vector<32x4xf32> -> vector<32x4xf32>
    %404 = arith.addf %401, %403 : vector<32x4xf32>
    %405 = arith.addf %404, %6 : vector<32x4xf32>
    %406 = math.tanh %405 : vector<32x4xf32>
    %cst_165 = arith.constant 1.250000e-01 : f32
    %407 = vector.broadcast %cst_165 : f32 to vector<32x4xf32>
    %408 = arith.mulf %407, %406 : vector<32x4xf32>
    %409 = arith.addf %352, %408 : vector<32x4xf32>
    %c1_i32_166 = arith.constant 1 : i32
    %410 = tpu.dynamic_rotate %409 by %c1_i32_166 dim 0 : vector<32x4xf32>, i32 -> vector<32x4xf32>
    %cst_167 = arith.constant 0.000000e+00 : f32
    %411 = vector.broadcast %cst_167 : f32 to vector<32x4xf32>
    %412 = arith.select %18, %410, %411 : vector<32x4xi1>, vector<32x4xf32>
    %c31_i32_168 = arith.constant 31 : i32
    %413 = tpu.dynamic_rotate %409 by %c31_i32_168 dim 0 : vector<32x4xf32>, i32 -> vector<32x4xf32>
    %cst_169 = arith.constant 0.000000e+00 : f32
    %414 = vector.broadcast %cst_169 : f32 to vector<32x4xf32>
    %415 = arith.select %20, %413, %414 : vector<32x4xi1>, vector<32x4xf32>
    %416 = arith.truncf %412 : vector<32x4xf32> to vector<32x4xbf16>
    %cst_170 = arith.constant dense<0.000000e+00> : vector<32x4xf32>
    %417 = tpu.matmul %416, %10, %cst_170 {dimension_numbers = #tpu.dot_dimension_numbers<[1], [0], [0], [1], [0, 0, 1, 1], [], []>} : vector<32x4xbf16>, vector<4x4xbf16>, vector<32x4xf32> -> vector<32x4xf32>
    %418 = arith.truncf %409 : vector<32x4xf32> to vector<32x4xbf16>
    %cst_171 = arith.constant dense<0.000000e+00> : vector<32x4xf32>
    %419 = tpu.matmul %418, %12, %cst_171 {dimension_numbers = #tpu.dot_dimension_numbers<[1], [0], [0], [1], [0, 0, 1, 1], [], []>} : vector<32x4xbf16>, vector<4x4xbf16>, vector<32x4xf32> -> vector<32x4xf32>
    %420 = arith.addf %417, %419 : vector<32x4xf32>
    %421 = arith.truncf %415 : vector<32x4xf32> to vector<32x4xbf16>
    %cst_172 = arith.constant dense<0.000000e+00> : vector<32x4xf32>
    %422 = tpu.matmul %421, %14, %cst_172 {dimension_numbers = #tpu.dot_dimension_numbers<[1], [0], [0], [1], [0, 0, 1, 1], [], []>} : vector<32x4xbf16>, vector<4x4xbf16>, vector<32x4xf32> -> vector<32x4xf32>
    %423 = arith.addf %420, %422 : vector<32x4xf32>
    %424 = arith.addf %423, %6 : vector<32x4xf32>
    %425 = math.tanh %424 : vector<32x4xf32>
    %cst_173 = arith.constant 2.000000e+00 : f32
    %426 = vector.broadcast %cst_173 : f32 to vector<32x4xf32>
    %427 = arith.mulf %426, %387 : vector<32x4xf32>
    %428 = arith.addf %368, %427 : vector<32x4xf32>
    %cst_174 = arith.constant 2.000000e+00 : f32
    %429 = vector.broadcast %cst_174 : f32 to vector<32x4xf32>
    %430 = arith.mulf %429, %406 : vector<32x4xf32>
    %431 = arith.addf %428, %430 : vector<32x4xf32>
    %432 = arith.addf %431, %425 : vector<32x4xf32>
    %cst_175 = arith.constant 0.020833334 : f32
    %433 = vector.broadcast %cst_175 : f32 to vector<32x4xf32>
    %434 = arith.mulf %433, %432 : vector<32x4xf32>
    %435 = arith.addf %352, %434 : vector<32x4xf32>
    %c5_i32 = arith.constant 5 : i32
    %c1_i32_176 = arith.constant 1 : i32
    %436 = tpu.dynamic_rotate %435 by %c1_i32_176 dim 0 : vector<32x4xf32>, i32 -> vector<32x4xf32>
    %cst_177 = arith.constant 0.000000e+00 : f32
    %437 = vector.broadcast %cst_177 : f32 to vector<32x4xf32>
    %438 = arith.select %18, %436, %437 : vector<32x4xi1>, vector<32x4xf32>
    %c31_i32_178 = arith.constant 31 : i32
    %439 = tpu.dynamic_rotate %435 by %c31_i32_178 dim 0 : vector<32x4xf32>, i32 -> vector<32x4xf32>
    %cst_179 = arith.constant 0.000000e+00 : f32
    %440 = vector.broadcast %cst_179 : f32 to vector<32x4xf32>
    %441 = arith.select %20, %439, %440 : vector<32x4xi1>, vector<32x4xf32>
    %442 = arith.truncf %438 : vector<32x4xf32> to vector<32x4xbf16>
    %cst_180 = arith.constant dense<0.000000e+00> : vector<32x4xf32>
    %443 = tpu.matmul %442, %10, %cst_180 {dimension_numbers = #tpu.dot_dimension_numbers<[1], [0], [0], [1], [0, 0, 1, 1], [], []>} : vector<32x4xbf16>, vector<4x4xbf16>, vector<32x4xf32> -> vector<32x4xf32>
    %444 = arith.truncf %435 : vector<32x4xf32> to vector<32x4xbf16>
    %cst_181 = arith.constant dense<0.000000e+00> : vector<32x4xf32>
    %445 = tpu.matmul %444, %12, %cst_181 {dimension_numbers = #tpu.dot_dimension_numbers<[1], [0], [0], [1], [0, 0, 1, 1], [], []>} : vector<32x4xbf16>, vector<4x4xbf16>, vector<32x4xf32> -> vector<32x4xf32>
    %446 = arith.addf %443, %445 : vector<32x4xf32>
    %447 = arith.truncf %441 : vector<32x4xf32> to vector<32x4xbf16>
    %cst_182 = arith.constant dense<0.000000e+00> : vector<32x4xf32>
    %448 = tpu.matmul %447, %14, %cst_182 {dimension_numbers = #tpu.dot_dimension_numbers<[1], [0], [0], [1], [0, 0, 1, 1], [], []>} : vector<32x4xbf16>, vector<4x4xbf16>, vector<32x4xf32> -> vector<32x4xf32>
    %449 = arith.addf %446, %448 : vector<32x4xf32>
    %450 = arith.addf %449, %6 : vector<32x4xf32>
    %451 = math.tanh %450 : vector<32x4xf32>
    %cst_183 = arith.constant 6.250000e-02 : f32
    %452 = vector.broadcast %cst_183 : f32 to vector<32x4xf32>
    %453 = arith.mulf %452, %451 : vector<32x4xf32>
    %454 = arith.addf %435, %453 : vector<32x4xf32>
    %c1_i32_184 = arith.constant 1 : i32
    %455 = tpu.dynamic_rotate %454 by %c1_i32_184 dim 0 : vector<32x4xf32>, i32 -> vector<32x4xf32>
    %cst_185 = arith.constant 0.000000e+00 : f32
    %456 = vector.broadcast %cst_185 : f32 to vector<32x4xf32>
    %457 = arith.select %18, %455, %456 : vector<32x4xi1>, vector<32x4xf32>
    %c31_i32_186 = arith.constant 31 : i32
    %458 = tpu.dynamic_rotate %454 by %c31_i32_186 dim 0 : vector<32x4xf32>, i32 -> vector<32x4xf32>
    %cst_187 = arith.constant 0.000000e+00 : f32
    %459 = vector.broadcast %cst_187 : f32 to vector<32x4xf32>
    %460 = arith.select %20, %458, %459 : vector<32x4xi1>, vector<32x4xf32>
    %461 = arith.truncf %457 : vector<32x4xf32> to vector<32x4xbf16>
    %cst_188 = arith.constant dense<0.000000e+00> : vector<32x4xf32>
    %462 = tpu.matmul %461, %10, %cst_188 {dimension_numbers = #tpu.dot_dimension_numbers<[1], [0], [0], [1], [0, 0, 1, 1], [], []>} : vector<32x4xbf16>, vector<4x4xbf16>, vector<32x4xf32> -> vector<32x4xf32>
    %463 = arith.truncf %454 : vector<32x4xf32> to vector<32x4xbf16>
    %cst_189 = arith.constant dense<0.000000e+00> : vector<32x4xf32>
    %464 = tpu.matmul %463, %12, %cst_189 {dimension_numbers = #tpu.dot_dimension_numbers<[1], [0], [0], [1], [0, 0, 1, 1], [], []>} : vector<32x4xbf16>, vector<4x4xbf16>, vector<32x4xf32> -> vector<32x4xf32>
    %465 = arith.addf %462, %464 : vector<32x4xf32>
    %466 = arith.truncf %460 : vector<32x4xf32> to vector<32x4xbf16>
    %cst_190 = arith.constant dense<0.000000e+00> : vector<32x4xf32>
    %467 = tpu.matmul %466, %14, %cst_190 {dimension_numbers = #tpu.dot_dimension_numbers<[1], [0], [0], [1], [0, 0, 1, 1], [], []>} : vector<32x4xbf16>, vector<4x4xbf16>, vector<32x4xf32> -> vector<32x4xf32>
    %468 = arith.addf %465, %467 : vector<32x4xf32>
    %469 = arith.addf %468, %6 : vector<32x4xf32>
    %470 = math.tanh %469 : vector<32x4xf32>
    %cst_191 = arith.constant 6.250000e-02 : f32
    %471 = vector.broadcast %cst_191 : f32 to vector<32x4xf32>
    %472 = arith.mulf %471, %470 : vector<32x4xf32>
    %473 = arith.addf %435, %472 : vector<32x4xf32>
    %c1_i32_192 = arith.constant 1 : i32
    %474 = tpu.dynamic_rotate %473 by %c1_i32_192 dim 0 : vector<32x4xf32>, i32 -> vector<32x4xf32>
    %cst_193 = arith.constant 0.000000e+00 : f32
    %475 = vector.broadcast %cst_193 : f32 to vector<32x4xf32>
    %476 = arith.select %18, %474, %475 : vector<32x4xi1>, vector<32x4xf32>
    %c31_i32_194 = arith.constant 31 : i32
    %477 = tpu.dynamic_rotate %473 by %c31_i32_194 dim 0 : vector<32x4xf32>, i32 -> vector<32x4xf32>
    %cst_195 = arith.constant 0.000000e+00 : f32
    %478 = vector.broadcast %cst_195 : f32 to vector<32x4xf32>
    %479 = arith.select %20, %477, %478 : vector<32x4xi1>, vector<32x4xf32>
    %480 = arith.truncf %476 : vector<32x4xf32> to vector<32x4xbf16>
    %cst_196 = arith.constant dense<0.000000e+00> : vector<32x4xf32>
    %481 = tpu.matmul %480, %10, %cst_196 {dimension_numbers = #tpu.dot_dimension_numbers<[1], [0], [0], [1], [0, 0, 1, 1], [], []>} : vector<32x4xbf16>, vector<4x4xbf16>, vector<32x4xf32> -> vector<32x4xf32>
    %482 = arith.truncf %473 : vector<32x4xf32> to vector<32x4xbf16>
    %cst_197 = arith.constant dense<0.000000e+00> : vector<32x4xf32>
    %483 = tpu.matmul %482, %12, %cst_197 {dimension_numbers = #tpu.dot_dimension_numbers<[1], [0], [0], [1], [0, 0, 1, 1], [], []>} : vector<32x4xbf16>, vector<4x4xbf16>, vector<32x4xf32> -> vector<32x4xf32>
    %484 = arith.addf %481, %483 : vector<32x4xf32>
    %485 = arith.truncf %479 : vector<32x4xf32> to vector<32x4xbf16>
    %cst_198 = arith.constant dense<0.000000e+00> : vector<32x4xf32>
    %486 = tpu.matmul %485, %14, %cst_198 {dimension_numbers = #tpu.dot_dimension_numbers<[1], [0], [0], [1], [0, 0, 1, 1], [], []>} : vector<32x4xbf16>, vector<4x4xbf16>, vector<32x4xf32> -> vector<32x4xf32>
    %487 = arith.addf %484, %486 : vector<32x4xf32>
    %488 = arith.addf %487, %6 : vector<32x4xf32>
    %489 = math.tanh %488 : vector<32x4xf32>
    %cst_199 = arith.constant 1.250000e-01 : f32
    %490 = vector.broadcast %cst_199 : f32 to vector<32x4xf32>
    %491 = arith.mulf %490, %489 : vector<32x4xf32>
    %492 = arith.addf %435, %491 : vector<32x4xf32>
    %c1_i32_200 = arith.constant 1 : i32
    %493 = tpu.dynamic_rotate %492 by %c1_i32_200 dim 0 : vector<32x4xf32>, i32 -> vector<32x4xf32>
    %cst_201 = arith.constant 0.000000e+00 : f32
    %494 = vector.broadcast %cst_201 : f32 to vector<32x4xf32>
    %495 = arith.select %18, %493, %494 : vector<32x4xi1>, vector<32x4xf32>
    %c31_i32_202 = arith.constant 31 : i32
    %496 = tpu.dynamic_rotate %492 by %c31_i32_202 dim 0 : vector<32x4xf32>, i32 -> vector<32x4xf32>
    %cst_203 = arith.constant 0.000000e+00 : f32
    %497 = vector.broadcast %cst_203 : f32 to vector<32x4xf32>
    %498 = arith.select %20, %496, %497 : vector<32x4xi1>, vector<32x4xf32>
    %499 = arith.truncf %495 : vector<32x4xf32> to vector<32x4xbf16>
    %cst_204 = arith.constant dense<0.000000e+00> : vector<32x4xf32>
    %500 = tpu.matmul %499, %10, %cst_204 {dimension_numbers = #tpu.dot_dimension_numbers<[1], [0], [0], [1], [0, 0, 1, 1], [], []>} : vector<32x4xbf16>, vector<4x4xbf16>, vector<32x4xf32> -> vector<32x4xf32>
    %501 = arith.truncf %492 : vector<32x4xf32> to vector<32x4xbf16>
    %cst_205 = arith.constant dense<0.000000e+00> : vector<32x4xf32>
    %502 = tpu.matmul %501, %12, %cst_205 {dimension_numbers = #tpu.dot_dimension_numbers<[1], [0], [0], [1], [0, 0, 1, 1], [], []>} : vector<32x4xbf16>, vector<4x4xbf16>, vector<32x4xf32> -> vector<32x4xf32>
    %503 = arith.addf %500, %502 : vector<32x4xf32>
    %504 = arith.truncf %498 : vector<32x4xf32> to vector<32x4xbf16>
    %cst_206 = arith.constant dense<0.000000e+00> : vector<32x4xf32>
    %505 = tpu.matmul %504, %14, %cst_206 {dimension_numbers = #tpu.dot_dimension_numbers<[1], [0], [0], [1], [0, 0, 1, 1], [], []>} : vector<32x4xbf16>, vector<4x4xbf16>, vector<32x4xf32> -> vector<32x4xf32>
    %506 = arith.addf %503, %505 : vector<32x4xf32>
    %507 = arith.addf %506, %6 : vector<32x4xf32>
    %508 = math.tanh %507 : vector<32x4xf32>
    %cst_207 = arith.constant 2.000000e+00 : f32
    %509 = vector.broadcast %cst_207 : f32 to vector<32x4xf32>
    %510 = arith.mulf %509, %470 : vector<32x4xf32>
    %511 = arith.addf %451, %510 : vector<32x4xf32>
    %cst_208 = arith.constant 2.000000e+00 : f32
    %512 = vector.broadcast %cst_208 : f32 to vector<32x4xf32>
    %513 = arith.mulf %512, %489 : vector<32x4xf32>
    %514 = arith.addf %511, %513 : vector<32x4xf32>
    %515 = arith.addf %514, %508 : vector<32x4xf32>
    %cst_209 = arith.constant 0.020833334 : f32
    %516 = vector.broadcast %cst_209 : f32 to vector<32x4xf32>
    %517 = arith.mulf %516, %515 : vector<32x4xf32>
    %518 = arith.addf %435, %517 : vector<32x4xf32>
    %c6_i32 = arith.constant 6 : i32
    %c1_i32_210 = arith.constant 1 : i32
    %519 = tpu.dynamic_rotate %518 by %c1_i32_210 dim 0 : vector<32x4xf32>, i32 -> vector<32x4xf32>
    %cst_211 = arith.constant 0.000000e+00 : f32
    %520 = vector.broadcast %cst_211 : f32 to vector<32x4xf32>
    %521 = arith.select %18, %519, %520 : vector<32x4xi1>, vector<32x4xf32>
    %c31_i32_212 = arith.constant 31 : i32
    %522 = tpu.dynamic_rotate %518 by %c31_i32_212 dim 0 : vector<32x4xf32>, i32 -> vector<32x4xf32>
    %cst_213 = arith.constant 0.000000e+00 : f32
    %523 = vector.broadcast %cst_213 : f32 to vector<32x4xf32>
    %524 = arith.select %20, %522, %523 : vector<32x4xi1>, vector<32x4xf32>
    %525 = arith.truncf %521 : vector<32x4xf32> to vector<32x4xbf16>
    %cst_214 = arith.constant dense<0.000000e+00> : vector<32x4xf32>
    %526 = tpu.matmul %525, %10, %cst_214 {dimension_numbers = #tpu.dot_dimension_numbers<[1], [0], [0], [1], [0, 0, 1, 1], [], []>} : vector<32x4xbf16>, vector<4x4xbf16>, vector<32x4xf32> -> vector<32x4xf32>
    %527 = arith.truncf %518 : vector<32x4xf32> to vector<32x4xbf16>
    %cst_215 = arith.constant dense<0.000000e+00> : vector<32x4xf32>
    %528 = tpu.matmul %527, %12, %cst_215 {dimension_numbers = #tpu.dot_dimension_numbers<[1], [0], [0], [1], [0, 0, 1, 1], [], []>} : vector<32x4xbf16>, vector<4x4xbf16>, vector<32x4xf32> -> vector<32x4xf32>
    %529 = arith.addf %526, %528 : vector<32x4xf32>
    %530 = arith.truncf %524 : vector<32x4xf32> to vector<32x4xbf16>
    %cst_216 = arith.constant dense<0.000000e+00> : vector<32x4xf32>
    %531 = tpu.matmul %530, %14, %cst_216 {dimension_numbers = #tpu.dot_dimension_numbers<[1], [0], [0], [1], [0, 0, 1, 1], [], []>} : vector<32x4xbf16>, vector<4x4xbf16>, vector<32x4xf32> -> vector<32x4xf32>
    %532 = arith.addf %529, %531 : vector<32x4xf32>
    %533 = arith.addf %532, %6 : vector<32x4xf32>
    %534 = math.tanh %533 : vector<32x4xf32>
    %cst_217 = arith.constant 6.250000e-02 : f32
    %535 = vector.broadcast %cst_217 : f32 to vector<32x4xf32>
    %536 = arith.mulf %535, %534 : vector<32x4xf32>
    %537 = arith.addf %518, %536 : vector<32x4xf32>
    %c1_i32_218 = arith.constant 1 : i32
    %538 = tpu.dynamic_rotate %537 by %c1_i32_218 dim 0 : vector<32x4xf32>, i32 -> vector<32x4xf32>
    %cst_219 = arith.constant 0.000000e+00 : f32
    %539 = vector.broadcast %cst_219 : f32 to vector<32x4xf32>
    %540 = arith.select %18, %538, %539 : vector<32x4xi1>, vector<32x4xf32>
    %c31_i32_220 = arith.constant 31 : i32
    %541 = tpu.dynamic_rotate %537 by %c31_i32_220 dim 0 : vector<32x4xf32>, i32 -> vector<32x4xf32>
    %cst_221 = arith.constant 0.000000e+00 : f32
    %542 = vector.broadcast %cst_221 : f32 to vector<32x4xf32>
    %543 = arith.select %20, %541, %542 : vector<32x4xi1>, vector<32x4xf32>
    %544 = arith.truncf %540 : vector<32x4xf32> to vector<32x4xbf16>
    %cst_222 = arith.constant dense<0.000000e+00> : vector<32x4xf32>
    %545 = tpu.matmul %544, %10, %cst_222 {dimension_numbers = #tpu.dot_dimension_numbers<[1], [0], [0], [1], [0, 0, 1, 1], [], []>} : vector<32x4xbf16>, vector<4x4xbf16>, vector<32x4xf32> -> vector<32x4xf32>
    %546 = arith.truncf %537 : vector<32x4xf32> to vector<32x4xbf16>
    %cst_223 = arith.constant dense<0.000000e+00> : vector<32x4xf32>
    %547 = tpu.matmul %546, %12, %cst_223 {dimension_numbers = #tpu.dot_dimension_numbers<[1], [0], [0], [1], [0, 0, 1, 1], [], []>} : vector<32x4xbf16>, vector<4x4xbf16>, vector<32x4xf32> -> vector<32x4xf32>
    %548 = arith.addf %545, %547 : vector<32x4xf32>
    %549 = arith.truncf %543 : vector<32x4xf32> to vector<32x4xbf16>
    %cst_224 = arith.constant dense<0.000000e+00> : vector<32x4xf32>
    %550 = tpu.matmul %549, %14, %cst_224 {dimension_numbers = #tpu.dot_dimension_numbers<[1], [0], [0], [1], [0, 0, 1, 1], [], []>} : vector<32x4xbf16>, vector<4x4xbf16>, vector<32x4xf32> -> vector<32x4xf32>
    %551 = arith.addf %548, %550 : vector<32x4xf32>
    %552 = arith.addf %551, %6 : vector<32x4xf32>
    %553 = math.tanh %552 : vector<32x4xf32>
    %cst_225 = arith.constant 6.250000e-02 : f32
    %554 = vector.broadcast %cst_225 : f32 to vector<32x4xf32>
    %555 = arith.mulf %554, %553 : vector<32x4xf32>
    %556 = arith.addf %518, %555 : vector<32x4xf32>
    %c1_i32_226 = arith.constant 1 : i32
    %557 = tpu.dynamic_rotate %556 by %c1_i32_226 dim 0 : vector<32x4xf32>, i32 -> vector<32x4xf32>
    %cst_227 = arith.constant 0.000000e+00 : f32
    %558 = vector.broadcast %cst_227 : f32 to vector<32x4xf32>
    %559 = arith.select %18, %557, %558 : vector<32x4xi1>, vector<32x4xf32>
    %c31_i32_228 = arith.constant 31 : i32
    %560 = tpu.dynamic_rotate %556 by %c31_i32_228 dim 0 : vector<32x4xf32>, i32 -> vector<32x4xf32>
    %cst_229 = arith.constant 0.000000e+00 : f32
    %561 = vector.broadcast %cst_229 : f32 to vector<32x4xf32>
    %562 = arith.select %20, %560, %561 : vector<32x4xi1>, vector<32x4xf32>
    %563 = arith.truncf %559 : vector<32x4xf32> to vector<32x4xbf16>
    %cst_230 = arith.constant dense<0.000000e+00> : vector<32x4xf32>
    %564 = tpu.matmul %563, %10, %cst_230 {dimension_numbers = #tpu.dot_dimension_numbers<[1], [0], [0], [1], [0, 0, 1, 1], [], []>} : vector<32x4xbf16>, vector<4x4xbf16>, vector<32x4xf32> -> vector<32x4xf32>
    %565 = arith.truncf %556 : vector<32x4xf32> to vector<32x4xbf16>
    %cst_231 = arith.constant dense<0.000000e+00> : vector<32x4xf32>
    %566 = tpu.matmul %565, %12, %cst_231 {dimension_numbers = #tpu.dot_dimension_numbers<[1], [0], [0], [1], [0, 0, 1, 1], [], []>} : vector<32x4xbf16>, vector<4x4xbf16>, vector<32x4xf32> -> vector<32x4xf32>
    %567 = arith.addf %564, %566 : vector<32x4xf32>
    %568 = arith.truncf %562 : vector<32x4xf32> to vector<32x4xbf16>
    %cst_232 = arith.constant dense<0.000000e+00> : vector<32x4xf32>
    %569 = tpu.matmul %568, %14, %cst_232 {dimension_numbers = #tpu.dot_dimension_numbers<[1], [0], [0], [1], [0, 0, 1, 1], [], []>} : vector<32x4xbf16>, vector<4x4xbf16>, vector<32x4xf32> -> vector<32x4xf32>
    %570 = arith.addf %567, %569 : vector<32x4xf32>
    %571 = arith.addf %570, %6 : vector<32x4xf32>
    %572 = math.tanh %571 : vector<32x4xf32>
    %cst_233 = arith.constant 1.250000e-01 : f32
    %573 = vector.broadcast %cst_233 : f32 to vector<32x4xf32>
    %574 = arith.mulf %573, %572 : vector<32x4xf32>
    %575 = arith.addf %518, %574 : vector<32x4xf32>
    %c1_i32_234 = arith.constant 1 : i32
    %576 = tpu.dynamic_rotate %575 by %c1_i32_234 dim 0 : vector<32x4xf32>, i32 -> vector<32x4xf32>
    %cst_235 = arith.constant 0.000000e+00 : f32
    %577 = vector.broadcast %cst_235 : f32 to vector<32x4xf32>
    %578 = arith.select %18, %576, %577 : vector<32x4xi1>, vector<32x4xf32>
    %c31_i32_236 = arith.constant 31 : i32
    %579 = tpu.dynamic_rotate %575 by %c31_i32_236 dim 0 : vector<32x4xf32>, i32 -> vector<32x4xf32>
    %cst_237 = arith.constant 0.000000e+00 : f32
    %580 = vector.broadcast %cst_237 : f32 to vector<32x4xf32>
    %581 = arith.select %20, %579, %580 : vector<32x4xi1>, vector<32x4xf32>
    %582 = arith.truncf %578 : vector<32x4xf32> to vector<32x4xbf16>
    %cst_238 = arith.constant dense<0.000000e+00> : vector<32x4xf32>
    %583 = tpu.matmul %582, %10, %cst_238 {dimension_numbers = #tpu.dot_dimension_numbers<[1], [0], [0], [1], [0, 0, 1, 1], [], []>} : vector<32x4xbf16>, vector<4x4xbf16>, vector<32x4xf32> -> vector<32x4xf32>
    %584 = arith.truncf %575 : vector<32x4xf32> to vector<32x4xbf16>
    %cst_239 = arith.constant dense<0.000000e+00> : vector<32x4xf32>
    %585 = tpu.matmul %584, %12, %cst_239 {dimension_numbers = #tpu.dot_dimension_numbers<[1], [0], [0], [1], [0, 0, 1, 1], [], []>} : vector<32x4xbf16>, vector<4x4xbf16>, vector<32x4xf32> -> vector<32x4xf32>
    %586 = arith.addf %583, %585 : vector<32x4xf32>
    %587 = arith.truncf %581 : vector<32x4xf32> to vector<32x4xbf16>
    %cst_240 = arith.constant dense<0.000000e+00> : vector<32x4xf32>
    %588 = tpu.matmul %587, %14, %cst_240 {dimension_numbers = #tpu.dot_dimension_numbers<[1], [0], [0], [1], [0, 0, 1, 1], [], []>} : vector<32x4xbf16>, vector<4x4xbf16>, vector<32x4xf32> -> vector<32x4xf32>
    %589 = arith.addf %586, %588 : vector<32x4xf32>
    %590 = arith.addf %589, %6 : vector<32x4xf32>
    %591 = math.tanh %590 : vector<32x4xf32>
    %cst_241 = arith.constant 2.000000e+00 : f32
    %592 = vector.broadcast %cst_241 : f32 to vector<32x4xf32>
    %593 = arith.mulf %592, %553 : vector<32x4xf32>
    %594 = arith.addf %534, %593 : vector<32x4xf32>
    %cst_242 = arith.constant 2.000000e+00 : f32
    %595 = vector.broadcast %cst_242 : f32 to vector<32x4xf32>
    %596 = arith.mulf %595, %572 : vector<32x4xf32>
    %597 = arith.addf %594, %596 : vector<32x4xf32>
    %598 = arith.addf %597, %591 : vector<32x4xf32>
    %cst_243 = arith.constant 0.020833334 : f32
    %599 = vector.broadcast %cst_243 : f32 to vector<32x4xf32>
    %600 = arith.mulf %599, %598 : vector<32x4xf32>
    %601 = arith.addf %518, %600 : vector<32x4xf32>
    %c7_i32 = arith.constant 7 : i32
    %c1_i32_244 = arith.constant 1 : i32
    %602 = tpu.dynamic_rotate %601 by %c1_i32_244 dim 0 : vector<32x4xf32>, i32 -> vector<32x4xf32>
    %cst_245 = arith.constant 0.000000e+00 : f32
    %603 = vector.broadcast %cst_245 : f32 to vector<32x4xf32>
    %604 = arith.select %18, %602, %603 : vector<32x4xi1>, vector<32x4xf32>
    %c31_i32_246 = arith.constant 31 : i32
    %605 = tpu.dynamic_rotate %601 by %c31_i32_246 dim 0 : vector<32x4xf32>, i32 -> vector<32x4xf32>
    %cst_247 = arith.constant 0.000000e+00 : f32
    %606 = vector.broadcast %cst_247 : f32 to vector<32x4xf32>
    %607 = arith.select %20, %605, %606 : vector<32x4xi1>, vector<32x4xf32>
    %608 = arith.truncf %604 : vector<32x4xf32> to vector<32x4xbf16>
    %cst_248 = arith.constant dense<0.000000e+00> : vector<32x4xf32>
    %609 = tpu.matmul %608, %10, %cst_248 {dimension_numbers = #tpu.dot_dimension_numbers<[1], [0], [0], [1], [0, 0, 1, 1], [], []>} : vector<32x4xbf16>, vector<4x4xbf16>, vector<32x4xf32> -> vector<32x4xf32>
    %610 = arith.truncf %601 : vector<32x4xf32> to vector<32x4xbf16>
    %cst_249 = arith.constant dense<0.000000e+00> : vector<32x4xf32>
    %611 = tpu.matmul %610, %12, %cst_249 {dimension_numbers = #tpu.dot_dimension_numbers<[1], [0], [0], [1], [0, 0, 1, 1], [], []>} : vector<32x4xbf16>, vector<4x4xbf16>, vector<32x4xf32> -> vector<32x4xf32>
    %612 = arith.addf %609, %611 : vector<32x4xf32>
    %613 = arith.truncf %607 : vector<32x4xf32> to vector<32x4xbf16>
    %cst_250 = arith.constant dense<0.000000e+00> : vector<32x4xf32>
    %614 = tpu.matmul %613, %14, %cst_250 {dimension_numbers = #tpu.dot_dimension_numbers<[1], [0], [0], [1], [0, 0, 1, 1], [], []>} : vector<32x4xbf16>, vector<4x4xbf16>, vector<32x4xf32> -> vector<32x4xf32>
    %615 = arith.addf %612, %614 : vector<32x4xf32>
    %616 = arith.addf %615, %6 : vector<32x4xf32>
    %617 = math.tanh %616 : vector<32x4xf32>
    %cst_251 = arith.constant 6.250000e-02 : f32
    %618 = vector.broadcast %cst_251 : f32 to vector<32x4xf32>
    %619 = arith.mulf %618, %617 : vector<32x4xf32>
    %620 = arith.addf %601, %619 : vector<32x4xf32>
    %c1_i32_252 = arith.constant 1 : i32
    %621 = tpu.dynamic_rotate %620 by %c1_i32_252 dim 0 : vector<32x4xf32>, i32 -> vector<32x4xf32>
    %cst_253 = arith.constant 0.000000e+00 : f32
    %622 = vector.broadcast %cst_253 : f32 to vector<32x4xf32>
    %623 = arith.select %18, %621, %622 : vector<32x4xi1>, vector<32x4xf32>
    %c31_i32_254 = arith.constant 31 : i32
    %624 = tpu.dynamic_rotate %620 by %c31_i32_254 dim 0 : vector<32x4xf32>, i32 -> vector<32x4xf32>
    %cst_255 = arith.constant 0.000000e+00 : f32
    %625 = vector.broadcast %cst_255 : f32 to vector<32x4xf32>
    %626 = arith.select %20, %624, %625 : vector<32x4xi1>, vector<32x4xf32>
    %627 = arith.truncf %623 : vector<32x4xf32> to vector<32x4xbf16>
    %cst_256 = arith.constant dense<0.000000e+00> : vector<32x4xf32>
    %628 = tpu.matmul %627, %10, %cst_256 {dimension_numbers = #tpu.dot_dimension_numbers<[1], [0], [0], [1], [0, 0, 1, 1], [], []>} : vector<32x4xbf16>, vector<4x4xbf16>, vector<32x4xf32> -> vector<32x4xf32>
    %629 = arith.truncf %620 : vector<32x4xf32> to vector<32x4xbf16>
    %cst_257 = arith.constant dense<0.000000e+00> : vector<32x4xf32>
    %630 = tpu.matmul %629, %12, %cst_257 {dimension_numbers = #tpu.dot_dimension_numbers<[1], [0], [0], [1], [0, 0, 1, 1], [], []>} : vector<32x4xbf16>, vector<4x4xbf16>, vector<32x4xf32> -> vector<32x4xf32>
    %631 = arith.addf %628, %630 : vector<32x4xf32>
    %632 = arith.truncf %626 : vector<32x4xf32> to vector<32x4xbf16>
    %cst_258 = arith.constant dense<0.000000e+00> : vector<32x4xf32>
    %633 = tpu.matmul %632, %14, %cst_258 {dimension_numbers = #tpu.dot_dimension_numbers<[1], [0], [0], [1], [0, 0, 1, 1], [], []>} : vector<32x4xbf16>, vector<4x4xbf16>, vector<32x4xf32> -> vector<32x4xf32>
    %634 = arith.addf %631, %633 : vector<32x4xf32>
    %635 = arith.addf %634, %6 : vector<32x4xf32>
    %636 = math.tanh %635 : vector<32x4xf32>
    %cst_259 = arith.constant 6.250000e-02 : f32
    %637 = vector.broadcast %cst_259 : f32 to vector<32x4xf32>
    %638 = arith.mulf %637, %636 : vector<32x4xf32>
    %639 = arith.addf %601, %638 : vector<32x4xf32>
    %c1_i32_260 = arith.constant 1 : i32
    %640 = tpu.dynamic_rotate %639 by %c1_i32_260 dim 0 : vector<32x4xf32>, i32 -> vector<32x4xf32>
    %cst_261 = arith.constant 0.000000e+00 : f32
    %641 = vector.broadcast %cst_261 : f32 to vector<32x4xf32>
    %642 = arith.select %18, %640, %641 : vector<32x4xi1>, vector<32x4xf32>
    %c31_i32_262 = arith.constant 31 : i32
    %643 = tpu.dynamic_rotate %639 by %c31_i32_262 dim 0 : vector<32x4xf32>, i32 -> vector<32x4xf32>
    %cst_263 = arith.constant 0.000000e+00 : f32
    %644 = vector.broadcast %cst_263 : f32 to vector<32x4xf32>
    %645 = arith.select %20, %643, %644 : vector<32x4xi1>, vector<32x4xf32>
    %646 = arith.truncf %642 : vector<32x4xf32> to vector<32x4xbf16>
    %cst_264 = arith.constant dense<0.000000e+00> : vector<32x4xf32>
    %647 = tpu.matmul %646, %10, %cst_264 {dimension_numbers = #tpu.dot_dimension_numbers<[1], [0], [0], [1], [0, 0, 1, 1], [], []>} : vector<32x4xbf16>, vector<4x4xbf16>, vector<32x4xf32> -> vector<32x4xf32>
    %648 = arith.truncf %639 : vector<32x4xf32> to vector<32x4xbf16>
    %cst_265 = arith.constant dense<0.000000e+00> : vector<32x4xf32>
    %649 = tpu.matmul %648, %12, %cst_265 {dimension_numbers = #tpu.dot_dimension_numbers<[1], [0], [0], [1], [0, 0, 1, 1], [], []>} : vector<32x4xbf16>, vector<4x4xbf16>, vector<32x4xf32> -> vector<32x4xf32>
    %650 = arith.addf %647, %649 : vector<32x4xf32>
    %651 = arith.truncf %645 : vector<32x4xf32> to vector<32x4xbf16>
    %cst_266 = arith.constant dense<0.000000e+00> : vector<32x4xf32>
    %652 = tpu.matmul %651, %14, %cst_266 {dimension_numbers = #tpu.dot_dimension_numbers<[1], [0], [0], [1], [0, 0, 1, 1], [], []>} : vector<32x4xbf16>, vector<4x4xbf16>, vector<32x4xf32> -> vector<32x4xf32>
    %653 = arith.addf %650, %652 : vector<32x4xf32>
    %654 = arith.addf %653, %6 : vector<32x4xf32>
    %655 = math.tanh %654 : vector<32x4xf32>
    %cst_267 = arith.constant 1.250000e-01 : f32
    %656 = vector.broadcast %cst_267 : f32 to vector<32x4xf32>
    %657 = arith.mulf %656, %655 : vector<32x4xf32>
    %658 = arith.addf %601, %657 : vector<32x4xf32>
    %c1_i32_268 = arith.constant 1 : i32
    %659 = tpu.dynamic_rotate %658 by %c1_i32_268 dim 0 : vector<32x4xf32>, i32 -> vector<32x4xf32>
    %cst_269 = arith.constant 0.000000e+00 : f32
    %660 = vector.broadcast %cst_269 : f32 to vector<32x4xf32>
    %661 = arith.select %18, %659, %660 : vector<32x4xi1>, vector<32x4xf32>
    %c31_i32_270 = arith.constant 31 : i32
    %662 = tpu.dynamic_rotate %658 by %c31_i32_270 dim 0 : vector<32x4xf32>, i32 -> vector<32x4xf32>
    %cst_271 = arith.constant 0.000000e+00 : f32
    %663 = vector.broadcast %cst_271 : f32 to vector<32x4xf32>
    %664 = arith.select %20, %662, %663 : vector<32x4xi1>, vector<32x4xf32>
    %665 = arith.truncf %661 : vector<32x4xf32> to vector<32x4xbf16>
    %cst_272 = arith.constant dense<0.000000e+00> : vector<32x4xf32>
    %666 = tpu.matmul %665, %10, %cst_272 {dimension_numbers = #tpu.dot_dimension_numbers<[1], [0], [0], [1], [0, 0, 1, 1], [], []>} : vector<32x4xbf16>, vector<4x4xbf16>, vector<32x4xf32> -> vector<32x4xf32>
    %667 = arith.truncf %658 : vector<32x4xf32> to vector<32x4xbf16>
    %cst_273 = arith.constant dense<0.000000e+00> : vector<32x4xf32>
    %668 = tpu.matmul %667, %12, %cst_273 {dimension_numbers = #tpu.dot_dimension_numbers<[1], [0], [0], [1], [0, 0, 1, 1], [], []>} : vector<32x4xbf16>, vector<4x4xbf16>, vector<32x4xf32> -> vector<32x4xf32>
    %669 = arith.addf %666, %668 : vector<32x4xf32>
    %670 = arith.truncf %664 : vector<32x4xf32> to vector<32x4xbf16>
    %cst_274 = arith.constant dense<0.000000e+00> : vector<32x4xf32>
    %671 = tpu.matmul %670, %14, %cst_274 {dimension_numbers = #tpu.dot_dimension_numbers<[1], [0], [0], [1], [0, 0, 1, 1], [], []>} : vector<32x4xbf16>, vector<4x4xbf16>, vector<32x4xf32> -> vector<32x4xf32>
    %672 = arith.addf %669, %671 : vector<32x4xf32>
    %673 = arith.addf %672, %6 : vector<32x4xf32>
    %674 = math.tanh %673 : vector<32x4xf32>
    %cst_275 = arith.constant 2.000000e+00 : f32
    %675 = vector.broadcast %cst_275 : f32 to vector<32x4xf32>
    %676 = arith.mulf %675, %636 : vector<32x4xf32>
    %677 = arith.addf %617, %676 : vector<32x4xf32>
    %cst_276 = arith.constant 2.000000e+00 : f32
    %678 = vector.broadcast %cst_276 : f32 to vector<32x4xf32>
    %679 = arith.mulf %678, %655 : vector<32x4xf32>
    %680 = arith.addf %677, %679 : vector<32x4xf32>
    %681 = arith.addf %680, %674 : vector<32x4xf32>
    %cst_277 = arith.constant 0.020833334 : f32
    %682 = vector.broadcast %cst_277 : f32 to vector<32x4xf32>
    %683 = arith.mulf %682, %681 : vector<32x4xf32>
    %684 = arith.addf %601, %683 : vector<32x4xf32>
    %685 = arith.addf %684, %1 : vector<32x4xf32>
    %686 = arith.truncf %685 : vector<32x4xf32> to vector<32x4xbf16>
    %c0_278 = arith.constant 0 : index
    %c0_279 = arith.constant 0 : index
    %687 = vector.load %arg3[%c0_278, %c0_279] : memref<4x32xbf16, #tpu.memory_space<vmem>>, vector<4x32xbf16>
    %cst_280 = arith.constant dense<0.000000e+00> : vector<32x32xf32>
    %688 = tpu.matmul %686, %687, %cst_280 {dimension_numbers = #tpu.dot_dimension_numbers<[1], [0], [0], [1], [0, 0, 1, 1], [], []>} : vector<32x4xbf16>, vector<4x32xbf16>, vector<32x32xf32> -> vector<32x32xf32>
    %689 = vector.broadcast %7 : vector<1x32xf32> to vector<32x32xf32>
    %690 = arith.addf %688, %689 : vector<32x32xf32>
    %cst_281 = arith.constant 0.000000e+00 : f32
    %691 = vector.broadcast %cst_281 : f32 to vector<32x32xf32>
    %692 = arith.maximumf %690, %691 : vector<32x32xf32>
    %693 = arith.truncf %692 : vector<32x32xf32> to vector<32x32xbf16>
    %c0_282 = arith.constant 0 : index
    %c0_283 = arith.constant 0 : index
    %694 = vector.load %arg4[%c0_282, %c0_283] : memref<32x128xbf16, #tpu.memory_space<vmem>>, vector<32x128xbf16>
    %cst_284 = arith.constant dense<0.000000e+00> : vector<32x128xf32>
    %695 = tpu.matmul %693, %694, %cst_284 {dimension_numbers = #tpu.dot_dimension_numbers<[1], [0], [0], [1], [0, 0, 1, 1], [], []>} : vector<32x32xbf16>, vector<32x128xbf16>, vector<32x128xf32> -> vector<32x128xf32>
    %696 = vector.broadcast %8 : vector<1x128xf32> to vector<32x128xf32>
    %697 = arith.addf %695, %696 : vector<32x128xf32>
    %698 = vector.shape_cast %697 : vector<32x128xf32> to vector<2x16x128xf32>
    %c0_285 = arith.constant 0 : index
    %c0_286 = arith.constant 0 : index
    %c0_287 = arith.constant 0 : index
    %699 = vector.load %arg6[%c0_285, %c0_286, %c0_287] : memref<2x16x128xf32, #tpu.memory_space<vmem>>, vector<2x16x128xf32>
    tpu.vector_store %arg6[%c0_285, %c0_286, %c0_287], %698 {strides = array<i32>} : memref<2x16x128xf32, #tpu.memory_space<vmem>>, vector<2x16x128xf32>,
    return
  }
  func.func @transform_0(%arg0: i32) -> (i32, i32, i32) {
    %c0_i32 = arith.constant 0 : i32
    %c0_i32_0 = arith.constant 0 : i32
    %c0_i32_1 = arith.constant 0 : i32
    return %arg0, %c0_i32, %c0_i32_0 : i32, i32, i32
  }
  func.func @transform_1(%arg0: i32) -> (i32, i32, i32) {
    %c0_i32 = arith.constant 0 : i32
    %c0_i32_0 = arith.constant 0 : i32
    %c0_i32_1 = arith.constant 0 : i32
    %c0_i32_2 = arith.constant 0 : i32
    return %c0_i32, %c0_i32_0, %c0_i32_1 : i32, i32, i32
  }
  func.func @transform_2(%arg0: i32) -> (i32, i32) {
    %c0_i32 = arith.constant 0 : i32
    %c0_i32_0 = arith.constant 0 : i32
    %c0_i32_1 = arith.constant 0 : i32
    return %c0_i32, %c0_i32_0 : i32, i32
  }
  func.func @transform_3(%arg0: i32) -> (i32, i32) {
    %c0_i32 = arith.constant 0 : i32
    %c0_i32_0 = arith.constant 0 : i32
    %c0_i32_1 = arith.constant 0 : i32
    return %c0_i32, %c0_i32_0 : i32, i32
  }
  func.func @transform_4(%arg0: i32) -> (i32, i32) {
    %c0_i32 = arith.constant 0 : i32
    %c0_i32_0 = arith.constant 0 : i32
    %c0_i32_1 = arith.constant 0 : i32
    return %c0_i32, %c0_i32_0 : i32, i32
  }
  func.func @transform_5(%arg0: i32) -> (i32, i32, i32) {
    %c0_i32 = arith.constant 0 : i32
    %c0_i32_0 = arith.constant 0 : i32
    %c0_i32_1 = arith.constant 0 : i32
    return %arg0, %c0_i32, %c0_i32_0 : i32, i32, i32
  }
}

</mosaic_0001>

<bundles_post_ra>
// kernel: tpu_custom_call.1
= control target key start
LH: loop header
LB: loop body
LE: loop exit
PB: predicated region body
PF: predicated region fallthrough
CT: control target
= control target key end

     0   :  { %vm78_vm0 = vcmask 1041408   ;;  %vm71_vm1 = vcmask 31744   ;;  %v30_v3 = vlaneseq  ;;  %s10941_s0 = inlined_call_operand.vmem [shape: f32[2,16,4], index: 0, kind: input, shape index: {}]   ;;  %s10942_s1 = inlined_call_operand.vmem [shape: bf16[3,4,4], index: 1, kind: input, shape index: {}]   ;;  %s10943_s2 = inlined_call_operand.vmem [shape: bf16[4,32], index: 2, kind: input, shape index: {}]   ;;  %s10944_s3 = inlined_call_operand.vmem [shape: bf16[32,128], index: 3, kind: input, shape index: {}]   ;;  %s10945_s4 = inlined_call_operand.vmem [shape: f32[3,128], index: 4, kind: input, shape index: {}]   ;;  %s10946_s5 = inlined_call_operand.hbm [shape: f32[2,16,128], index: 5, kind: output, shape index: {}]  }
   0x1   :  { %v8781_v0 = vld [vmem:[%s10942_s1 + $0x2] sm:$0x3]  ;;  %v8791_v2 = vld [vmem:[%s10941_s0 + $0x8] sm:$0xff]  ;;  %v8804_v6 = vld [vmem:[%s10941_s0 + $0x10] sm:$0xff] }
   0x2   :  { %v8786_v1 = vld [vmem:[%s10941_s0] sm:$0xff]  ;;  %8348 = vmatprep.subr.msk.bf16.mxu0 %vm78_vm0, %v8781_v0  ;;  %v8797_v4 = vsel %vm78_vm0, %v8781_v0, 0  ;;  %v8809_v7 = vld [vmem:[%s10941_s0 + $0x18] sm:$0xff]  ;;  %v8829_v13 = vshrl.u32 %v30_v3, 7  ;;  %v42_v15 = vrot.slane %v8791_v2, 7  ;;  %v43_v17 = vrot.slane %v8804_v6, 7 }
   0x3   :  { %v69_v5 = vpack.c.bf16 %v8791_v2, %v8786_v1  ;;  %v8814_v8 = vld [vmem:[%s10942_s1 + $0x4] sm:$0x3]  ;;  %v41_v9 = vrot.slane %v8786_v1, 7  ;;  %7759 = vmatpush3.bf16.msra.mxu0 %v8797_v4  ;;  %v70_v10 = vpack.c.bf16 %v8809_v7, %v8804_v6  ;;  %v8823_v11 = vld [vmem:[%s10942_s1] sm:$0x3]  ;;  %v44_v16 = vrot.slane %v8809_v7, 7 }
   0x4   :  { %v8827_v12 = vsel %vm78_vm0, %v8814_v8, 0  ;;  %8350 = vmatprep.subr.msk.bf16.mxu0 %vm78_vm0, %v8814_v8  ;;  %v8836_v14 = vsel %vm78_vm0, %v8823_v11, 0  ;;  %8349 = vmatprep.subr.msk.bf16.mxu1 %vm78_vm0, %v8823_v11  ;;  %vm37_vm2 = vcmp.ge.s32.totalorder %v8829_v13, 1  ;;  %vm45_vm3 = vcmp.lt.s32.totalorder %v8829_v13, 1 }
   0x5   :  { %7760 = vmatprep.mubr.msk.bf16.mxu0 %vm71_vm1, %v69_v5  ;;  %7765 = vmatpush3.bf16.msra.mxu1 %v8836_v14  ;;  %v48_v18 = vsel %vm45_vm3, %v41_v9, %v42_v15  ;;  %v49_v19 = vsel %vm45_vm3, %v44_v16, %v41_v9  ;;  %v46_v20 = vsel %vm45_vm3, %v43_v17, %v44_v16  ;;  %v8854_v21 = vadd.s32 8, %v8829_v13 }
   0x6   :  { %7761 = vmatmul.mubr.msk.bf16.vlgmr.msra.gmra.mxu0 %vm71_vm1, %v70_v10  ;;  %v50_v22 = vsel %vm37_vm2, %v49_v19, 0.0  ;;  %vm58_vm4 = vcmp.lt.s32.totalorder %v8829_v13, 7  ;;  %v47_v23 = vsel %vm45_vm3, %v42_v15, %v43_v17  ;;  %v54_v24 = vrot.slane %v8786_v1, 1  ;;  %8351 = vmatprep.subr.msk.bf16.mxu1 %vm78_vm0, %v8781_v0 }
   0x7   :  { %7771 = vmatpush3.bf16.msra.mxu0 %v8827_v12 }
   0x8   :  { %10 = vsyncpa [#allocation3], 0  ;;  %v67_v25 = vpack.c.bf16 %v48_v18, %v50_v22  ;;  %v52_v26 = vsel %vm37_vm2, %v47_v23, 0.0  ;;  %v55_v27 = vrot.slane %v8791_v2, 1  ;;  %8352 = vmatprep.subr.msk.bf16.mxu0 %vm78_vm0, %v8823_v11  ;;  %vm40_vm5 = vcmp.le.s32.totalorder %v8854_v21, 14 }
   0x9   :  { %v68_v28 = vpack.c.bf16 %v46_v20, %v52_v26  ;;  %v56_v29 = vrot.slane %v8804_v6, 1  ;;  %v57_v30 = vrot.slane %v8809_v7, 1  ;;  %v32_v42 = vsub.s32 0, %v8829_v13  ;;  %v29_v44 = vld [vmem:[%s10945_s4] sm:$0x7] }
   0xa   :  { %7766 = vmatprep.mubr.msk.bf16.mxu1 %vm71_vm1, %v67_v25  ;;  %v61_v31 = vsel %vm58_vm4, %v54_v24, %v55_v27  ;;  %vm7189_vm6 = vcmask 261120  }
   0xb   :  { %7767 = vmatmul.mubr.msk.bf16.vlgmr.msra.gmra.mxu1 %vm71_vm1, %v68_v28  ;;  %v60_v32 = vsel %vm58_vm4, %v55_v27, %v56_v29  ;;  %v59_v33 = vsel %vm58_vm4, %v56_v29, %v57_v30  ;;  %v62_v34 = vsel %vm58_vm4, %v57_v30, %v54_v24  ;;  %v8899_v48 = vrot.slane %v29_v44, %v32_v42 }
   0xc   :  { %v64_v35 = vsel %vm40_vm5, %v60_v32, 0.0  ;;  %v66_v36 = vsel %vm40_vm5, %v62_v34, 0.0  ;;  %7777 = vmatpush3.bf16.msra.mxu1 %v8797_v4 }
   0xd   :  { %v189_v37 = vpack.c.bf16 %v64_v35, %v61_v31  ;;  %v190_v38 = vpack.c.bf16 %v66_v36, %v59_v33  ;;  %8353 = vmatprep.subr.msk.bf16.mxu1 %vm78_vm0, %v8814_v8 }
   0xf   :  { %7772 = vmatprep.mubr.msk.bf16.mxu0 %vm71_vm1, %v189_v37 }
  0x10   :  { %7773 = vmatmul.mubr.msk.bf16.vlgmr.msra.gmra.mxu0 %vm71_vm1, %v190_v38 }
  0x11   :  { %7783 = vmatpush3.bf16.msra.mxu0 %v8836_v14 }
  0x12   :  { %8354 = vmatprep.subr.msk.bf16.mxu0 %vm78_vm0, %v8781_v0 }
  0xc6   :  { %v7762_v39 = vpop.f32.mrf.mxu0 }
  0xc8   :  { %v116_v40 = vpop.f32.mrf.mxu0 }
  0xca   :  { %v7763_v41 = vpop.f32.mrf.mxu0 }
  0xcb   :  { %v7768_v43 = vpop.f32.mrf.mxu1 }
  0xcc   :  { %v119_v45 = vpop.f32.mrf.mxu0  ;;  %v183_v46 = vadd.f32 %v7768_v43, %v7762_v39 }
  0xcd   :  { %v174_v47 = vpop.f32.mrf.mxu1 }
  0xce   :  { %v175_v49 = vadd.f32 %v174_v47, %v116_v40 }
  0xcf   :  { %v7769_v50 = vpop.f32.mrf.mxu1 }
  0xd0   :  { %v7774_v51 = vpop.f32.mrf.mxu0  ;;  %v186_v53 = vadd.f32 %v7769_v50, %v7763_v41 }
  0xd1   :  { %v251_v52 = vadd.f32 %v7774_v51, %v183_v46  ;;  %v177_v54 = vpop.f32.mrf.mxu1 }
  0xd2   :  { %v234_v55 = vpop.f32.mrf.mxu0  ;;  %v178_v58 = vadd.f32 %v177_v54, %v119_v45 }
  0xd3   :  { %v255_v56 = vadd.f32 %v251_v52, %v8899_v48  ;;  %v249_v57 = vadd.f32 %v234_v55, %v175_v49 }
  0xd4   :  { %v7775_v59 = vpop.f32.mrf.mxu0 }
  0xd5   :  { %8450 = vtanh.f32 %v255_v56  ;;  %v253_v60 = vadd.f32 %v249_v57, %v8899_v48  ;;  %v252_v61 = vadd.f32 %v7775_v59, %v186_v53 }
  0xd6   :  { %v237_v62 = vpop.f32.mrf.mxu0 }
  0xd7   :  { %8452 = vtanh.f32 %v253_v60  ;;  %v256_v63 = vadd.f32 %v252_v61, %v8899_v48  ;;  %v250_v3 = vadd.f32 %v237_v62, %v178_v58 }
  0xd9   :  { %8454 = vtanh.f32 %v256_v63  ;;  %v254_v5 = vadd.f32 %v250_v3, %v8899_v48 }
  0xdb   :  { %8456 = vtanh.f32 %v254_v5 }
  0xe2   :  { %v8905_v9 = vpop.eup %8450 }
  0xe3   :  { %v263_v15 = vmul.f32 0.0625, %v8905_v9 }
  0xe4   :  { %v8907_v10 = vpop.eup %8452 }
  0xe5   :  { %v261_v16 = vmul.f32 0.0625, %v8907_v10  ;;  %v267_v22 = vadd.f32 %v263_v15, %v8804_v6 }
  0xe6   :  { %v8911_v17 = vpop.eup %8454 }
  0xe7   :  { %v264_v18 = vmul.f32 0.0625, %v8911_v17  ;;  %v265_v19 = vadd.f32 %v261_v16, %v8786_v1  ;;  %v271_v29 = vrot.slane %v267_v22, 7  ;;  %v283_v37 = vrot.slane %v267_v22, 1 }
  0xe8   :  { %v8915_v20 = vpop.eup %8456 }
  0xe9   :  { %v262_v23 = vmul.f32 0.0625, %v8915_v20  ;;  %v268_v24 = vadd.f32 %v264_v18, %v8809_v7  ;;  %v269_v26 = vrot.slane %v265_v19, 7  ;;  %v281_v33 = vrot.slane %v265_v19, 1 }
  0xeb   :  { %v266_v25 = vadd.f32 %v262_v23, %v8791_v2  ;;  %v272_v27 = vrot.slane %v268_v24, 7  ;;  %v284_v28 = vrot.slane %v268_v24, 1  ;;  %v296_v34 = vpack.c.bf16 %v268_v24, %v267_v22 }
  0xed   :  { %v295_v30 = vpack.c.bf16 %v266_v25, %v265_v19  ;;  %v270_v31 = vrot.slane %v266_v25, 7  ;;  %v276_v32 = vsel %vm45_vm3, %v272_v27, %v269_v26  ;;  %v282_v36 = vrot.slane %v266_v25, 1 }
  0xee   :  { %v277_v35 = vsel %vm37_vm2, %v276_v32, 0.0  ;;  %v273_v39 = vsel %vm45_vm3, %v271_v29, %v272_v27  ;;  %v288_v41 = vsel %vm58_vm4, %v284_v28, %v281_v33  ;;  %v285_v50 = vsel %vm58_vm4, %v283_v37, %v284_v28 }
  0xef   :  { %7778 = vmatprep.mubr.msk.bf16.mxu1 %vm71_vm1, %v295_v30  ;;  %v275_v38 = vsel %vm45_vm3, %v269_v26, %v270_v31  ;;  %v274_v40 = vsel %vm45_vm3, %v270_v31, %v271_v29  ;;  %v286_v44 = vsel %vm58_vm4, %v282_v36, %v283_v37  ;;  %v287_v45 = vsel %vm58_vm4, %v281_v33, %v282_v36 }
  0xf0   :  { %7779 = vmatmul.mubr.msk.bf16.vlgmr.msra.gmra.mxu1 %vm71_vm1, %v296_v34  ;;  %v293_v42 = vpack.c.bf16 %v275_v38, %v277_v35  ;;  %v279_v43 = vsel %vm37_vm2, %v274_v40, 0.0  ;;  %v290_v47 = vsel %vm40_vm5, %v286_v44, 0.0  ;;  %v292_v51 = vsel %vm40_vm5, %v288_v41, 0.0 }
  0xf1   :  { %7789 = vmatpush3.bf16.msra.mxu1 %v8827_v12  ;;  %v294_v46 = vpack.c.bf16 %v273_v39, %v279_v43  ;;  %v407_v49 = vpack.c.bf16 %v290_v47, %v287_v45  ;;  %v408_v52 = vpack.c.bf16 %v292_v51, %v285_v50 }
  0xf2   :  { %7784 = vmatprep.mubr.msk.bf16.mxu0 %vm71_vm1, %v293_v42  ;;  %8355 = vmatprep.subr.msk.bf16.mxu1 %vm78_vm0, %v8823_v11 }
  0xf3   :  { %7785 = vmatmul.mubr.msk.bf16.vlgmr.msra.gmra.mxu0 %vm71_vm1, %v294_v46  ;;  %7790 = vmatprep.mubr.msk.bf16.mxu1 %vm71_vm1, %v407_v49 }
  0xf4   :  { %7795 = vmatpush3.bf16.msra.mxu0 %v8797_v4 }
  0xf5   :  { %8356 = vmatprep.subr.msk.bf16.mxu0 %vm78_vm0, %v8814_v8 }
  0xf8   :  { %7791 = vmatmul.mubr.msk.bf16.vlgmr.msra.gmra.mxu1 %vm71_vm1, %v408_v52 }
  0xf9   :  { %7801 = vmatpush3.bf16.msra.mxu1 %v8836_v14 }
  0xfa   :  { %8357 = vmatprep.subr.msk.bf16.mxu1 %vm78_vm0, %v8781_v0 }
 0x1b0   :  { %v7780_v53 = vpop.f32.mrf.mxu1 }
 0x1b2   :  { %v337_v54 = vpop.f32.mrf.mxu1 }
 0x1b3   :  { %v7786_v55 = vpop.f32.mrf.mxu0 }
 0x1b4   :  { %v7781_v56 = vpop.f32.mrf.mxu1  ;;  %v401_v59 = vadd.f32 %v7786_v55, %v7780_v53 }
 0x1b5   :  { %v392_v57 = vpop.f32.mrf.mxu0 }
 0x1b6   :  { %v340_v58 = vpop.f32.mrf.mxu1  ;;  %v393_v62 = vadd.f32 %v392_v57, %v337_v54 }
 0x1b7   :  { %v7787_v60 = vpop.f32.mrf.mxu0 }
 0x1b8   :  { %v7792_v61 = vpop.f32.mrf.mxu1  ;;  %v404_v15 = vadd.f32 %v7787_v60, %v7781_v56 }
 0x1b9   :  { %v466_v63 = vadd.f32 %v7792_v61, %v401_v59  ;;  %v395_v3 = vpop.f32.mrf.mxu0 }
 0x1ba   :  { %v449_v5 = vpop.f32.mrf.mxu1  ;;  %v396_v22 = vadd.f32 %v395_v3, %v340_v58 }
 0x1bb   :  { %v470_v16 = vadd.f32 %v466_v63, %v8899_v48  ;;  %v464_v18 = vadd.f32 %v449_v5, %v393_v62 }
 0x1bc   :  { %v7793_v19 = vpop.f32.mrf.mxu1 }
 0x1bd   :  { %8458 = vtanh.f32 %v470_v16  ;;  %v468_v23 = vadd.f32 %v464_v18, %v8899_v48  ;;  %v467_v24 = vadd.f32 %v7793_v19, %v404_v15 }
 0x1be   :  { %v452_v25 = vpop.f32.mrf.mxu1 }
 0x1bf   :  { %8460 = vtanh.f32 %v468_v23  ;;  %v471_v26 = vadd.f32 %v467_v24, %v8899_v48  ;;  %v465_v27 = vadd.f32 %v452_v25, %v396_v22 }
 0x1c1   :  { %8462 = vtanh.f32 %v471_v26  ;;  %v469_v28 = vadd.f32 %v465_v27, %v8899_v48 }
 0x1c3   :  { %8464 = vtanh.f32 %v469_v28 }
 0x1ca   :  { %v8964_v29 = vpop.eup %8458 }
 0x1cb   :  { %v478_v31 = vmul.f32 0.0625, %v8964_v29 }
 0x1cc   :  { %v8966_v30 = vpop.eup %8460 }
 0x1cd   :  { %v476_v32 = vmul.f32 0.0625, %v8966_v30  ;;  %v482_v37 = vadd.f32 %v478_v31, %v8804_v6 }
 0x1ce   :  { %v8970_v33 = vpop.eup %8462 }
 0x1cf   :  { %v479_v34 = vmul.f32 0.0625, %v8970_v33  ;;  %v480_v35 = vadd.f32 %v476_v32, %v8786_v1  ;;  %v486_v43 = vrot.slane %v482_v37, 7  ;;  %v498_v53 = vrot.slane %v482_v37, 1 }
 0x1d0   :  { %v8974_v36 = vpop.eup %8464 }
 0x1d1   :  { %v477_v38 = vmul.f32 0.0625, %v8974_v36  ;;  %v483_v39 = vadd.f32 %v479_v34, %v8809_v7  ;;  %v484_v41 = vrot.slane %v480_v35, 7  ;;  %v496_v49 = vrot.slane %v480_v35, 1 }
 0x1d3   :  { %v481_v40 = vadd.f32 %v477_v38, %v8791_v2  ;;  %v487_v42 = vrot.slane %v483_v39, 7  ;;  %v499_v44 = vrot.slane %v483_v39, 1  ;;  %v511_v50 = vpack.c.bf16 %v483_v39, %v482_v37 }
 0x1d5   :  { %v510_v45 = vpack.c.bf16 %v481_v40, %v480_v35  ;;  %v485_v46 = vrot.slane %v481_v40, 7  ;;  %v491_v47 = vsel %vm45_vm3, %v487_v42, %v484_v41  ;;  %v497_v52 = vrot.slane %v481_v40, 1 }
 0x1d6   :  { %v492_v51 = vsel %vm37_vm2, %v491_v47, 0.0  ;;  %v488_v55 = vsel %vm45_vm3, %v486_v43, %v487_v42  ;;  %v503_v57 = vsel %vm58_vm4, %v499_v44, %v496_v49  ;;  %v500_v5 = vsel %vm58_vm4, %v498_v53, %v499_v44 }
 0x1d7   :  { %7796 = vmatprep.mubr.msk.bf16.mxu0 %vm71_vm1, %v510_v45  ;;  %v490_v54 = vsel %vm45_vm3, %v484_v41, %v485_v46  ;;  %v489_v56 = vsel %vm45_vm3, %v485_v46, %v486_v43  ;;  %v501_v60 = vsel %vm58_vm4, %v497_v52, %v498_v53  ;;  %v502_v61 = vsel %vm58_vm4, %v496_v49, %v497_v52 }
 0x1d8   :  { %7797 = vmatmul.mubr.msk.bf16.vlgmr.msra.gmra.mxu0 %vm71_vm1, %v511_v50  ;;  %v508_v58 = vpack.c.bf16 %v490_v54, %v492_v51  ;;  %v494_v59 = vsel %vm37_vm2, %v489_v56, 0.0  ;;  %v505_v63 = vsel %vm40_vm5, %v501_v60, 0.0  ;;  %v507_v15 = vsel %vm40_vm5, %v503_v57, 0.0 }
 0x1d9   :  { %7807 = vmatpush3.bf16.msra.mxu0 %v8827_v12  ;;  %v509_v62 = vpack.c.bf16 %v488_v55, %v494_v59  ;;  %v622_v3 = vpack.c.bf16 %v505_v63, %v502_v61  ;;  %v623_v16 = vpack.c.bf16 %v507_v15, %v500_v5  ;;  %v908_v49 = vmul.f32 2.0, %v8964_v29 }
 0x1da   :  { %7802 = vmatprep.mubr.msk.bf16.mxu1 %vm71_vm1, %v508_v58  ;;  %8358 = vmatprep.subr.msk.bf16.mxu0 %vm78_vm0, %v8823_v11  ;;  %v906_v51 = vmul.f32 2.0, %v8966_v30  ;;  %v909_v55 = vmul.f32 2.0, %v8970_v33 }
 0x1db   :  { %7803 = vmatmul.mubr.msk.bf16.vlgmr.msra.gmra.mxu1 %vm71_vm1, %v509_v62  ;;  %7808 = vmatprep.mubr.msk.bf16.mxu0 %vm71_vm1, %v622_v3  ;;  %v912_v52 = vadd.f32 %v8905_v9, %v908_v49  ;;  %v907_v62 = vmul.f32 2.0, %v8974_v36 }
 0x1dc   :  { %7813 = vmatpush3.bf16.msra.mxu1 %v8797_v4  ;;  %v910_v61 = vadd.f32 %v8907_v10, %v906_v51  ;;  %v913_v9 = vadd.f32 %v8911_v17, %v909_v55 }
 0x1dd   :  { %8359 = vmatprep.subr.msk.bf16.mxu1 %vm78_vm0, %v8814_v8 }
 0x1e0   :  { %7809 = vmatmul.mubr.msk.bf16.vlgmr.msra.gmra.mxu0 %vm71_vm1, %v623_v16 }
 0x1e1   :  { %7819 = vmatpush3.bf16.msra.mxu0 %v8836_v14 }
 0x1e2   :  { %8360 = vmatprep.subr.msk.bf16.mxu0 %vm78_vm0, %v8781_v0 }
 0x298   :  { %v7798_v18 = vpop.f32.mrf.mxu0 }
 0x29a   :  { %v552_v19 = vpop.f32.mrf.mxu0 }
 0x29b   :  { %v7804_v22 = vpop.f32.mrf.mxu1 }
 0x29c   :  { %v7799_v23 = vpop.f32.mrf.mxu0  ;;  %v616_v26 = vadd.f32 %v7804_v22, %v7798_v18 }
 0x29d   :  { %v607_v24 = vpop.f32.mrf.mxu1 }
 0x29e   :  { %v555_v25 = vpop.f32.mrf.mxu0  ;;  %v608_v31 = vadd.f32 %v607_v24, %v552_v19  ;;  %v911_v19 = vadd.f32 %v8915_v20, %v907_v62 }
 0x29f   :  { %v7805_v27 = vpop.f32.mrf.mxu1 }
 0x2a0   :  { %v7810_v28 = vpop.f32.mrf.mxu0  ;;  %v619_v37 = vadd.f32 %v7805_v27, %v7799_v23 }
 0x2a1   :  { %v681_v32 = vadd.f32 %v7810_v28, %v616_v26  ;;  %v610_v34 = vpop.f32.mrf.mxu1 }
 0x2a2   :  { %v664_v35 = vpop.f32.mrf.mxu0  ;;  %v611_v41 = vadd.f32 %v610_v34, %v555_v25 }
 0x2a3   :  { %v685_v38 = vadd.f32 %v681_v32, %v8899_v48  ;;  %v679_v39 = vadd.f32 %v664_v35, %v608_v31 }
 0x2a4   :  { %v7811_v40 = vpop.f32.mrf.mxu0 }
 0x2a5   :  { %8466 = vtanh.f32 %v685_v38  ;;  %v683_v42 = vadd.f32 %v679_v39, %v8899_v48  ;;  %v682_v43 = vadd.f32 %v7811_v40, %v619_v37 }
 0x2a6   :  { %v667_v44 = vpop.f32.mrf.mxu0 }
 0x2a7   :  { %8468 = vtanh.f32 %v683_v42  ;;  %v686_v45 = vadd.f32 %v682_v43, %v8899_v48  ;;  %v680_v46 = vadd.f32 %v667_v44, %v611_v41 }
 0x2a9   :  { %8470 = vtanh.f32 %v686_v45  ;;  %v684_v47 = vadd.f32 %v680_v46, %v8899_v48 }
 0x2ab   :  { %8472 = vtanh.f32 %v684_v47 }
 0x2b2   :  { %v8467_v50 = vpop.eup %8466 }
 0x2b3   :  { %v916_v53 = vmul.f32 2.0, %v8467_v50  ;;  %v693_v56 = vmul.f32 0.125, %v8467_v50 }
 0x2b4   :  { %v8469_v54 = vpop.eup %8468 }
 0x2b5   :  { %v914_v57 = vmul.f32 2.0, %v8469_v54  ;;  %v691_v58 = vmul.f32 0.125, %v8469_v54  ;;  %v9027_v59 = vadd.f32 %v916_v53, %v912_v52  ;;  %v697_v5 = vadd.f32 %v693_v56, %v8804_v6 }
 0x2b6   :  { %v8471_v60 = vpop.eup %8470 }
 0x2b7   :  { %v694_v29 = vmul.f32 0.125, %v8471_v60  ;;  %v917_v63 = vmul.f32 2.0, %v8471_v60  ;;  %v695_v30 = vadd.f32 %v691_v58, %v8786_v1  ;;  %v9034_v33 = vadd.f32 %v914_v57, %v910_v61 }
 0x2b8   :  { %v8473_v3 = vpop.eup %8472  ;;  %v701_v25 = vrot.slane %v697_v5, 7  ;;  %v713_v35 = vrot.slane %v697_v5, 1 }
 0x2b9   :  { %v915_v15 = vmul.f32 2.0, %v8473_v3  ;;  %v692_v16 = vmul.f32 0.125, %v8473_v3  ;;  %v698_v18 = vadd.f32 %v694_v29, %v8809_v7  ;;  %v9038_v10 = vadd.f32 %v917_v63, %v913_v9 }
 0x2ba   :  { %v699_v22 = vrot.slane %v695_v30, 7  ;;  %v711_v31 = vrot.slane %v695_v30, 1 }
 0x2bb   :  { %v696_v36 = vadd.f32 %v692_v16, %v8791_v2  ;;  %v702_v23 = vrot.slane %v698_v18, 7  ;;  %v714_v24 = vrot.slane %v698_v18, 1  ;;  %v9041_v26 = vadd.f32 %v915_v15, %v911_v19 }
 0x2bc   :  { %v726_v32 = vpack.c.bf16 %v698_v18, %v697_v5 }
 0x2bd   :  { %v725_v17 = vpack.c.bf16 %v696_v36, %v695_v30  ;;  %v700_v27 = vrot.slane %v696_v36, 7  ;;  %v706_v28 = vsel %vm45_vm3, %v702_v23, %v699_v22  ;;  %v712_v34 = vrot.slane %v696_v36, 1 }
 0x2be   :  { %v707_v20 = vsel %vm37_vm2, %v706_v28, 0.0  ;;  %v703_v38 = vsel %vm45_vm3, %v701_v25, %v702_v23  ;;  %v718_v40 = vsel %vm58_vm4, %v714_v24, %v711_v31  ;;  %v715_v49 = vsel %vm58_vm4, %v713_v35, %v714_v24 }
 0x2bf   :  { %7814 = vmatprep.mubr.msk.bf16.mxu1 %vm71_vm1, %v725_v17  ;;  %v705_v37 = vsel %vm45_vm3, %v699_v22, %v700_v27  ;;  %v704_v39 = vsel %vm45_vm3, %v700_v27, %v701_v25  ;;  %v716_v43 = vsel %vm58_vm4, %v712_v34, %v713_v35  ;;  %v717_v44 = vsel %vm58_vm4, %v711_v31, %v712_v34 }
 0x2c0   :  { %7815 = vmatmul.mubr.msk.bf16.vlgmr.msra.gmra.mxu1 %vm71_vm1, %v726_v32  ;;  %v723_v41 = vpack.c.bf16 %v705_v37, %v707_v20  ;;  %v709_v42 = vsel %vm37_vm2, %v704_v39, 0.0  ;;  %v720_v46 = vsel %vm40_vm5, %v716_v43, 0.0  ;;  %v722_v50 = vsel %vm40_vm5, %v718_v40, 0.0 }
 0x2c1   :  { %7825 = vmatpush3.bf16.msra.mxu1 %v8827_v12  ;;  %v724_v45 = vpack.c.bf16 %v703_v38, %v709_v42  ;;  %v837_v47 = vpack.c.bf16 %v720_v46, %v717_v44  ;;  %v838_v51 = vpack.c.bf16 %v722_v50, %v715_v49 }
 0x2c2   :  { %7820 = vmatprep.mubr.msk.bf16.mxu0 %vm71_vm1, %v723_v41  ;;  %8361 = vmatprep.subr.msk.bf16.mxu1 %vm78_vm0, %v8823_v11 }
 0x2c3   :  { %7821 = vmatmul.mubr.msk.bf16.vlgmr.msra.gmra.mxu0 %vm71_vm1, %v724_v45  ;;  %7826 = vmatprep.mubr.msk.bf16.mxu1 %vm71_vm1, %v837_v47 }
 0x2c4   :  { %7831 = vmatpush3.bf16.msra.mxu0 %v8797_v4 }
 0x2c5   :  { %8362 = vmatprep.subr.msk.bf16.mxu0 %vm78_vm0, %v8814_v8 }
 0x2c8   :  { %7827 = vmatmul.mubr.msk.bf16.vlgmr.msra.gmra.mxu1 %vm71_vm1, %v838_v51 }
 0x2c9   :  { %7837 = vmatpush3.bf16.msra.mxu1 %v8836_v14 }
 0x2ca   :  { %8363 = vmatprep.subr.msk.bf16.mxu1 %vm78_vm0, %v8781_v0 }
 0x380   :  { %v7816_v52 = vpop.f32.mrf.mxu1 }
 0x382   :  { %v767_v53 = vpop.f32.mrf.mxu1 }
 0x383   :  { %v7822_v54 = vpop.f32.mrf.mxu0 }
 0x384   :  { %v7817_v55 = vpop.f32.mrf.mxu1  ;;  %v831_v58 = vadd.f32 %v7822_v54, %v7816_v52 }
 0x385   :  { %v822_v56 = vpop.f32.mrf.mxu0 }
 0x386   :  { %v770_v57 = vpop.f32.mrf.mxu1  ;;  %v823_v62 = vadd.f32 %v822_v56, %v767_v53 }
 0x387   :  { %v7823_v60 = vpop.f32.mrf.mxu0 }
 0x388   :  { %v7828_v61 = vpop.f32.mrf.mxu1  ;;  %v834_v3 = vadd.f32 %v7823_v60, %v7817_v55 }
 0x389   :  { %v896_v29 = vadd.f32 %v7828_v61, %v831_v58  ;;  %v825_v63 = vpop.f32.mrf.mxu0 }
 0x38a   :  { %v879_v30 = vpop.f32.mrf.mxu1  ;;  %v826_v16 = vadd.f32 %v825_v63, %v770_v57 }
 0x38b   :  { %v900_v9 = vadd.f32 %v896_v29, %v8899_v48  ;;  %v894_v5 = vadd.f32 %v879_v30, %v823_v62 }
 0x38c   :  { %v7829_v15 = vpop.f32.mrf.mxu1 }
 0x38d   :  { %8474 = vtanh.f32 %v900_v9  ;;  %v898_v18 = vadd.f32 %v894_v5, %v8899_v48  ;;  %v897_v19 = vadd.f32 %v7829_v15, %v834_v3 }
 0x38e   :  { %v882_v36 = vpop.f32.mrf.mxu1 }
 0x38f   :  { %8476 = vtanh.f32 %v898_v18  ;;  %v901_v22 = vadd.f32 %v897_v19, %v8899_v48  ;;  %v895_v23 = vadd.f32 %v882_v36, %v826_v16 }
 0x391   :  { %8478 = vtanh.f32 %v901_v22  ;;  %v899_v24 = vadd.f32 %v895_v23, %v8899_v48 }
 0x393   :  { %8480 = vtanh.f32 %v899_v24 }
 0x39a   :  { %v8475_v25 = vpop.eup %8474 }
 0x39b   :  { %v924_v17 = vadd.f32 %v8475_v25, %v9027_v59 }
 0x39c   :  { %v8477_v27 = vpop.eup %8476 }
 0x39d   :  { %v922_v28 = vadd.f32 %v8477_v27, %v9034_v33  ;;  %v928_v32 = vmul.f32 0.020833334, %v924_v17 }
 0x39e   :  { %v8479_v31 = vpop.eup %8478 }
 0x39f   :  { %v926_v20 = vmul.f32 0.020833334, %v922_v28  ;;  %v925_v34 = vadd.f32 %v8479_v31, %v9038_v10  ;;  %v9094_v40 = vadd.f32 %v928_v32, %v8804_v6 }
 0x3a0   :  { %v8481_v35 = vpop.eup %8480 }
 0x3a1   :  { %v9090_v37 = vadd.f32 %v926_v20, %v8786_v1  ;;  %v929_v38 = vmul.f32 0.020833334, %v925_v34  ;;  %v923_v39 = vadd.f32 %v8481_v35, %v9041_v26  ;;  %v936_v43 = vrot.slane %v9094_v40, 7 }
 0x3a2   :  { %v948_v47 = vrot.slane %v9094_v40, 1 }
 0x3a3   :  { %v9097_v59 = vadd.f32 %v929_v38, %v8809_v7  ;;  %v927_v41 = vmul.f32 0.020833334, %v923_v39  ;;  %v934_v42 = vrot.slane %v9090_v37, 7  ;;  %v946_v44 = vrot.slane %v9090_v37, 1 }
 0x3a5   :  { %v9100_v33 = vadd.f32 %v927_v41, %v8791_v2  ;;  %v937_v10 = vrot.slane %v9097_v59, 7  ;;  %v949_v1 = vrot.slane %v9097_v59, 1  ;;  %v961_v2 = vpack.c.bf16 %v9097_v59, %v9094_v40 }
 0x3a7   :  { %v960_v26 = vpack.c.bf16 %v9100_v33, %v9090_v37  ;;  %v935_v6 = vrot.slane %v9100_v33, 7  ;;  %v941_v7 = vsel %vm45_vm3, %v937_v10, %v934_v42  ;;  %v947_v46 = vrot.slane %v9100_v33, 1 }
 0x3a8   :  { %v942_v45 = vsel %vm37_vm2, %v941_v7, 0.0  ;;  %v938_v50 = vsel %vm45_vm3, %v936_v43, %v937_v10  ;;  %v953_v52 = vsel %vm58_vm4, %v949_v1, %v946_v44  ;;  %v950_v61 = vsel %vm58_vm4, %v948_v47, %v949_v1 }
 0x3a9   :  { %7832 = vmatprep.mubr.msk.bf16.mxu0 %vm71_vm1, %v960_v26  ;;  %v940_v49 = vsel %vm45_vm3, %v934_v42, %v935_v6  ;;  %v939_v51 = vsel %vm45_vm3, %v935_v6, %v936_v43  ;;  %v951_v55 = vsel %vm58_vm4, %v947_v46, %v948_v47  ;;  %v952_v56 = vsel %vm58_vm4, %v946_v44, %v947_v46 }
 0x3aa   :  { %7833 = vmatmul.mubr.msk.bf16.vlgmr.msra.gmra.mxu0 %vm71_vm1, %v961_v2  ;;  %v958_v53 = vpack.c.bf16 %v940_v49, %v942_v45  ;;  %v944_v54 = vsel %vm37_vm2, %v939_v51, 0.0  ;;  %v955_v58 = vsel %vm40_vm5, %v951_v55, 0.0  ;;  %v957_v62 = vsel %vm40_vm5, %v953_v52, 0.0 }
 0x3ab   :  { %7843 = vmatpush3.bf16.msra.mxu0 %v8827_v12  ;;  %v959_v57 = vpack.c.bf16 %v938_v50, %v944_v54  ;;  %v1072_v60 = vpack.c.bf16 %v955_v58, %v952_v56  ;;  %v1073_v29 = vpack.c.bf16 %v957_v62, %v950_v61 }
 0x3ac   :  { %7838 = vmatprep.mubr.msk.bf16.mxu1 %vm71_vm1, %v958_v53  ;;  %8364 = vmatprep.subr.msk.bf16.mxu0 %vm78_vm0, %v8823_v11 }
 0x3ad   :  { %7839 = vmatmul.mubr.msk.bf16.vlgmr.msra.gmra.mxu1 %vm71_vm1, %v959_v57  ;;  %7844 = vmatprep.mubr.msk.bf16.mxu0 %vm71_vm1, %v1072_v60 }
 0x3ae   :  { %7849 = vmatpush3.bf16.msra.mxu1 %v8797_v4 }
 0x3af   :  { %8365 = vmatprep.subr.msk.bf16.mxu1 %vm78_vm0, %v8814_v8 }
 0x3b2   :  { %7845 = vmatmul.mubr.msk.bf16.vlgmr.msra.gmra.mxu0 %vm71_vm1, %v1073_v29 }
 0x3b3   :  { %7855 = vmatpush3.bf16.msra.mxu0 %v8836_v14 }
 0x3b4   :  { %8366 = vmatprep.subr.msk.bf16.mxu0 %vm78_vm0, %v8781_v0 }
 0x46a   :  { %v7834_v63 = vpop.f32.mrf.mxu0 }
 0x46c   :  { %v1002_v30 = vpop.f32.mrf.mxu0 }
 0x46d   :  { %v7840_v3 = vpop.f32.mrf.mxu1 }
 0x46e   :  { %v7835_v9 = vpop.f32.mrf.mxu0  ;;  %v1066_v16 = vadd.f32 %v7840_v3, %v7834_v63 }
 0x46f   :  { %v1057_v5 = vpop.f32.mrf.mxu1 }
 0x470   :  { %v1005_v15 = vpop.f32.mrf.mxu0  ;;  %v1058_v36 = vadd.f32 %v1057_v5, %v1002_v30 }
 0x471   :  { %v7841_v18 = vpop.f32.mrf.mxu1 }
 0x472   :  { %v7846_v19 = vpop.f32.mrf.mxu0  ;;  %v1069_v25 = vadd.f32 %v7841_v18, %v7835_v9 }
 0x473   :  { %v1131_v22 = vadd.f32 %v7846_v19, %v1066_v16  ;;  %v1060_v23 = vpop.f32.mrf.mxu1 }
 0x474   :  { %v1114_v24 = vpop.f32.mrf.mxu0  ;;  %v1061_v31 = vadd.f32 %v1060_v23, %v1005_v15 }
 0x475   :  { %v1135_v17 = vadd.f32 %v1131_v22, %v8899_v48  ;;  %v1129_v27 = vadd.f32 %v1114_v24, %v1058_v36 }
 0x476   :  { %v7847_v28 = vpop.f32.mrf.mxu0 }
 0x477   :  { %8482 = vtanh.f32 %v1135_v17  ;;  %v1133_v32 = vadd.f32 %v1129_v27, %v8899_v48  ;;  %v1132_v20 = vadd.f32 %v7847_v28, %v1069_v25 }
 0x478   :  { %v1117_v34 = vpop.f32.mrf.mxu0 }
 0x479   :  { %8484 = vtanh.f32 %v1133_v32  ;;  %v1136_v35 = vadd.f32 %v1132_v20, %v8899_v48  ;;  %v1130_v38 = vadd.f32 %v1117_v34, %v1061_v31 }
 0x47b   :  { %8486 = vtanh.f32 %v1136_v35  ;;  %v1134_v39 = vadd.f32 %v1130_v38, %v8899_v48 }
 0x47d   :  { %8488 = vtanh.f32 %v1134_v39 }
 0x484   :  { %v9157_v41 = vpop.eup %8482 }
 0x485   :  { %v1143_v10 = vmul.f32 0.0625, %v9157_v41 }
 0x486   :  { %v9159_v42 = vpop.eup %8484 }
 0x487   :  { %v1141_v1 = vmul.f32 0.0625, %v9159_v42  ;;  %v1147_v44 = vadd.f32 %v1143_v10, %v9094_v40 }
 0x488   :  { %v9163_v43 = vpop.eup %8486 }
 0x489   :  { %v1144_v26 = vmul.f32 0.0625, %v9163_v43  ;;  %v1145_v6 = vadd.f32 %v1141_v1, %v9090_v37  ;;  %v1151_v51 = vrot.slane %v1147_v44, 7  ;;  %v1163_v60 = vrot.slane %v1147_v44, 1 }
 0x48a   :  { %v9167_v7 = vpop.eup %8488 }
 0x48b   :  { %v1142_v2 = vmul.f32 0.0625, %v9167_v7  ;;  %v1148_v45 = vadd.f32 %v1144_v26, %v9097_v59  ;;  %v1149_v47 = vrot.slane %v1145_v6, 7  ;;  %v1161_v55 = vrot.slane %v1145_v6, 1 }
 0x48d   :  { %v1146_v46 = vadd.f32 %v1142_v2, %v9100_v33  ;;  %v1152_v49 = vrot.slane %v1148_v45, 7  ;;  %v1164_v50 = vrot.slane %v1148_v45, 1  ;;  %v1176_v56 = vpack.c.bf16 %v1148_v45, %v1147_v44 }
 0x48f   :  { %v1175_v52 = vpack.c.bf16 %v1146_v46, %v1145_v6  ;;  %v1150_v53 = vrot.slane %v1146_v46, 7  ;;  %v1156_v54 = vsel %vm45_vm3, %v1152_v49, %v1149_v47  ;;  %v1162_v58 = vrot.slane %v1146_v46, 1 }
 0x490   :  { %v1157_v57 = vsel %vm37_vm2, %v1156_v54, 0.0  ;;  %v1153_v62 = vsel %vm45_vm3, %v1151_v51, %v1152_v49  ;;  %v1168_v63 = vsel %vm58_vm4, %v1164_v50, %v1161_v55  ;;  %v1165_v19 = vsel %vm58_vm4, %v1163_v60, %v1164_v50 }
 0x491   :  { %7850 = vmatprep.mubr.msk.bf16.mxu1 %vm71_vm1, %v1175_v52  ;;  %v1155_v61 = vsel %vm45_vm3, %v1149_v47, %v1150_v53  ;;  %v1154_v29 = vsel %vm45_vm3, %v1150_v53, %v1151_v51  ;;  %v1166_v9 = vsel %vm58_vm4, %v1162_v58, %v1163_v60  ;;  %v1167_v5 = vsel %vm58_vm4, %v1161_v55, %v1162_v58 }
 0x492   :  { %7851 = vmatmul.mubr.msk.bf16.vlgmr.msra.gmra.mxu1 %vm71_vm1, %v1176_v56  ;;  %v1173_v30 = vpack.c.bf16 %v1155_v61, %v1157_v57  ;;  %v1159_v3 = vsel %vm37_vm2, %v1154_v29, 0.0  ;;  %v1170_v16 = vsel %vm40_vm5, %v1166_v9, 0.0  ;;  %v1172_v36 = vsel %vm40_vm5, %v1168_v63, 0.0 }
 0x493   :  { %7861 = vmatpush3.bf16.msra.mxu1 %v8827_v12  ;;  %v1174_v15 = vpack.c.bf16 %v1153_v62, %v1159_v3  ;;  %v1287_v18 = vpack.c.bf16 %v1170_v16, %v1167_v5  ;;  %v1288_v22 = vpack.c.bf16 %v1172_v36, %v1165_v19 }
 0x494   :  { %7856 = vmatprep.mubr.msk.bf16.mxu0 %vm71_vm1, %v1173_v30  ;;  %8367 = vmatprep.subr.msk.bf16.mxu1 %vm78_vm0, %v8823_v11 }
 0x495   :  { %7857 = vmatmul.mubr.msk.bf16.vlgmr.msra.gmra.mxu0 %vm71_vm1, %v1174_v15  ;;  %7862 = vmatprep.mubr.msk.bf16.mxu1 %vm71_vm1, %v1287_v18 }
 0x496   :  { %7867 = vmatpush3.bf16.msra.mxu0 %v8797_v4 }
 0x497   :  { %8368 = vmatprep.subr.msk.bf16.mxu0 %vm78_vm0, %v8814_v8 }
 0x49a   :  { %7863 = vmatmul.mubr.msk.bf16.vlgmr.msra.gmra.mxu1 %vm71_vm1, %v1288_v22 }
 0x49b   :  { %7873 = vmatpush3.bf16.msra.mxu1 %v8836_v14 }
 0x49c   :  { %8369 = vmatprep.subr.msk.bf16.mxu1 %vm78_vm0, %v8781_v0 }
 0x552   :  { %v7852_v11 = vpop.f32.mrf.mxu1 }
 0x554   :  { %v1217_v23 = vpop.f32.mrf.mxu1 }
 0x555   :  { %v7858_v24 = vpop.f32.mrf.mxu0 }
 0x556   :  { %v7853_v25 = vpop.f32.mrf.mxu1  ;;  %v1281_v28 = vadd.f32 %v7858_v24, %v7852_v11 }
 0x557   :  { %v1272_v17 = vpop.f32.mrf.mxu0 }
 0x558   :  { %v1220_v27 = vpop.f32.mrf.mxu1  ;;  %v1273_v20 = vadd.f32 %v1272_v17, %v1217_v23 }
 0x559   :  { %v7859_v31 = vpop.f32.mrf.mxu0 }
 0x55a   :  { %v7864_v32 = vpop.f32.mrf.mxu1  ;;  %v1284_v38 = vadd.f32 %v7859_v31, %v7853_v25 }
 0x55b   :  { %v1346_v34 = vadd.f32 %v7864_v32, %v1281_v28  ;;  %v1275_v8 = vpop.f32.mrf.mxu0 }
 0x55c   :  { %v1329_v35 = vpop.f32.mrf.mxu1  ;;  %v1276_v0 = vadd.f32 %v1275_v8, %v1220_v27 }
 0x55d   :  { %v1350_v39 = vadd.f32 %v1346_v34, %v8899_v48  ;;  %v1344_v10 = vadd.f32 %v1329_v35, %v1273_v20  ;;  %v9259_v20 = vld [vmem:[%s10942_s1] sm:$0x3]  ;;  %v9273_v35 = vld [vmem:[%s10942_s1 + $0x4] sm:$0x3] }
 0x55e   :  { %v7865_v1 = vpop.f32.mrf.mxu1 }
 0x55f   :  { %8490 = vtanh.f32 %v1350_v39  ;;  %v1348_v26 = vadd.f32 %v1344_v10, %v8899_v48  ;;  %v1347_v6 = vadd.f32 %v7865_v1, %v1284_v38  ;;  %v9282_v39 = vld [vmem:[%s10942_s1 + $0x2] sm:$0x3] }
 0x560   :  { %v1332_v44 = vpop.f32.mrf.mxu1 }
 0x561   :  { %8492 = vtanh.f32 %v1348_v26  ;;  %v1351_v2 = vadd.f32 %v1347_v6, %v8899_v48  ;;  %v1345_v45 = vadd.f32 %v1332_v44, %v1276_v0 }
 0x563   :  { %8494 = vtanh.f32 %v1351_v2  ;;  %v1349_v46 = vadd.f32 %v1345_v45, %v8899_v48 }
 0x565   :  { %8496 = vtanh.f32 %v1349_v46 }
 0x56c   :  { %v9216_v47 = vpop.eup %8490 }
 0x56d   :  { %v1358_v50 = vmul.f32 0.0625, %v9216_v47 }
 0x56e   :  { %v9218_v49 = vpop.eup %8492 }
 0x56f   :  { %v1356_v51 = vmul.f32 0.0625, %v9218_v49  ;;  %v1362_v56 = vadd.f32 %v1358_v50, %v9094_v40 }
 0x570   :  { %v9222_v52 = vpop.eup %8494 }
 0x571   :  { %v1359_v53 = vmul.f32 0.0625, %v9222_v52  ;;  %v1360_v54 = vadd.f32 %v1356_v51, %v9090_v37  ;;  %v1366_v29 = vrot.slane %v1362_v56, 7  ;;  %v1378_v19 = vrot.slane %v1362_v56, 1 }
 0x572   :  { %v9226_v55 = vpop.eup %8496 }
 0x573   :  { %v1357_v57 = vmul.f32 0.0625, %v9226_v55  ;;  %v1363_v58 = vadd.f32 %v1359_v53, %v9097_v59  ;;  %v1364_v61 = vrot.slane %v1360_v54, 7  ;;  %v1376_v5 = vrot.slane %v1360_v54, 1 }
 0x575   :  { %v1361_v60 = vadd.f32 %v1357_v57, %v9100_v33  ;;  %v1367_v62 = vrot.slane %v1363_v58, 7  ;;  %v1379_v63 = vrot.slane %v1363_v58, 1  ;;  %v1391_v15 = vpack.c.bf16 %v1363_v58, %v1362_v56 }
 0x577   :  { %v1390_v30 = vpack.c.bf16 %v1361_v60, %v1360_v54  ;;  %v1365_v3 = vrot.slane %v1361_v60, 7  ;;  %v1371_v9 = vsel %vm45_vm3, %v1367_v62, %v1364_v61  ;;  %v1377_v18 = vrot.slane %v1361_v60, 1 }
 0x578   :  { %v1372_v16 = vsel %vm37_vm2, %v1371_v9, 0.0  ;;  %v1368_v22 = vsel %vm45_vm3, %v1366_v29, %v1367_v62  ;;  %v1383_v23 = vsel %vm58_vm4, %v1379_v63, %v1376_v5  ;;  %v1380_v34 = vsel %vm58_vm4, %v1378_v19, %v1379_v63 }
 0x579   :  { %7868 = vmatprep.mubr.msk.bf16.mxu0 %vm71_vm1, %v1390_v30  ;;  %v1370_v36 = vsel %vm45_vm3, %v1364_v61, %v1365_v3  ;;  %v1369_v11 = vsel %vm45_vm3, %v1365_v3, %v1366_v29  ;;  %v1381_v17 = vsel %vm58_vm4, %v1377_v18, %v1378_v19  ;;  %v1382_v27 = vsel %vm58_vm4, %v1376_v5, %v1377_v18 }
 0x57a   :  { %7869 = vmatmul.mubr.msk.bf16.vlgmr.msra.gmra.mxu0 %vm71_vm1, %v1391_v15  ;;  %v1388_v24 = vpack.c.bf16 %v1370_v36, %v1372_v16  ;;  %v1374_v25 = vsel %vm37_vm2, %v1369_v11, 0.0  ;;  %v1385_v31 = vsel %vm40_vm5, %v1381_v17, 0.0  ;;  %v1387_v8 = vsel %vm40_vm5, %v1383_v23, 0.0 }
 0x57b   :  { %7879 = vmatpush3.bf16.msra.mxu0 %v8827_v12  ;;  %v1389_v28 = vpack.c.bf16 %v1368_v22, %v1374_v25  ;;  %v1502_v32 = vpack.c.bf16 %v1385_v31, %v1382_v27  ;;  %v1503_v38 = vpack.c.bf16 %v1387_v8, %v1380_v34  ;;  %v1788_v5 = vmul.f32 2.0, %v9216_v47 }
 0x57c   :  { %7874 = vmatprep.mubr.msk.bf16.mxu1 %vm71_vm1, %v1388_v24  ;;  %8370 = vmatprep.subr.msk.bf16.mxu0 %vm78_vm0, %v9259_v20  ;;  %v1786_v16 = vmul.f32 2.0, %v9218_v49  ;;  %v1789_v22 = vmul.f32 2.0, %v9222_v52 }
 0x57d   :  { %7875 = vmatmul.mubr.msk.bf16.vlgmr.msra.gmra.mxu1 %vm71_vm1, %v1389_v28  ;;  %7880 = vmatprep.mubr.msk.bf16.mxu0 %vm71_vm1, %v1502_v32  ;;  %v1792_v18 = vadd.f32 %v9157_v41, %v1788_v5  ;;  %v1787_v28 = vmul.f32 2.0, %v9226_v55 }
 0x57e   :  { %7885 = vmatpush3.bf16.msra.mxu1 %v8797_v4  ;;  %v1790_v27 = vadd.f32 %v9159_v42, %v1786_v16  ;;  %v1793_v41 = vadd.f32 %v9163_v43, %v1789_v22 }
 0x57f   :  { %8371 = vmatprep.subr.msk.bf16.mxu1 %vm78_vm0, %v9273_v35 }
 0x582   :  { %7881 = vmatmul.mubr.msk.bf16.vlgmr.msra.gmra.mxu0 %vm71_vm1, %v1503_v38 }
 0x583   :  { %7891 = vmatpush3.bf16.msra.mxu0 %v8836_v14 }
 0x584   :  { %8372 = vmatprep.subr.msk.bf16.mxu0 %vm78_vm0, %v9282_v39 }
 0x63a   :  { %v7870_v10 = vpop.f32.mrf.mxu0 }
 0x63c   :  { %v1432_v1 = vpop.f32.mrf.mxu0 }
 0x63d   :  { %v7876_v0 = vpop.f32.mrf.mxu1 }
 0x63e   :  { %v7871_v26 = vpop.f32.mrf.mxu0  ;;  %v1496_v2 = vadd.f32 %v7876_v0, %v7870_v10 }
 0x63f   :  { %v1487_v6 = vpop.f32.mrf.mxu1 }
 0x640   :  { %v1435_v44 = vpop.f32.mrf.mxu0  ;;  %v1488_v50 = vadd.f32 %v1487_v6, %v1432_v1  ;;  %v1791_v1 = vadd.f32 %v9167_v7, %v1787_v28 }
 0x641   :  { %v7877_v45 = vpop.f32.mrf.mxu1 }
 0x642   :  { %v7882_v46 = vpop.f32.mrf.mxu0  ;;  %v1499_v56 = vadd.f32 %v7877_v45, %v7871_v26 }
 0x643   :  { %v1561_v51 = vadd.f32 %v7882_v46, %v1496_v2  ;;  %v1490_v53 = vpop.f32.mrf.mxu1 }
 0x644   :  { %v1544_v54 = vpop.f32.mrf.mxu0  ;;  %v1491_v61 = vadd.f32 %v1490_v53, %v1435_v44 }
 0x645   :  { %v1565_v57 = vadd.f32 %v1561_v51, %v8899_v48  ;;  %v1559_v58 = vadd.f32 %v1544_v54, %v1488_v50 }
 0x646   :  { %v7883_v60 = vpop.f32.mrf.mxu0 }
 0x647   :  { %8498 = vtanh.f32 %v1565_v57  ;;  %v1563_v62 = vadd.f32 %v1559_v58, %v8899_v48  ;;  %v1562_v29 = vadd.f32 %v7883_v60, %v1499_v56 }
 0x648   :  { %v1547_v63 = vpop.f32.mrf.mxu0 }
 0x649   :  { %8500 = vtanh.f32 %v1563_v62  ;;  %v1566_v30 = vadd.f32 %v1562_v29, %v8899_v48  ;;  %v1560_v3 = vadd.f32 %v1547_v63, %v1491_v61 }
 0x64b   :  { %8502 = vtanh.f32 %v1566_v30  ;;  %v1564_v9 = vadd.f32 %v1560_v3, %v8899_v48 }
 0x64d   :  { %8504 = vtanh.f32 %v1564_v9 }
 0x654   :  { %v8499_v15 = vpop.eup %8498 }
 0x655   :  { %v1796_v19 = vmul.f32 2.0, %v8499_v15  ;;  %v1573_v11 = vmul.f32 0.125, %v8499_v15 }
 0x656   :  { %v8501_v36 = vpop.eup %8500 }
 0x657   :  { %v1794_v23 = vmul.f32 2.0, %v8501_v36  ;;  %v1571_v24 = vmul.f32 0.125, %v8501_v36  ;;  %v9294_v25 = vadd.f32 %v1796_v19, %v1792_v18  ;;  %v1577_v34 = vadd.f32 %v1573_v11, %v9094_v40 }
 0x658   :  { %v8503_v17 = vpop.eup %8502 }
 0x659   :  { %v1574_v47 = vmul.f32 0.125, %v8503_v17  ;;  %v1797_v31 = vmul.f32 2.0, %v8503_v17  ;;  %v1575_v49 = vadd.f32 %v1571_v24, %v9090_v37  ;;  %v9301_v52 = vadd.f32 %v1794_v23, %v1790_v27 }
 0x65a   :  { %v8505_v32 = vpop.eup %8504  ;;  %v1581_v44 = vrot.slane %v1577_v34, 7  ;;  %v1593_v54 = vrot.slane %v1577_v34, 1 }
 0x65b   :  { %v1795_v8 = vmul.f32 2.0, %v8505_v32  ;;  %v1572_v38 = vmul.f32 0.125, %v8505_v32  ;;  %v1578_v10 = vadd.f32 %v1574_v47, %v9097_v59  ;;  %v9305_v42 = vadd.f32 %v1797_v31, %v1793_v41 }
 0x65c   :  { %v1579_v0 = vrot.slane %v1575_v49, 7  ;;  %v1591_v50 = vrot.slane %v1575_v49, 1 }
 0x65d   :  { %v1576_v55 = vadd.f32 %v1572_v38, %v9100_v33  ;;  %v1582_v26 = vrot.slane %v1578_v10, 7  ;;  %v1594_v6 = vrot.slane %v1578_v10, 1  ;;  %v9308_v2 = vadd.f32 %v1795_v8, %v1791_v1 }
 0x65e   :  { %v1606_v51 = vpack.c.bf16 %v1578_v10, %v1577_v34 }
 0x65f   :  { %v1605_v43 = vpack.c.bf16 %v1576_v55, %v1575_v49  ;;  %v1580_v45 = vrot.slane %v1576_v55, 7  ;;  %v1586_v46 = vsel %vm45_vm3, %v1582_v26, %v1579_v0  ;;  %v1592_v53 = vrot.slane %v1576_v55, 1 }
 0x660   :  { %v1587_v7 = vsel %vm37_vm2, %v1586_v46, 0.0  ;;  %v1583_v57 = vsel %vm45_vm3, %v1581_v44, %v1582_v26  ;;  %v1598_v60 = vsel %vm58_vm4, %v1594_v6, %v1591_v50  ;;  %v1595_v5 = vsel %vm58_vm4, %v1593_v54, %v1594_v6 }
 0x661   :  { %7886 = vmatprep.mubr.msk.bf16.mxu1 %vm71_vm1, %v1605_v43  ;;  %v1585_v56 = vsel %vm45_vm3, %v1579_v0, %v1580_v45  ;;  %v1584_v58 = vsel %vm45_vm3, %v1580_v45, %v1581_v44  ;;  %v1596_v29 = vsel %vm58_vm4, %v1592_v53, %v1593_v54  ;;  %v1597_v63 = vsel %vm58_vm4, %v1591_v50, %v1592_v53 }
 0x662   :  { %7887 = vmatmul.mubr.msk.bf16.vlgmr.msra.gmra.mxu1 %vm71_vm1, %v1606_v51  ;;  %v1603_v61 = vpack.c.bf16 %v1585_v56, %v1587_v7  ;;  %v1589_v62 = vsel %vm37_vm2, %v1584_v58, 0.0  ;;  %v1600_v3 = vsel %vm40_vm5, %v1596_v29, 0.0  ;;  %v1602_v15 = vsel %vm40_vm5, %v1598_v60, 0.0 }
 0x663   :  { %7897 = vmatpush3.bf16.msra.mxu1 %v8827_v12  ;;  %v1604_v30 = vpack.c.bf16 %v1583_v57, %v1589_v62  ;;  %v1717_v9 = vpack.c.bf16 %v1600_v3, %v1597_v63  ;;  %v1718_v16 = vpack.c.bf16 %v1602_v15, %v1595_v5 }
 0x664   :  { %7892 = vmatprep.mubr.msk.bf16.mxu0 %vm71_vm1, %v1603_v61  ;;  %8373 = vmatprep.subr.msk.bf16.mxu1 %vm78_vm0, %v9259_v20 }
 0x665   :  { %7893 = vmatmul.mubr.msk.bf16.vlgmr.msra.gmra.mxu0 %vm71_vm1, %v1604_v30  ;;  %7898 = vmatprep.mubr.msk.bf16.mxu1 %vm71_vm1, %v1717_v9 }
 0x666   :  { %7903 = vmatpush3.bf16.msra.mxu0 %v8797_v4 }
 0x667   :  { %8374 = vmatprep.subr.msk.bf16.mxu0 %vm78_vm0, %v9273_v35 }
 0x66a   :  { %7899 = vmatmul.mubr.msk.bf16.vlgmr.msra.gmra.mxu1 %vm71_vm1, %v1718_v16 }
 0x66b   :  { %7909 = vmatpush3.bf16.msra.mxu1 %v8836_v14 }
 0x66c   :  { %8375 = vmatprep.subr.msk.bf16.mxu1 %vm78_vm0, %v9282_v39 }
 0x722   :  { %v7888_v18 = vpop.f32.mrf.mxu1 }
 0x724   :  { %v1647_v19 = vpop.f32.mrf.mxu1 }
 0x725   :  { %v7894_v36 = vpop.f32.mrf.mxu0 }
 0x726   :  { %v7889_v22 = vpop.f32.mrf.mxu1  ;;  %v1711_v24 = vadd.f32 %v7894_v36, %v7888_v18 }
 0x727   :  { %v1702_v11 = vpop.f32.mrf.mxu0 }
 0x728   :  { %v1650_v23 = vpop.f32.mrf.mxu1  ;;  %v1703_v28 = vadd.f32 %v1702_v11, %v1647_v19 }
 0x729   :  { %v7895_v17 = vpop.f32.mrf.mxu0 }
 0x72a   :  { %v7900_v27 = vpop.f32.mrf.mxu1  ;;  %v1714_v32 = vadd.f32 %v7895_v17, %v7889_v22 }
 0x72b   :  { %v1776_v47 = vadd.f32 %v7900_v27, %v1711_v24  ;;  %v1705_v31 = vpop.f32.mrf.mxu0 }
 0x72c   :  { %v1759_v49 = vpop.f32.mrf.mxu1  ;;  %v1706_v38 = vadd.f32 %v1705_v31, %v1650_v23 }
 0x72d   :  { %v1780_v41 = vadd.f32 %v1776_v47, %v8899_v48  ;;  %v1774_v34 = vadd.f32 %v1759_v49, %v1703_v28 }
 0x72e   :  { %v7901_v8 = vpop.f32.mrf.mxu1 }
 0x72f   :  { %8506 = vtanh.f32 %v1780_v41  ;;  %v1778_v10 = vadd.f32 %v1774_v34, %v8899_v48  ;;  %v1777_v1 = vadd.f32 %v7901_v8, %v1714_v32 }
 0x730   :  { %v1762_v55 = vpop.f32.mrf.mxu1 }
 0x731   :  { %8508 = vtanh.f32 %v1778_v10  ;;  %v1781_v0 = vadd.f32 %v1777_v1, %v8899_v48  ;;  %v1775_v26 = vadd.f32 %v1762_v55, %v1706_v38 }
 0x733   :  { %8510 = vtanh.f32 %v1781_v0  ;;  %v1779_v6 = vadd.f32 %v1775_v26, %v8899_v48 }
 0x735   :  { %8512 = vtanh.f32 %v1779_v6 }
 0x73c   :  { %v8507_v44 = vpop.eup %8506 }
 0x73d   :  { %v1804_v43 = vadd.f32 %v8507_v44, %v9294_v25 }
 0x73e   :  { %v8509_v45 = vpop.eup %8508 }
 0x73f   :  { %v1802_v46 = vadd.f32 %v8509_v45, %v9301_v52  ;;  %v1808_v51 = vmul.f32 0.020833334, %v1804_v43 }
 0x740   :  { %v8511_v50 = vpop.eup %8510 }
 0x741   :  { %v1806_v7 = vmul.f32 0.020833334, %v1802_v46  ;;  %v1805_v53 = vadd.f32 %v8511_v50, %v9305_v42  ;;  %v9361_v60 = vadd.f32 %v1808_v51, %v9094_v40 }
 0x742   :  { %v8513_v54 = vpop.eup %8512 }
 0x743   :  { %v9357_v56 = vadd.f32 %v1806_v7, %v9090_v37  ;;  %v1809_v57 = vmul.f32 0.020833334, %v1805_v53  ;;  %v1803_v58 = vadd.f32 %v8513_v54, %v9308_v2  ;;  %v1816_v29 = vrot.slane %v9361_v60, 7 }
 0x744   :  { %v1828_v9 = vrot.slane %v9361_v60, 1 }
 0x745   :  { %v9364_v25 = vadd.f32 %v1809_v57, %v9097_v59  ;;  %v1807_v61 = vmul.f32 0.020833334, %v1803_v58  ;;  %v1814_v62 = vrot.slane %v9357_v56, 7  ;;  %v1826_v63 = vrot.slane %v9357_v56, 1 }
 0x747   :  { %v9367_v52 = vadd.f32 %v1807_v61, %v9100_v33  ;;  %v1817_v42 = vrot.slane %v9364_v25, 7  ;;  %v1829_v37 = vrot.slane %v9364_v25, 1  ;;  %v1841_v33 = vpack.c.bf16 %v9364_v25, %v9361_v60 }
 0x749   :  { %v1840_v2 = vpack.c.bf16 %v9367_v52, %v9357_v56  ;;  %v1815_v40 = vrot.slane %v9367_v52, 7  ;;  %v1821_v59 = vsel %vm45_vm3, %v1817_v42, %v1814_v62  ;;  %v1827_v3 = vrot.slane %v9367_v52, 1 }
 0x74a   :  { %v1822_v30 = vsel %vm37_vm2, %v1821_v59, 0.0  ;;  %v1818_v15 = vsel %vm45_vm3, %v1816_v29, %v1817_v42  ;;  %v1833_v18 = vsel %vm58_vm4, %v1829_v37, %v1826_v63  ;;  %v1830_v27 = vsel %vm58_vm4, %v1828_v9, %v1829_v37 }
 0x74b   :  { %7904 = vmatprep.mubr.msk.bf16.mxu0 %vm71_vm1, %v1840_v2  ;;  %v1820_v5 = vsel %vm45_vm3, %v1814_v62, %v1815_v40  ;;  %v1819_v16 = vsel %vm45_vm3, %v1815_v40, %v1816_v29  ;;  %v1831_v22 = vsel %vm58_vm4, %v1827_v3, %v1828_v9  ;;  %v1832_v11 = vsel %vm58_vm4, %v1826_v63, %v1827_v3 }
 0x74c   :  { %7905 = vmatmul.mubr.msk.bf16.vlgmr.msra.gmra.mxu0 %vm71_vm1, %v1841_v33  ;;  %v1838_v19 = vpack.c.bf16 %v1820_v5, %v1822_v30  ;;  %v1824_v36 = vsel %vm37_vm2, %v1819_v16, 0.0  ;;  %v1835_v24 = vsel %vm40_vm5, %v1831_v22, 0.0  ;;  %v1837_v28 = vsel %vm40_vm5, %v1833_v18, 0.0 }
 0x74d   :  { %7915 = vmatpush3.bf16.msra.mxu0 %v8827_v12  ;;  %v1839_v23 = vpack.c.bf16 %v1818_v15, %v1824_v36  ;;  %v1952_v17 = vpack.c.bf16 %v1835_v24, %v1832_v11  ;;  %v1953_v47 = vpack.c.bf16 %v1837_v28, %v1830_v27 }
 0x74e   :  { %7910 = vmatprep.mubr.msk.bf16.mxu1 %vm71_vm1, %v1838_v19  ;;  %8376 = vmatprep.subr.msk.bf16.mxu0 %vm78_vm0, %v9259_v20 }
 0x74f   :  { %7911 = vmatmul.mubr.msk.bf16.vlgmr.msra.gmra.mxu1 %vm71_vm1, %v1839_v23  ;;  %7916 = vmatprep.mubr.msk.bf16.mxu0 %vm71_vm1, %v1952_v17 }
 0x750   :  { %7921 = vmatpush3.bf16.msra.mxu1 %v8797_v4 }
 0x751   :  { %8377 = vmatprep.subr.msk.bf16.mxu1 %vm78_vm0, %v9273_v35 }
 0x754   :  { %7917 = vmatmul.mubr.msk.bf16.vlgmr.msra.gmra.mxu0 %vm71_vm1, %v1953_v47 }
 0x755   :  { %7927 = vmatpush3.bf16.msra.mxu0 %v8836_v14 }
 0x756   :  { %8378 = vmatprep.subr.msk.bf16.mxu0 %vm78_vm0, %v9282_v39 }
 0x80c   :  { %v7906_v31 = vpop.f32.mrf.mxu0 }
 0x80e   :  { %v1882_v49 = vpop.f32.mrf.mxu0 }
 0x80f   :  { %v7912_v32 = vpop.f32.mrf.mxu1 }
 0x810   :  { %v7907_v41 = vpop.f32.mrf.mxu0  ;;  %v1946_v38 = vadd.f32 %v7912_v32, %v7906_v31 }
 0x811   :  { %v1937_v34 = vpop.f32.mrf.mxu1 }
 0x812   :  { %v1885_v8 = vpop.f32.mrf.mxu0  ;;  %v1938_v55 = vadd.f32 %v1937_v34, %v1882_v49 }
 0x813   :  { %v7913_v10 = vpop.f32.mrf.mxu1 }
 0x814   :  { %v7918_v1 = vpop.f32.mrf.mxu0  ;;  %v1949_v44 = vadd.f32 %v7913_v10, %v7907_v41 }
 0x815   :  { %v2011_v0 = vadd.f32 %v7918_v1, %v1946_v38  ;;  %v1940_v26 = vpop.f32.mrf.mxu1 }
 0x816   :  { %v1994_v6 = vpop.f32.mrf.mxu0  ;;  %v1941_v50 = vadd.f32 %v1940_v26, %v1885_v8 }
 0x817   :  { %v2015_v43 = vadd.f32 %v2011_v0, %v8899_v48  ;;  %v2009_v45 = vadd.f32 %v1994_v6, %v1938_v55 }
 0x818   :  { %v7919_v46 = vpop.f32.mrf.mxu0 }
 0x819   :  { %8514 = vtanh.f32 %v2015_v43  ;;  %v2013_v51 = vadd.f32 %v2009_v45, %v8899_v48  ;;  %v2012_v7 = vadd.f32 %v7919_v46, %v1949_v44 }
 0x81a   :  { %v1997_v53 = vpop.f32.mrf.mxu0 }
 0x81b   :  { %8516 = vtanh.f32 %v2013_v51  ;;  %v2016_v54 = vadd.f32 %v2012_v7, %v8899_v48  ;;  %v2010_v57 = vadd.f32 %v1997_v53, %v1941_v50 }
 0x81d   :  { %8518 = vtanh.f32 %v2016_v54  ;;  %v2014_v58 = vadd.f32 %v2010_v57, %v8899_v48 }
 0x81f   :  { %8520 = vtanh.f32 %v2014_v58 }
 0x826   :  { %v9424_v61 = vpop.eup %8514 }
 0x827   :  { %v2023_v42 = vmul.f32 0.0625, %v9424_v61 }
 0x828   :  { %v9426_v62 = vpop.eup %8516 }
 0x829   :  { %v2021_v37 = vmul.f32 0.0625, %v9426_v62  ;;  %v2027_v63 = vadd.f32 %v2023_v42, %v9361_v60 }
 0x82a   :  { %v9430_v29 = vpop.eup %8518 }
 0x82b   :  { %v2024_v2 = vmul.f32 0.0625, %v9430_v29  ;;  %v2025_v40 = vadd.f32 %v2021_v37, %v9357_v56  ;;  %v2031_v16 = vrot.slane %v2027_v63, 7  ;;  %v2043_v17 = vrot.slane %v2027_v63, 1 }
 0x82c   :  { %v9434_v59 = vpop.eup %8520 }
 0x82d   :  { %v2022_v33 = vmul.f32 0.0625, %v9434_v59  ;;  %v2028_v30 = vadd.f32 %v2024_v2, %v9364_v25  ;;  %v2029_v9 = vrot.slane %v2025_v40, 7  ;;  %v2041_v22 = vrot.slane %v2025_v40, 1 }
 0x82f   :  { %v2026_v3 = vadd.f32 %v2022_v33, %v9367_v52  ;;  %v2032_v5 = vrot.slane %v2028_v30, 7  ;;  %v2044_v15 = vrot.slane %v2028_v30, 1  ;;  %v2056_v11 = vpack.c.bf16 %v2028_v30, %v2027_v63 }
 0x831   :  { %v2055_v18 = vpack.c.bf16 %v2026_v3, %v2025_v40  ;;  %v2030_v19 = vrot.slane %v2026_v3, 7  ;;  %v2036_v36 = vsel %vm45_vm3, %v2032_v5, %v2029_v9  ;;  %v2042_v24 = vrot.slane %v2026_v3, 1 }
 0x832   :  { %v2037_v23 = vsel %vm37_vm2, %v2036_v36, 0.0  ;;  %v2033_v28 = vsel %vm45_vm3, %v2031_v16, %v2032_v5  ;;  %v2048_v31 = vsel %vm58_vm4, %v2044_v15, %v2041_v22  ;;  %v2045_v1 = vsel %vm58_vm4, %v2043_v17, %v2044_v15 }
 0x833   :  { %7922 = vmatprep.mubr.msk.bf16.mxu1 %vm71_vm1, %v2055_v18  ;;  %v2035_v27 = vsel %vm45_vm3, %v2029_v9, %v2030_v19  ;;  %v2034_v47 = vsel %vm45_vm3, %v2030_v19, %v2031_v16  ;;  %v2046_v41 = vsel %vm58_vm4, %v2042_v24, %v2043_v17  ;;  %v2047_v34 = vsel %vm58_vm4, %v2041_v22, %v2042_v24 }
 0x834   :  { %7923 = vmatmul.mubr.msk.bf16.vlgmr.msra.gmra.mxu1 %vm71_vm1, %v2056_v11  ;;  %v2053_v49 = vpack.c.bf16 %v2035_v27, %v2037_v23  ;;  %v2039_v32 = vsel %vm37_vm2, %v2034_v47, 0.0  ;;  %v2050_v38 = vsel %vm40_vm5, %v2046_v41, 0.0  ;;  %v2052_v55 = vsel %vm40_vm5, %v2048_v31, 0.0 }
 0x835   :  { %7933 = vmatpush3.bf16.msra.mxu1 %v8827_v12  ;;  %v2054_v8 = vpack.c.bf16 %v2033_v28, %v2039_v32  ;;  %v2167_v10 = vpack.c.bf16 %v2050_v38, %v2047_v34  ;;  %v2168_v0 = vpack.c.bf16 %v2052_v55, %v2045_v1 }
 0x836   :  { %7928 = vmatprep.mubr.msk.bf16.mxu0 %vm71_vm1, %v2053_v49  ;;  %8379 = vmatprep.subr.msk.bf16.mxu1 %vm78_vm0, %v9259_v20 }
 0x837   :  { %7929 = vmatmul.mubr.msk.bf16.vlgmr.msra.gmra.mxu0 %vm71_vm1, %v2054_v8  ;;  %7934 = vmatprep.mubr.msk.bf16.mxu1 %vm71_vm1, %v2167_v10 }
 0x838   :  { %7939 = vmatpush3.bf16.msra.mxu0 %v8797_v4 }
 0x839   :  { %8380 = vmatprep.subr.msk.bf16.mxu0 %vm78_vm0, %v9273_v35 }
 0x83c   :  { %7935 = vmatmul.mubr.msk.bf16.vlgmr.msra.gmra.mxu1 %vm71_vm1, %v2168_v0 }
 0x83d   :  { %7945 = vmatpush3.bf16.msra.mxu1 %v8836_v14 }
 0x83e   :  { %8381 = vmatprep.subr.msk.bf16.mxu1 %vm78_vm0, %v9282_v39 }
 0x8f4   :  { %v7924_v26 = vpop.f32.mrf.mxu1 }
 0x8f6   :  { %v2097_v6 = vpop.f32.mrf.mxu1 }
 0x8f7   :  { %v7930_v44 = vpop.f32.mrf.mxu0 }
 0x8f8   :  { %v7925_v43 = vpop.f32.mrf.mxu1  ;;  %v2161_v50 = vadd.f32 %v7930_v44, %v7924_v26 }
 0x8f9   :  { %v2152_v45 = vpop.f32.mrf.mxu0 }
 0x8fa   :  { %v2100_v46 = vpop.f32.mrf.mxu1  ;;  %v2153_v53 = vadd.f32 %v2152_v45, %v2097_v6 }
 0x8fb   :  { %v7931_v51 = vpop.f32.mrf.mxu0 }
 0x8fc   :  { %v7936_v7 = vpop.f32.mrf.mxu1  ;;  %v2164_v42 = vadd.f32 %v7931_v51, %v7925_v43 }
 0x8fd   :  { %v2226_v54 = vadd.f32 %v7936_v7, %v2161_v50  ;;  %v2155_v57 = vpop.f32.mrf.mxu0 }
 0x8fe   :  { %v2209_v58 = vpop.f32.mrf.mxu1  ;;  %v2156_v63 = vadd.f32 %v2155_v57, %v2100_v46 }
 0x8ff   :  { %v2230_v37 = vadd.f32 %v2226_v54, %v8899_v48  ;;  %v2224_v2 = vadd.f32 %v2209_v58, %v2153_v53 }
 0x900   :  { %v7937_v40 = vpop.f32.mrf.mxu1 }
 0x901   :  { %8522 = vtanh.f32 %v2230_v37  ;;  %v2228_v33 = vadd.f32 %v2224_v2, %v8899_v48  ;;  %v2227_v30 = vadd.f32 %v7937_v40, %v2164_v42 }
 0x902   :  { %v2212_v3 = vpop.f32.mrf.mxu1 }
 0x903   :  { %8524 = vtanh.f32 %v2228_v33  ;;  %v2231_v9 = vadd.f32 %v2227_v30, %v8899_v48  ;;  %v2225_v5 = vadd.f32 %v2212_v3, %v2156_v63 }
 0x905   :  { %8526 = vtanh.f32 %v2231_v9  ;;  %v2229_v15 = vadd.f32 %v2225_v5, %v8899_v48 }
 0x907   :  { %8528 = vtanh.f32 %v2229_v15 }
 0x90e   :  { %v9483_v16 = vpop.eup %8522 }
 0x90f   :  { %v2238_v19 = vmul.f32 0.0625, %v9483_v16 }
 0x910   :  { %v9485_v18 = vpop.eup %8524 }
 0x911   :  { %v2236_v36 = vmul.f32 0.0625, %v9485_v18  ;;  %v2242_v17 = vadd.f32 %v2238_v19, %v9361_v60 }
 0x912   :  { %v9489_v22 = vpop.eup %8526 }
 0x913   :  { %v2239_v11 = vmul.f32 0.0625, %v9489_v22  ;;  %v2240_v23 = vadd.f32 %v2236_v36, %v9357_v56  ;;  %v2246_v32 = vrot.slane %v2242_v17, 7  ;;  %v2258_v26 = vrot.slane %v2242_v17, 1 }
 0x914   :  { %v9493_v24 = vpop.eup %8528 }
 0x915   :  { %v2237_v27 = vmul.f32 0.0625, %v9493_v24  ;;  %v2243_v28 = vadd.f32 %v2239_v11, %v9364_v25  ;;  %v2244_v31 = vrot.slane %v2240_v23, 7  ;;  %v2256_v10 = vrot.slane %v2240_v23, 1 }
 0x917   :  { %v2241_v47 = vadd.f32 %v2237_v27, %v9367_v52  ;;  %v2247_v49 = vrot.slane %v2243_v28, 7  ;;  %v2259_v41 = vrot.slane %v2243_v28, 1  ;;  %v2271_v1 = vpack.c.bf16 %v2243_v28, %v2242_v17 }
 0x919   :  { %v2270_v34 = vpack.c.bf16 %v2241_v47, %v2240_v23  ;;  %v2245_v8 = vrot.slane %v2241_v47, 7  ;;  %v2251_v38 = vsel %vm45_vm3, %v2247_v49, %v2244_v31  ;;  %v2257_v0 = vrot.slane %v2241_v47, 1 }
 0x91a   :  { %v2252_v55 = vsel %vm37_vm2, %v2251_v38, 0.0  ;;  %v2248_v44 = vsel %vm45_vm3, %v2246_v32, %v2247_v49  ;;  %v2263_v45 = vsel %vm58_vm4, %v2259_v41, %v2256_v10  ;;  %v2260_v58 = vsel %vm58_vm4, %v2258_v26, %v2259_v41 }
 0x91b   :  { %7940 = vmatprep.mubr.msk.bf16.mxu0 %vm71_vm1, %v2270_v34  ;;  %v2250_v6 = vsel %vm45_vm3, %v2244_v31, %v2245_v8  ;;  %v2249_v43 = vsel %vm45_vm3, %v2245_v8, %v2246_v32  ;;  %v2261_v51 = vsel %vm58_vm4, %v2257_v0, %v2258_v26  ;;  %v2262_v7 = vsel %vm58_vm4, %v2256_v10, %v2257_v0 }
 0x91c   :  { %7941 = vmatmul.mubr.msk.bf16.vlgmr.msra.gmra.mxu0 %vm71_vm1, %v2271_v1  ;;  %v2268_v46 = vpack.c.bf16 %v2250_v6, %v2252_v55  ;;  %v2254_v50 = vsel %vm37_vm2, %v2249_v43, 0.0  ;;  %v2265_v54 = vsel %vm40_vm5, %v2261_v51, 0.0  ;;  %v2267_v42 = vsel %vm40_vm5, %v2263_v45, 0.0 }
 0x91d   :  { %7951 = vmatpush3.bf16.msra.mxu0 %v8827_v12  ;;  %v2269_v53 = vpack.c.bf16 %v2248_v44, %v2254_v50  ;;  %v2382_v57 = vpack.c.bf16 %v2265_v54, %v2262_v7  ;;  %v2383_v37 = vpack.c.bf16 %v2267_v42, %v2260_v58  ;;  %v2668_v10 = vmul.f32 2.0, %v9483_v16 }
 0x91e   :  { %7946 = vmatprep.mubr.msk.bf16.mxu1 %vm71_vm1, %v2268_v46  ;;  %8382 = vmatprep.subr.msk.bf16.mxu0 %vm78_vm0, %v9259_v20  ;;  %v2666_v55 = vmul.f32 2.0, %v9485_v18  ;;  %v2669_v44 = vmul.f32 2.0, %v9489_v22 }
 0x91f   :  { %7947 = vmatmul.mubr.msk.bf16.vlgmr.msra.gmra.mxu1 %vm71_vm1, %v2269_v53  ;;  %7952 = vmatprep.mubr.msk.bf16.mxu0 %vm71_vm1, %v2382_v57  ;;  %v2672_v0 = vadd.f32 %v9424_v61, %v2668_v10  ;;  %v2667_v53 = vmul.f32 2.0, %v9493_v24 }
 0x920   :  { %7957 = vmatpush3.bf16.msra.mxu1 %v8797_v4  ;;  %v2670_v7 = vadd.f32 %v9426_v62, %v2666_v55  ;;  %v2673_v61 = vadd.f32 %v9430_v29, %v2669_v44 }
 0x921   :  { %8383 = vmatprep.subr.msk.bf16.mxu1 %vm78_vm0, %v9273_v35 }
 0x924   :  { %7953 = vmatmul.mubr.msk.bf16.vlgmr.msra.gmra.mxu0 %vm71_vm1, %v2383_v37 }
 0x925   :  { %7963 = vmatpush3.bf16.msra.mxu0 %v8836_v14 }
 0x926   :  { %8384 = vmatprep.subr.msk.bf16.mxu0 %vm78_vm0, %v9282_v39 }
 0x9dc   :  { %v7942_v2 = vpop.f32.mrf.mxu0 }
 0x9de   :  { %v2312_v40 = vpop.f32.mrf.mxu0 }
 0x9df   :  { %v7948_v63 = vpop.f32.mrf.mxu1 }
 0x9e0   :  { %v7943_v33 = vpop.f32.mrf.mxu0  ;;  %v2376_v9 = vadd.f32 %v7948_v63, %v7942_v2 }
 0x9e1   :  { %v2367_v30 = vpop.f32.mrf.mxu1 }
 0x9e2   :  { %v2315_v3 = vpop.f32.mrf.mxu0  ;;  %v2368_v19 = vadd.f32 %v2367_v30, %v2312_v40  ;;  %v2671_v40 = vadd.f32 %v9434_v59, %v2667_v53 }
 0x9e3   :  { %v7949_v5 = vpop.f32.mrf.mxu1 }
 0x9e4   :  { %v7954_v15 = vpop.f32.mrf.mxu0  ;;  %v2379_v17 = vadd.f32 %v7949_v5, %v7943_v33 }
 0x9e5   :  { %v2441_v36 = vadd.f32 %v7954_v15, %v2376_v9  ;;  %v2370_v11 = vpop.f32.mrf.mxu1 }
 0x9e6   :  { %v2424_v23 = vpop.f32.mrf.mxu0  ;;  %v2371_v31 = vadd.f32 %v2370_v11, %v2315_v3 }
 0x9e7   :  { %v2445_v27 = vadd.f32 %v2441_v36, %v8899_v48  ;;  %v2439_v28 = vadd.f32 %v2424_v23, %v2368_v19 }
 0x9e8   :  { %v7955_v47 = vpop.f32.mrf.mxu0 }
 0x9e9   :  { %8530 = vtanh.f32 %v2445_v27  ;;  %v2443_v49 = vadd.f32 %v2439_v28, %v8899_v48  ;;  %v2442_v32 = vadd.f32 %v7955_v47, %v2379_v17 }
 0x9ea   :  { %v2427_v41 = vpop.f32.mrf.mxu0 }
 0x9eb   :  { %8532 = vtanh.f32 %v2443_v49  ;;  %v2446_v34 = vadd.f32 %v2442_v32, %v8899_v48  ;;  %v2440_v8 = vadd.f32 %v2427_v41, %v2371_v31 }
 0x9ed   :  { %8534 = vtanh.f32 %v2446_v34  ;;  %v2444_v38 = vadd.f32 %v2440_v8, %v8899_v48 }
 0x9ef   :  { %8536 = vtanh.f32 %v2444_v38 }
 0x9f6   :  { %v8531_v1 = vpop.eup %8530 }
 0x9f7   :  { %v2676_v26 = vmul.f32 2.0, %v8531_v1  ;;  %v2453_v43 = vmul.f32 0.125, %v8531_v1 }
 0x9f8   :  { %v8533_v6 = vpop.eup %8532 }
 0x9f9   :  { %v2674_v45 = vmul.f32 2.0, %v8533_v6  ;;  %v2451_v46 = vmul.f32 0.125, %v8533_v6  ;;  %v9546_v50 = vadd.f32 %v2676_v26, %v2672_v0  ;;  %v2457_v58 = vadd.f32 %v2453_v43, %v9361_v60 }
 0x9fa   :  { %v8535_v51 = vpop.eup %8534 }
 0x9fb   :  { %v2454_v16 = vmul.f32 0.125, %v8535_v51  ;;  %v2677_v54 = vmul.f32 2.0, %v8535_v51  ;;  %v2455_v18 = vadd.f32 %v2451_v46, %v9357_v56  ;;  %v9553_v22 = vadd.f32 %v2674_v45, %v2670_v7 }
 0x9fc   :  { %v8537_v57 = vpop.eup %8536  ;;  %v2461_v3 = vrot.slane %v2457_v58, 7  ;;  %v2473_v23 = vrot.slane %v2457_v58, 1 }
 0x9fd   :  { %v2675_v42 = vmul.f32 2.0, %v8537_v57  ;;  %v2452_v37 = vmul.f32 0.125, %v8537_v57  ;;  %v2458_v2 = vadd.f32 %v2454_v16, %v9364_v25  ;;  %v9557_v62 = vadd.f32 %v2677_v54, %v2673_v61 }
 0x9fe   :  { %v2459_v63 = vrot.slane %v2455_v18, 7  ;;  %v2471_v19 = vrot.slane %v2455_v18, 1 }
 0x9ff   :  { %v2456_v24 = vadd.f32 %v2452_v37, %v9367_v52  ;;  %v2462_v33 = vrot.slane %v2458_v2, 7  ;;  %v2474_v30 = vrot.slane %v2458_v2, 1  ;;  %v9560_v9 = vadd.f32 %v2675_v42, %v2671_v40 }
 0xa00   :  { %v2486_v36 = vpack.c.bf16 %v2458_v2, %v2457_v58 }
 0xa01   :  { %v2485_v29 = vpack.c.bf16 %v2456_v24, %v2455_v18  ;;  %v2460_v5 = vrot.slane %v2456_v24, 7  ;;  %v2466_v15 = vsel %vm45_vm3, %v2462_v33, %v2459_v63  ;;  %v2472_v11 = vrot.slane %v2456_v24, 1 }
 0xa02   :  { %v2467_v59 = vsel %vm37_vm2, %v2466_v15, 0.0  ;;  %v2463_v27 = vsel %vm45_vm3, %v2461_v3, %v2462_v33  ;;  %v2478_v47 = vsel %vm58_vm4, %v2474_v30, %v2471_v19  ;;  %v2475_v10 = vsel %vm58_vm4, %v2473_v23, %v2474_v30 }
 0xa03   :  { %7958 = vmatprep.mubr.msk.bf16.mxu1 %vm71_vm1, %v2485_v29  ;;  %v2465_v17 = vsel %vm45_vm3, %v2459_v63, %v2460_v5  ;;  %v2464_v28 = vsel %vm45_vm3, %v2460_v5, %v2461_v3  ;;  %v2476_v32 = vsel %vm58_vm4, %v2472_v11, %v2473_v23  ;;  %v2477_v41 = vsel %vm58_vm4, %v2471_v19, %v2472_v11 }
 0xa04   :  { %7959 = vmatmul.mubr.msk.bf16.vlgmr.msra.gmra.mxu1 %vm71_vm1, %v2486_v36  ;;  %v2483_v31 = vpack.c.bf16 %v2465_v17, %v2467_v59  ;;  %v2469_v49 = vsel %vm37_vm2, %v2464_v28, 0.0  ;;  %v2480_v8 = vsel %vm40_vm5, %v2476_v32, 0.0  ;;  %v2482_v1 = vsel %vm40_vm5, %v2478_v47, 0.0 }
 0xa05   :  { %7969 = vmatpush3.bf16.msra.mxu1 %v8827_v12  ;;  %v2484_v34 = vpack.c.bf16 %v2463_v27, %v2469_v49  ;;  %v2597_v38 = vpack.c.bf16 %v2480_v8, %v2477_v41  ;;  %v2598_v55 = vpack.c.bf16 %v2482_v1, %v2475_v10 }
 0xa06   :  { %7964 = vmatprep.mubr.msk.bf16.mxu0 %vm71_vm1, %v2483_v31  ;;  %8385 = vmatprep.subr.msk.bf16.mxu1 %vm78_vm0, %v9259_v20 }
 0xa07   :  { %7965 = vmatmul.mubr.msk.bf16.vlgmr.msra.gmra.mxu0 %vm71_vm1, %v2484_v34  ;;  %7970 = vmatprep.mubr.msk.bf16.mxu1 %vm71_vm1, %v2597_v38 }
 0xa08   :  { %7975 = vmatpush3.bf16.msra.mxu0 %v8797_v4 }
 0xa09   :  { %8386 = vmatprep.subr.msk.bf16.mxu0 %vm78_vm0, %v9273_v35 }
 0xa0c   :  { %7971 = vmatmul.mubr.msk.bf16.vlgmr.msra.gmra.mxu1 %vm71_vm1, %v2598_v55 }
 0xa0d   :  { %7981 = vmatpush3.bf16.msra.mxu1 %v8836_v14 }
 0xa0e   :  { %8387 = vmatprep.subr.msk.bf16.mxu1 %vm78_vm0, %v9282_v39 }
 0xac4   :  { %v7960_v0 = vpop.f32.mrf.mxu1 }
 0xac6   :  { %v2527_v26 = vpop.f32.mrf.mxu1 }
 0xac7   :  { %v7966_v6 = vpop.f32.mrf.mxu0 }
 0xac8   :  { %v7961_v44 = vpop.f32.mrf.mxu1  ;;  %v2591_v46 = vadd.f32 %v7966_v6, %v7960_v0 }
 0xac9   :  { %v2582_v43 = vpop.f32.mrf.mxu0 }
 0xaca   :  { %v2530_v45 = vpop.f32.mrf.mxu1  ;;  %v2583_v53 = vadd.f32 %v2582_v43, %v2527_v26 }
 0xacb   :  { %v7967_v51 = vpop.f32.mrf.mxu0 }
 0xacc   :  { %v7972_v7 = vpop.f32.mrf.mxu1  ;;  %v2594_v57 = vadd.f32 %v7967_v51, %v7961_v44 }
 0xacd   :  { %v2656_v16 = vadd.f32 %v7972_v7, %v2591_v46  ;;  %v2585_v54 = vpop.f32.mrf.mxu0 }
 0xace   :  { %v2639_v18 = vpop.f32.mrf.mxu1  ;;  %v2586_v37 = vadd.f32 %v2585_v54, %v2530_v45 }
 0xacf   :  { %v2660_v61 = vadd.f32 %v2656_v16, %v8899_v48  ;;  %v2654_v58 = vadd.f32 %v2639_v18, %v2583_v53 }
 0xad0   :  { %v7973_v42 = vpop.f32.mrf.mxu1 }
 0xad1   :  { %8538 = vtanh.f32 %v2660_v61  ;;  %v2658_v2 = vadd.f32 %v2654_v58, %v8899_v48  ;;  %v2657_v40 = vadd.f32 %v7973_v42, %v2594_v57 }
 0xad2   :  { %v2642_v24 = vpop.f32.mrf.mxu1 }
 0xad3   :  { %8540 = vtanh.f32 %v2658_v2  ;;  %v2661_v63 = vadd.f32 %v2657_v40, %v8899_v48  ;;  %v2655_v33 = vadd.f32 %v2642_v24, %v2586_v37 }
 0xad5   :  { %8542 = vtanh.f32 %v2661_v63  ;;  %v2659_v30 = vadd.f32 %v2655_v33, %v8899_v48 }
 0xad7   :  { %8544 = vtanh.f32 %v2659_v30 }
 0xade   :  { %v8539_v3 = vpop.eup %8538 }
 0xadf   :  { %v2684_v29 = vadd.f32 %v8539_v3, %v9546_v50 }
 0xae0   :  { %v8541_v5 = vpop.eup %8540 }
 0xae1   :  { %v2682_v15 = vadd.f32 %v8541_v5, %v9553_v22  ;;  %v2688_v36 = vmul.f32 0.020833334, %v2684_v29 }
 0xae2   :  { %v8543_v19 = vpop.eup %8542 }
 0xae3   :  { %v2686_v59 = vmul.f32 0.020833334, %v2682_v15  ;;  %v2685_v11 = vadd.f32 %v8543_v19, %v9557_v62  ;;  %v9613_v47 = vadd.f32 %v2688_v36, %v9361_v60 }
 0xae4   :  { %v8545_v23 = vpop.eup %8544 }
 0xae5   :  { %v9609_v17 = vadd.f32 %v2686_v59, %v9357_v56  ;;  %v2689_v27 = vmul.f32 0.020833334, %v2685_v11  ;;  %v2683_v28 = vadd.f32 %v8545_v23, %v9560_v9  ;;  %v2696_v32 = vrot.slane %v9613_v47, 7 }
 0xae6   :  { %v2708_v38 = vrot.slane %v9613_v47, 1 }
 0xae7   :  { %v9616_v50 = vadd.f32 %v2689_v27, %v9364_v25  ;;  %v2687_v31 = vmul.f32 0.020833334, %v2683_v28  ;;  %v2694_v49 = vrot.slane %v9609_v17, 7  ;;  %v2706_v41 = vrot.slane %v9609_v17, 1 }
 0xae9   :  { %v9619_v22 = vadd.f32 %v2687_v31, %v9367_v52  ;;  %v2697_v62 = vrot.slane %v9616_v50, 7  ;;  %v2709_v56 = vrot.slane %v9616_v50, 1  ;;  %v2721_v52 = vpack.c.bf16 %v9616_v50, %v9613_v47 }
 0xaeb   :  { %v2720_v9 = vpack.c.bf16 %v9619_v22, %v9609_v17  ;;  %v2695_v60 = vrot.slane %v9619_v22, 7  ;;  %v2701_v25 = vsel %vm45_vm3, %v2697_v62, %v2694_v49  ;;  %v2707_v8 = vrot.slane %v9619_v22, 1 }
 0xaec   :  { %v2702_v34 = vsel %vm37_vm2, %v2701_v25, 0.0  ;;  %v2698_v1 = vsel %vm45_vm3, %v2696_v32, %v2697_v62  ;;  %v2713_v0 = vsel %vm58_vm4, %v2709_v56, %v2706_v41  ;;  %v2710_v7 = vsel %vm58_vm4, %v2708_v38, %v2709_v56 }
 0xaed   :  { %7976 = vmatprep.mubr.msk.bf16.mxu0 %vm71_vm1, %v2720_v9  ;;  %v2700_v10 = vsel %vm45_vm3, %v2694_v49, %v2695_v60  ;;  %v2699_v55 = vsel %vm45_vm3, %v2695_v60, %v2696_v32  ;;  %v2711_v44 = vsel %vm58_vm4, %v2707_v8, %v2708_v38  ;;  %v2712_v43 = vsel %vm58_vm4, %v2706_v41, %v2707_v8 }
 0xaee   :  { %7977 = vmatmul.mubr.msk.bf16.vlgmr.msra.gmra.mxu0 %vm71_vm1, %v2721_v52  ;;  %v2718_v26 = vpack.c.bf16 %v2700_v10, %v2702_v34  ;;  %v2704_v6 = vsel %vm37_vm2, %v2699_v55, 0.0  ;;  %v2715_v46 = vsel %vm40_vm5, %v2711_v44, 0.0  ;;  %v2717_v53 = vsel %vm40_vm5, %v2713_v0, 0.0 }
 0xaef   :  { %7987 = vmatpush3.bf16.msra.mxu0 %v8827_v12  ;;  %v2719_v45 = vpack.c.bf16 %v2698_v1, %v2704_v6  ;;  %v2832_v51 = vpack.c.bf16 %v2715_v46, %v2712_v43  ;;  %v2833_v16 = vpack.c.bf16 %v2717_v53, %v2710_v7 }
 0xaf0   :  { %7982 = vmatprep.mubr.msk.bf16.mxu1 %vm71_vm1, %v2718_v26  ;;  %8388 = vmatprep.subr.msk.bf16.mxu0 %vm78_vm0, %v9259_v20 }
 0xaf1   :  { %7983 = vmatmul.mubr.msk.bf16.vlgmr.msra.gmra.mxu1 %vm71_vm1, %v2719_v45  ;;  %7988 = vmatprep.mubr.msk.bf16.mxu0 %vm71_vm1, %v2832_v51 }
 0xaf2   :  { %7993 = vmatpush3.bf16.msra.mxu1 %v8797_v4 }
 0xaf3   :  { %8389 = vmatprep.subr.msk.bf16.mxu1 %vm78_vm0, %v9273_v35 }
 0xaf6   :  { %7989 = vmatmul.mubr.msk.bf16.vlgmr.msra.gmra.mxu0 %vm71_vm1, %v2833_v16 }
 0xaf7   :  { %7999 = vmatpush3.bf16.msra.mxu0 %v8836_v14 }
 0xaf8   :  { %8390 = vmatprep.subr.msk.bf16.mxu0 %vm78_vm0, %v9282_v39 }
 0xbae   :  { %v7978_v20 = vpop.f32.mrf.mxu0 }
 0xbb0   :  { %v2762_v54 = vpop.f32.mrf.mxu0 }
 0xbb1   :  { %v7984_v18 = vpop.f32.mrf.mxu1 }
 0xbb2   :  { %v7979_v57 = vpop.f32.mrf.mxu0  ;;  %v2826_v42 = vadd.f32 %v7984_v18, %v7978_v20 }
 0xbb3   :  { %v2817_v61 = vpop.f32.mrf.mxu1 }
 0xbb4   :  { %v2765_v58 = vpop.f32.mrf.mxu0  ;;  %v2818_v40 = vadd.f32 %v2817_v61, %v2762_v54 }
 0xbb5   :  { %v7985_v37 = vpop.f32.mrf.mxu1 }
 0xbb6   :  { %v7990_v2 = vpop.f32.mrf.mxu0  ;;  %v2829_v33 = vadd.f32 %v7985_v37, %v7979_v57 }
 0xbb7   :  { %v2891_v24 = vadd.f32 %v7990_v2, %v2826_v42  ;;  %v2820_v35 = vpop.f32.mrf.mxu1  ;;  %v9733_v2 = vld [vmem:[%s10942_s1 + $0x4] sm:$0x3] }
 0xbb8   :  { %v2874_v63 = vpop.f32.mrf.mxu0  ;;  %v2821_v39 = vadd.f32 %v2820_v35, %v2765_v58  ;;  %v9719_v58 = vld [vmem:[%s10942_s1] sm:$0x3] }
 0xbb9   :  { %v2895_v30 = vadd.f32 %v2891_v24, %v8899_v48  ;;  %v2889_v3 = vadd.f32 %v2874_v63, %v2818_v40  ;;  %v9742_v24 = vld [vmem:[%s10942_s1 + $0x2] sm:$0x3] }
 0xbba   :  { %v7991_v29 = vpop.f32.mrf.mxu0 }
 0xbbb   :  { %8546 = vtanh.f32 %v2895_v30  ;;  %v2893_v5 = vadd.f32 %v2889_v3, %v8899_v48  ;;  %v2892_v15 = vadd.f32 %v7991_v29, %v2829_v33 }
 0xbbc   :  { %v2877_v19 = vpop.f32.mrf.mxu0 }
 0xbbd   :  { %8548 = vtanh.f32 %v2893_v5  ;;  %v2896_v36 = vadd.f32 %v2892_v15, %v8899_v48  ;;  %v2890_v59 = vadd.f32 %v2877_v19, %v2821_v39 }
 0xbbf   :  { %8550 = vtanh.f32 %v2896_v36  ;;  %v2894_v11 = vadd.f32 %v2890_v59, %v8899_v48 }
 0xbc1   :  { %8552 = vtanh.f32 %v2894_v11 }
 0xbc8   :  { %v9676_v23 = vpop.eup %8546 }
 0xbc9   :  { %v2903_v28 = vmul.f32 0.0625, %v9676_v23 }
 0xbca   :  { %v9678_v27 = vpop.eup %8548 }
 0xbcb   :  { %v2901_v31 = vmul.f32 0.0625, %v9678_v27  ;;  %v2907_v9 = vadd.f32 %v2903_v28, %v9613_v47 }
 0xbcc   :  { %v9682_v49 = vpop.eup %8550 }
 0xbcd   :  { %v2904_v62 = vmul.f32 0.0625, %v9682_v49  ;;  %v2905_v56 = vadd.f32 %v2901_v31, %v9609_v17  ;;  %v2911_v38 = vrot.slane %v2907_v9, 7  ;;  %v2923_v43 = vrot.slane %v2907_v9, 1 }
 0xbce   :  { %v9686_v32 = vpop.eup %8552 }
 0xbcf   :  { %v2902_v60 = vmul.f32 0.0625, %v9686_v32  ;;  %v2908_v25 = vadd.f32 %v2904_v62, %v9616_v50  ;;  %v2909_v52 = vrot.slane %v2905_v56, 7  ;;  %v2921_v0 = vrot.slane %v2905_v56, 1 }
 0xbd1   :  { %v2906_v41 = vadd.f32 %v2902_v60, %v9619_v22  ;;  %v2912_v34 = vrot.slane %v2908_v25, 7  ;;  %v2924_v8 = vrot.slane %v2908_v25, 1  ;;  %v2936_v26 = vpack.c.bf16 %v2908_v25, %v2907_v9 }
 0xbd3   :  { %v2935_v10 = vpack.c.bf16 %v2906_v41, %v2905_v56  ;;  %v2910_v1 = vrot.slane %v2906_v41, 7  ;;  %v2916_v55 = vsel %vm45_vm3, %v2912_v34, %v2909_v52  ;;  %v2922_v44 = vrot.slane %v2906_v41, 1 }
 0xbd4   :  { %v2917_v6 = vsel %vm37_vm2, %v2916_v55, 0.0  ;;  %v2913_v46 = vsel %vm45_vm3, %v2911_v38, %v2912_v34  ;;  %v2928_v7 = vsel %vm58_vm4, %v2924_v8, %v2921_v0  ;;  %v2925_v42 = vsel %vm58_vm4, %v2923_v43, %v2924_v8 }
 0xbd5   :  { %7994 = vmatprep.mubr.msk.bf16.mxu1 %vm71_vm1, %v2935_v10  ;;  %v2915_v45 = vsel %vm45_vm3, %v2909_v52, %v2910_v1  ;;  %v2914_v51 = vsel %vm45_vm3, %v2910_v1, %v2911_v38  ;;  %v2926_v20 = vsel %vm58_vm4, %v2922_v44, %v2923_v43  ;;  %v2927_v54 = vsel %vm58_vm4, %v2921_v0, %v2922_v44 }
 0xbd6   :  { %7995 = vmatmul.mubr.msk.bf16.vlgmr.msra.gmra.mxu1 %vm71_vm1, %v2936_v26  ;;  %v2933_v53 = vpack.c.bf16 %v2915_v45, %v2917_v6  ;;  %v2919_v16 = vsel %vm37_vm2, %v2914_v51, 0.0  ;;  %v2930_v57 = vsel %vm40_vm5, %v2926_v20, 0.0  ;;  %v2932_v37 = vsel %vm40_vm5, %v2928_v7, 0.0 }
 0xbd7   :  { %8005 = vmatpush3.bf16.msra.mxu1 %v8827_v12  ;;  %v2934_v18 = vpack.c.bf16 %v2913_v46, %v2919_v16  ;;  %v3047_v61 = vpack.c.bf16 %v2930_v57, %v2927_v54  ;;  %v3048_v40 = vpack.c.bf16 %v2932_v37, %v2925_v42 }
 0xbd8   :  { %8000 = vmatprep.mubr.msk.bf16.mxu0 %vm71_vm1, %v2933_v53  ;;  %8391 = vmatprep.subr.msk.bf16.mxu1 %vm78_vm0, %v9719_v58 }
 0xbd9   :  { %8001 = vmatmul.mubr.msk.bf16.vlgmr.msra.gmra.mxu0 %vm71_vm1, %v2934_v18  ;;  %8006 = vmatprep.mubr.msk.bf16.mxu1 %vm71_vm1, %v3047_v61 }
 0xbda   :  { %8011 = vmatpush3.bf16.msra.mxu0 %v8797_v4 }
 0xbdb   :  { %8392 = vmatprep.subr.msk.bf16.mxu0 %vm78_vm0, %v9733_v2 }
 0xbde   :  { %8007 = vmatmul.mubr.msk.bf16.vlgmr.msra.gmra.mxu1 %vm71_vm1, %v3048_v40 }
 0xbdf   :  { %8017 = vmatpush3.bf16.msra.mxu1 %v8836_v14 }
 0xbe0   :  { %8393 = vmatprep.subr.msk.bf16.mxu1 %vm78_vm0, %v9742_v24 }
 0xc96   :  { %v7996_v35 = vpop.f32.mrf.mxu1 }
 0xc98   :  { %v2977_v63 = vpop.f32.mrf.mxu1 }
 0xc99   :  { %v8002_v33 = vpop.f32.mrf.mxu0 }
 0xc9a   :  { %v7997_v30 = vpop.f32.mrf.mxu1  ;;  %v3041_v39 = vadd.f32 %v8002_v33, %v7996_v35 }
 0xc9b   :  { %v3032_v3 = vpop.f32.mrf.mxu0 }
 0xc9c   :  { %v2980_v29 = vpop.f32.mrf.mxu1  ;;  %v3033_v19 = vadd.f32 %v3032_v3, %v2977_v63 }
 0xc9d   :  { %v8003_v5 = vpop.f32.mrf.mxu0 }
 0xc9e   :  { %v8008_v15 = vpop.f32.mrf.mxu1  ;;  %v3044_v28 = vadd.f32 %v8003_v5, %v7997_v30 }
 0xc9f   :  { %v3106_v36 = vadd.f32 %v8008_v15, %v3041_v39  ;;  %v3035_v59 = vpop.f32.mrf.mxu0 }
 0xca0   :  { %v3089_v11 = vpop.f32.mrf.mxu1  ;;  %v3036_v9 = vadd.f32 %v3035_v59, %v2980_v29 }
 0xca1   :  { %v3110_v31 = vadd.f32 %v3106_v36, %v8899_v48  ;;  %v3104_v62 = vadd.f32 %v3089_v11, %v3033_v19 }
 0xca2   :  { %v8009_v56 = vpop.f32.mrf.mxu1 }
 0xca3   :  { %8554 = vtanh.f32 %v3110_v31  ;;  %v3108_v60 = vadd.f32 %v3104_v62, %v8899_v48  ;;  %v3107_v25 = vadd.f32 %v8009_v56, %v3044_v28 }
 0xca4   :  { %v3092_v41 = vpop.f32.mrf.mxu1 }
 0xca5   :  { %8556 = vtanh.f32 %v3108_v60  ;;  %v3111_v52 = vadd.f32 %v3107_v25, %v8899_v48  ;;  %v3105_v34 = vadd.f32 %v3092_v41, %v3036_v9 }
 0xca7   :  { %8558 = vtanh.f32 %v3111_v52  ;;  %v3109_v8 = vadd.f32 %v3105_v34, %v8899_v48 }
 0xca9   :  { %8560 = vtanh.f32 %v3109_v8 }
 0xcb0   :  { %v9750_v38 = vpop.eup %8554 }
 0xcb1   :  { %v3118_v1 = vmul.f32 0.0625, %v9750_v38 }
 0xcb2   :  { %v9752_v10 = vpop.eup %8556 }
 0xcb3   :  { %v3116_v55 = vmul.f32 0.0625, %v9752_v10  ;;  %v3122_v43 = vadd.f32 %v3118_v1, %v9613_v47 }
 0xcb4   :  { %v9756_v0 = vpop.eup %8558 }
 0xcb5   :  { %v3119_v26 = vmul.f32 0.0625, %v9756_v0  ;;  %v3120_v6 = vadd.f32 %v3116_v55, %v9609_v17  ;;  %v3126_v16 = vrot.slane %v3122_v43, 7  ;;  %v3138_v35 = vrot.slane %v3122_v43, 1 }
 0xcb6   :  { %v9760_v44 = vpop.eup %8560 }
 0xcb7   :  { %v3117_v45 = vmul.f32 0.0625, %v9760_v44  ;;  %v3123_v46 = vadd.f32 %v3119_v26, %v9616_v50  ;;  %v3124_v7 = vrot.slane %v3120_v6, 7  ;;  %v3136_v61 = vrot.slane %v3120_v6, 1 }
 0xcb9   :  { %v3121_v51 = vadd.f32 %v3117_v45, %v9619_v22  ;;  %v3127_v53 = vrot.slane %v3123_v46, 7  ;;  %v3139_v20 = vrot.slane %v3123_v46, 1  ;;  %v3151_v42 = vpack.c.bf16 %v3123_v46, %v3122_v43 }
 0xcbb   :  { %v3150_v54 = vpack.c.bf16 %v3121_v51, %v3120_v6  ;;  %v3125_v18 = vrot.slane %v3121_v51, 7  ;;  %v3131_v57 = vsel %vm45_vm3, %v3127_v53, %v3124_v7  ;;  %v3137_v40 = vrot.slane %v3121_v51, 1 }
 0xcbc   :  { %v3132_v37 = vsel %vm37_vm2, %v3131_v57, 0.0  ;;  %v3128_v33 = vsel %vm45_vm3, %v3126_v16, %v3127_v53  ;;  %v3143_v3 = vsel %vm58_vm4, %v3139_v20, %v3136_v61  ;;  %v3140_v11 = vsel %vm58_vm4, %v3138_v35, %v3139_v20 }
 0xcbd   :  { %8012 = vmatprep.mubr.msk.bf16.mxu0 %vm71_vm1, %v3150_v54  ;;  %v3130_v63 = vsel %vm45_vm3, %v3124_v7, %v3125_v18  ;;  %v3129_v30 = vsel %vm45_vm3, %v3125_v18, %v3126_v16  ;;  %v3141_v5 = vsel %vm58_vm4, %v3137_v40, %v3138_v35  ;;  %v3142_v15 = vsel %vm58_vm4, %v3136_v61, %v3137_v40 }
 0xcbe   :  { %8013 = vmatmul.mubr.msk.bf16.vlgmr.msra.gmra.mxu0 %vm71_vm1, %v3151_v42  ;;  %v3148_v29 = vpack.c.bf16 %v3130_v63, %v3132_v37  ;;  %v3134_v39 = vsel %vm37_vm2, %v3129_v30, 0.0  ;;  %v3145_v36 = vsel %vm40_vm5, %v3141_v5, 0.0  ;;  %v3147_v28 = vsel %vm40_vm5, %v3143_v3, 0.0 }
 0xcbf   :  { %8023 = vmatpush3.bf16.msra.mxu0 %v8827_v12  ;;  %v3149_v19 = vpack.c.bf16 %v3128_v33, %v3134_v39  ;;  %v3262_v59 = vpack.c.bf16 %v3145_v36, %v3142_v15  ;;  %v3263_v31 = vpack.c.bf16 %v3147_v28, %v3140_v11  ;;  %v3548_v61 = vmul.f32 2.0, %v9750_v38 }
 0xcc0   :  { %8018 = vmatprep.mubr.msk.bf16.mxu1 %vm71_vm1, %v3148_v29  ;;  %8394 = vmatprep.subr.msk.bf16.mxu0 %vm78_vm0, %v9719_v58  ;;  %v3546_v37 = vmul.f32 2.0, %v9752_v10  ;;  %v3549_v33 = vmul.f32 2.0, %v9756_v0 }
 0xcc1   :  { %8019 = vmatmul.mubr.msk.bf16.vlgmr.msra.gmra.mxu1 %vm71_vm1, %v3149_v19  ;;  %8024 = vmatprep.mubr.msk.bf16.mxu0 %vm71_vm1, %v3262_v59  ;;  %v3552_v40 = vadd.f32 %v9676_v23, %v3548_v61  ;;  %v3547_v19 = vmul.f32 2.0, %v9760_v44 }
 0xcc2   :  { %8029 = vmatpush3.bf16.msra.mxu1 %v8797_v4  ;;  %v3550_v15 = vadd.f32 %v9678_v27, %v3546_v37  ;;  %v3553_v23 = vadd.f32 %v9682_v49, %v3549_v33 }
 0xcc3   :  { %8395 = vmatprep.subr.msk.bf16.mxu1 %vm78_vm0, %v9733_v2 }
 0xcc6   :  { %8025 = vmatmul.mubr.msk.bf16.vlgmr.msra.gmra.mxu0 %vm71_vm1, %v3263_v31 }
 0xcc7   :  { %8035 = vmatpush3.bf16.msra.mxu0 %v8836_v14 }
 0xcc8   :  { %8396 = vmatprep.subr.msk.bf16.mxu0 %vm78_vm0, %v9742_v24 }
 0xd7e   :  { %v8014_v62 = vpop.f32.mrf.mxu0 }
 0xd80   :  { %v3192_v56 = vpop.f32.mrf.mxu0 }
 0xd81   :  { %v8020_v9 = vpop.f32.mrf.mxu1 }
 0xd82   :  { %v8015_v60 = vpop.f32.mrf.mxu0  ;;  %v3256_v52 = vadd.f32 %v8020_v9, %v8014_v62 }
 0xd83   :  { %v3247_v25 = vpop.f32.mrf.mxu1 }
 0xd84   :  { %v3195_v41 = vpop.f32.mrf.mxu0  ;;  %v3248_v1 = vadd.f32 %v3247_v25, %v3192_v56  ;;  %v3551_v56 = vadd.f32 %v9686_v32, %v3547_v19 }
 0xd85   :  { %v8021_v34 = vpop.f32.mrf.mxu1 }
 0xd86   :  { %v8026_v8 = vpop.f32.mrf.mxu0  ;;  %v3259_v43 = vadd.f32 %v8021_v34, %v8015_v60 }
 0xd87   :  { %v3321_v55 = vadd.f32 %v8026_v8, %v3256_v52  ;;  %v3250_v26 = vpop.f32.mrf.mxu1 }
 0xd88   :  { %v3304_v6 = vpop.f32.mrf.mxu0  ;;  %v3251_v7 = vadd.f32 %v3250_v26, %v3195_v41 }
 0xd89   :  { %v3325_v45 = vadd.f32 %v3321_v55, %v8899_v48  ;;  %v3319_v46 = vadd.f32 %v3304_v6, %v3248_v1 }
 0xd8a   :  { %v8027_v51 = vpop.f32.mrf.mxu0 }
 0xd8b   :  { %8562 = vtanh.f32 %v3325_v45  ;;  %v3323_v53 = vadd.f32 %v3319_v46, %v8899_v48  ;;  %v3322_v16 = vadd.f32 %v8027_v51, %v3259_v43 }
 0xd8c   :  { %v3307_v20 = vpop.f32.mrf.mxu0 }
 0xd8d   :  { %8564 = vtanh.f32 %v3323_v53  ;;  %v3326_v54 = vadd.f32 %v3322_v16, %v8899_v48  ;;  %v3320_v18 = vadd.f32 %v3307_v20, %v3251_v7 }
 0xd8f   :  { %8566 = vtanh.f32 %v3326_v54  ;;  %v3324_v57 = vadd.f32 %v3320_v18, %v8899_v48 }
 0xd91   :  { %8568 = vtanh.f32 %v3324_v57 }
 0xd98   :  { %v8563_v42 = vpop.eup %8562 }
 0xd99   :  { %v3556_v35 = vmul.f32 2.0, %v8563_v42  ;;  %v3333_v30 = vmul.f32 0.125, %v8563_v42 }
 0xd9a   :  { %v8565_v63 = vpop.eup %8564 }
 0xd9b   :  { %v3554_v3 = vmul.f32 2.0, %v8565_v63  ;;  %v3331_v29 = vmul.f32 0.125, %v8565_v63  ;;  %v9813_v39 = vadd.f32 %v3556_v35, %v3552_v40  ;;  %v3337_v11 = vadd.f32 %v3333_v30, %v9613_v47 }
 0xd9c   :  { %v8567_v5 = vpop.eup %8566 }
 0xd9d   :  { %v3334_v38 = vmul.f32 0.125, %v8567_v5  ;;  %v3557_v36 = vmul.f32 2.0, %v8567_v5  ;;  %v3335_v10 = vadd.f32 %v3331_v29, %v9609_v17  ;;  %v9820_v0 = vadd.f32 %v3554_v3, %v3550_v15 }
 0xd9e   :  { %v8569_v59 = vpop.eup %8568  ;;  %v3341_v41 = vrot.slane %v3337_v11, 7  ;;  %v3353_v6 = vrot.slane %v3337_v11, 1 }
 0xd9f   :  { %v3555_v28 = vmul.f32 2.0, %v8569_v59  ;;  %v3332_v31 = vmul.f32 0.125, %v8569_v59  ;;  %v3338_v62 = vadd.f32 %v3334_v38, %v9616_v50  ;;  %v9824_v27 = vadd.f32 %v3557_v36, %v3553_v23 }
 0xda0   :  { %v3339_v9 = vrot.slane %v3335_v10, 7  ;;  %v3351_v1 = vrot.slane %v3335_v10, 1 }
 0xda1   :  { %v3336_v44 = vadd.f32 %v3332_v31, %v9619_v22  ;;  %v3342_v60 = vrot.slane %v3338_v62, 7  ;;  %v3354_v25 = vrot.slane %v3338_v62, 1  ;;  %v9827_v52 = vadd.f32 %v3555_v28, %v3551_v56 }
 0xda2   :  { %v3366_v55 = vpack.c.bf16 %v3338_v62, %v3337_v11 }
 0xda3   :  { %v3365_v49 = vpack.c.bf16 %v3336_v44, %v3335_v10  ;;  %v3340_v34 = vrot.slane %v3336_v44, 7  ;;  %v3346_v8 = vsel %vm45_vm3, %v3342_v60, %v3339_v9  ;;  %v3352_v26 = vrot.slane %v3336_v44, 1 }
 0xda4   :  { %v3347_v32 = vsel %vm37_vm2, %v3346_v8, 0.0  ;;  %v3343_v45 = vsel %vm45_vm3, %v3341_v41, %v3342_v60  ;;  %v3358_v51 = vsel %vm58_vm4, %v3354_v25, %v3351_v1  ;;  %v3355_v61 = vsel %vm58_vm4, %v3353_v6, %v3354_v25 }
 0xda5   :  { %8030 = vmatprep.mubr.msk.bf16.mxu1 %vm71_vm1, %v3365_v49  ;;  %v3345_v43 = vsel %vm45_vm3, %v3339_v9, %v3340_v34  ;;  %v3344_v46 = vsel %vm45_vm3, %v3340_v34, %v3341_v41  ;;  %v3356_v16 = vsel %vm58_vm4, %v3352_v26, %v3353_v6  ;;  %v3357_v20 = vsel %vm58_vm4, %v3351_v1, %v3352_v26 }
 0xda6   :  { %8031 = vmatmul.mubr.msk.bf16.vlgmr.msra.gmra.mxu1 %vm71_vm1, %v3366_v55  ;;  %v3363_v7 = vpack.c.bf16 %v3345_v43, %v3347_v32  ;;  %v3349_v53 = vsel %vm37_vm2, %v3344_v46, 0.0  ;;  %v3360_v18 = vsel %vm40_vm5, %v3356_v16, 0.0  ;;  %v3362_v42 = vsel %vm40_vm5, %v3358_v51, 0.0 }
 0xda7   :  { %8041 = vmatpush3.bf16.msra.mxu1 %v8827_v12  ;;  %v3364_v54 = vpack.c.bf16 %v3343_v45, %v3349_v53  ;;  %v3477_v57 = vpack.c.bf16 %v3360_v18, %v3357_v20  ;;  %v3478_v37 = vpack.c.bf16 %v3362_v42, %v3355_v61 }
 0xda8   :  { %8036 = vmatprep.mubr.msk.bf16.mxu0 %vm71_vm1, %v3363_v7  ;;  %8397 = vmatprep.subr.msk.bf16.mxu1 %vm78_vm0, %v9719_v58 }
 0xda9   :  { %8037 = vmatmul.mubr.msk.bf16.vlgmr.msra.gmra.mxu0 %vm71_vm1, %v3364_v54  ;;  %8042 = vmatprep.mubr.msk.bf16.mxu1 %vm71_vm1, %v3477_v57 }
 0xdaa   :  { %8047 = vmatpush3.bf16.msra.mxu0 %v8797_v4 }
 0xdab   :  { %8398 = vmatprep.subr.msk.bf16.mxu0 %vm78_vm0, %v9733_v2 }
 0xdae   :  { %8043 = vmatmul.mubr.msk.bf16.vlgmr.msra.gmra.mxu1 %vm71_vm1, %v3478_v37 }
 0xdaf   :  { %8053 = vmatpush3.bf16.msra.mxu1 %v8836_v14 }
 0xdb0   :  { %8399 = vmatprep.subr.msk.bf16.mxu1 %vm78_vm0, %v9742_v24 }
 0xe66   :  { %v8032_v40 = vpop.f32.mrf.mxu1 }
 0xe68   :  { %v3407_v35 = vpop.f32.mrf.mxu1 }
 0xe69   :  { %v8038_v63 = vpop.f32.mrf.mxu0 }
 0xe6a   :  { %v8033_v33 = vpop.f32.mrf.mxu1  ;;  %v3471_v29 = vadd.f32 %v8038_v63, %v8032_v40 }
 0xe6b   :  { %v3462_v30 = vpop.f32.mrf.mxu0 }
 0xe6c   :  { %v3410_v3 = vpop.f32.mrf.mxu1  ;;  %v3463_v19 = vadd.f32 %v3462_v30, %v3407_v35 }
 0xe6d   :  { %v8039_v5 = vpop.f32.mrf.mxu0 }
 0xe6e   :  { %v8044_v15 = vpop.f32.mrf.mxu1  ;;  %v3474_v59 = vadd.f32 %v8039_v5, %v8033_v33 }
 0xe6f   :  { %v3536_v38 = vadd.f32 %v8044_v15, %v3471_v29  ;;  %v3465_v36 = vpop.f32.mrf.mxu0 }
 0xe70   :  { %v3519_v10 = vpop.f32.mrf.mxu1  ;;  %v3466_v31 = vadd.f32 %v3465_v36, %v3410_v3 }
 0xe71   :  { %v3540_v23 = vadd.f32 %v3536_v38, %v8899_v48  ;;  %v3534_v11 = vadd.f32 %v3519_v10, %v3463_v19 }
 0xe72   :  { %v8045_v28 = vpop.f32.mrf.mxu1 }
 0xe73   :  { %8570 = vtanh.f32 %v3540_v23  ;;  %v3538_v62 = vadd.f32 %v3534_v11, %v8899_v48  ;;  %v3537_v56 = vadd.f32 %v8045_v28, %v3474_v59 }
 0xe74   :  { %v3522_v44 = vpop.f32.mrf.mxu1 }
 0xe75   :  { %8572 = vtanh.f32 %v3538_v62  ;;  %v3541_v9 = vadd.f32 %v3537_v56, %v8899_v48  ;;  %v3535_v60 = vadd.f32 %v3522_v44, %v3466_v31 }
 0xe77   :  { %8574 = vtanh.f32 %v3541_v9  ;;  %v3539_v25 = vadd.f32 %v3535_v60, %v8899_v48 }
 0xe79   :  { %8576 = vtanh.f32 %v3539_v25 }
 0xe80   :  { %v8571_v41 = vpop.eup %8570 }
 0xe81   :  { %v3564_v49 = vadd.f32 %v8571_v41, %v9813_v39 }
 0xe82   :  { %v8573_v34 = vpop.eup %8572 }
 0xe83   :  { %v3562_v8 = vadd.f32 %v8573_v34, %v9820_v0  ;;  %v3568_v55 = vmul.f32 0.020833334, %v3564_v49 }
 0xe84   :  { %v8575_v1 = vpop.eup %8574 }
 0xe85   :  { %v3566_v32 = vmul.f32 0.020833334, %v3562_v8  ;;  %v3565_v26 = vadd.f32 %v8575_v1, %v9824_v27  ;;  %v9880_v51 = vadd.f32 %v3568_v55, %v9613_v47 }
 0xe86   :  { %v8577_v6 = vpop.eup %8576 }
 0xe87   :  { %v9876_v43 = vadd.f32 %v3566_v32, %v9609_v17  ;;  %v3569_v45 = vmul.f32 0.020833334, %v3565_v26  ;;  %v3563_v46 = vadd.f32 %v8577_v6, %v9827_v52  ;;  %v3576_v16 = vrot.slane %v9880_v51, 7 }
 0xe88   :  { %v3588_v57 = vrot.slane %v9880_v51, 1 }
 0xe89   :  { %v9883_v39 = vadd.f32 %v3569_v45, %v9616_v50  ;;  %v3567_v7 = vmul.f32 0.020833334, %v3563_v46  ;;  %v3574_v53 = vrot.slane %v9876_v43, 7  ;;  %v3586_v20 = vrot.slane %v9876_v43, 1 }
 0xe8b   :  { %v9886_v0 = vadd.f32 %v3567_v7, %v9619_v22  ;;  %v3577_v27 = vrot.slane %v9883_v39, 7  ;;  %v3589_v17 = vrot.slane %v9883_v39, 1  ;;  %v3601_v22 = vpack.c.bf16 %v9883_v39, %v9880_v51 }
 0xe8d   :  { %v3600_v52 = vpack.c.bf16 %v9886_v0, %v9876_v43  ;;  %v3575_v47 = vrot.slane %v9886_v0, 7  ;;  %v3581_v50 = vsel %vm45_vm3, %v3577_v27, %v3574_v53  ;;  %v3587_v18 = vrot.slane %v9886_v0, 1 }
 0xe8e   :  { %v3582_v54 = vsel %vm37_vm2, %v3581_v50, 0.0  ;;  %v3578_v42 = vsel %vm45_vm3, %v3576_v16, %v3577_v27  ;;  %v3593_v40 = vsel %vm58_vm4, %v3589_v17, %v3586_v20  ;;  %v3590_v15 = vsel %vm58_vm4, %v3588_v57, %v3589_v17 }
 0xe8f   :  { %8048 = vmatprep.mubr.msk.bf16.mxu0 %vm71_vm1, %v3600_v52  ;;  %v3580_v61 = vsel %vm45_vm3, %v3574_v53, %v3575_v47  ;;  %v3579_v37 = vsel %vm45_vm3, %v3575_v47, %v3576_v16  ;;  %v3591_v33 = vsel %vm58_vm4, %v3587_v18, %v3588_v57  ;;  %v3592_v30 = vsel %vm58_vm4, %v3586_v20, %v3587_v18 }
 0xe90   :  { %8049 = vmatmul.mubr.msk.bf16.vlgmr.msra.gmra.mxu0 %vm71_vm1, %v3601_v22  ;;  %v3598_v35 = vpack.c.bf16 %v3580_v61, %v3582_v54  ;;  %v3584_v63 = vsel %vm37_vm2, %v3579_v37, 0.0  ;;  %v3595_v29 = vsel %vm40_vm5, %v3591_v33, 0.0  ;;  %v3597_v19 = vsel %vm40_vm5, %v3593_v40, 0.0 }
 0xe91   :  { %8059 = vmatpush3.bf16.msra.mxu0 %v8827_v12  ;;  %v3599_v3 = vpack.c.bf16 %v3578_v42, %v3584_v63  ;;  %v3712_v5 = vpack.c.bf16 %v3595_v29, %v3592_v30  ;;  %v3713_v38 = vpack.c.bf16 %v3597_v19, %v3590_v15 }
 0xe92   :  { %8054 = vmatprep.mubr.msk.bf16.mxu1 %vm71_vm1, %v3598_v35  ;;  %8400 = vmatprep.subr.msk.bf16.mxu0 %vm78_vm0, %v9719_v58 }
 0xe93   :  { %8055 = vmatmul.mubr.msk.bf16.vlgmr.msra.gmra.mxu1 %vm71_vm1, %v3599_v3  ;;  %8060 = vmatprep.mubr.msk.bf16.mxu0 %vm71_vm1, %v3712_v5 }
 0xe94   :  { %8065 = vmatpush3.bf16.msra.mxu1 %v8797_v4 }
 0xe95   :  { %8401 = vmatprep.subr.msk.bf16.mxu1 %vm78_vm0, %v9733_v2 }
 0xe98   :  { %8061 = vmatmul.mubr.msk.bf16.vlgmr.msra.gmra.mxu0 %vm71_vm1, %v3713_v38 }
 0xe99   :  { %8071 = vmatpush3.bf16.msra.mxu0 %v8836_v14 }
 0xe9a   :  { %8402 = vmatprep.subr.msk.bf16.mxu0 %vm78_vm0, %v9742_v24 }
 0xf50   :  { %v8050_v36 = vpop.f32.mrf.mxu0 }
 0xf52   :  { %v3642_v10 = vpop.f32.mrf.mxu0 }
 0xf53   :  { %v8056_v59 = vpop.f32.mrf.mxu1 }
 0xf54   :  { %v8051_v23 = vpop.f32.mrf.mxu0  ;;  %v3706_v31 = vadd.f32 %v8056_v59, %v8050_v36 }
 0xf55   :  { %v3697_v11 = vpop.f32.mrf.mxu1 }
 0xf56   :  { %v3645_v28 = vpop.f32.mrf.mxu0  ;;  %v3698_v44 = vadd.f32 %v3697_v11, %v3642_v10 }
 0xf57   :  { %v8057_v62 = vpop.f32.mrf.mxu1 }
 0xf58   :  { %v8062_v56 = vpop.f32.mrf.mxu0  ;;  %v3709_v41 = vadd.f32 %v8057_v62, %v8051_v23 }
 0xf59   :  { %v3771_v9 = vadd.f32 %v8062_v56, %v3706_v31  ;;  %v3700_v60 = vpop.f32.mrf.mxu1 }
 0xf5a   :  { %v3754_v25 = vpop.f32.mrf.mxu0  ;;  %v3701_v1 = vadd.f32 %v3700_v60, %v3645_v28 }
 0xf5b   :  { %v3775_v49 = vadd.f32 %v3771_v9, %v8899_v48  ;;  %v3769_v34 = vadd.f32 %v3754_v25, %v3698_v44 }
 0xf5c   :  { %v8063_v8 = vpop.f32.mrf.mxu0 }
 0xf5d   :  { %8578 = vtanh.f32 %v3775_v49  ;;  %v3773_v55 = vadd.f32 %v3769_v34, %v8899_v48  ;;  %v3772_v32 = vadd.f32 %v8063_v8, %v3709_v41 }
 0xf5e   :  { %v3757_v26 = vpop.f32.mrf.mxu0 }
 0xf5f   :  { %8580 = vtanh.f32 %v3773_v55  ;;  %v3776_v6 = vadd.f32 %v3772_v32, %v8899_v48  ;;  %v3770_v45 = vadd.f32 %v3757_v26, %v3701_v1 }
 0xf61   :  { %8582 = vtanh.f32 %v3776_v6  ;;  %v3774_v46 = vadd.f32 %v3770_v45, %v8899_v48 }
 0xf63   :  { %8584 = vtanh.f32 %v3774_v46 }
 0xf6a   :  { %v9943_v7 = vpop.eup %8578 }
 0xf6b   :  { %v3783_v27 = vmul.f32 0.0625, %v9943_v7 }
 0xf6c   :  { %v9945_v53 = vpop.eup %8580 }
 0xf6d   :  { %v3781_v17 = vmul.f32 0.0625, %v9945_v53  ;;  %v3787_v20 = vadd.f32 %v3783_v27, %v9880_v51 }
 0xf6e   :  { %v9949_v16 = vpop.eup %8582 }
 0xf6f   :  { %v3784_v52 = vmul.f32 0.0625, %v9949_v16  ;;  %v3785_v47 = vadd.f32 %v3781_v17, %v9876_v43  ;;  %v3791_v37 = vrot.slane %v3787_v20, 7  ;;  %v3803_v5 = vrot.slane %v3787_v20, 1 }
 0xf70   :  { %v9953_v50 = vpop.eup %8584 }
 0xf71   :  { %v3782_v22 = vmul.f32 0.0625, %v9953_v50  ;;  %v3788_v54 = vadd.f32 %v3784_v52, %v9883_v39  ;;  %v3789_v57 = vrot.slane %v3785_v47, 7  ;;  %v3801_v33 = vrot.slane %v3785_v47, 1 }
 0xf73   :  { %v3786_v18 = vadd.f32 %v3782_v22, %v9886_v0  ;;  %v3792_v61 = vrot.slane %v3788_v54, 7  ;;  %v3804_v42 = vrot.slane %v3788_v54, 1  ;;  %v3816_v30 = vpack.c.bf16 %v3788_v54, %v3787_v20 }
 0xf75   :  { %v3815_v40 = vpack.c.bf16 %v3786_v18, %v3785_v47  ;;  %v3790_v35 = vrot.slane %v3786_v18, 7  ;;  %v3796_v63 = vsel %vm45_vm3, %v3792_v61, %v3789_v57  ;;  %v3802_v29 = vrot.slane %v3786_v18, 1 }
 0xf76   :  { %v3797_v3 = vsel %vm37_vm2, %v3796_v63, 0.0  ;;  %v3793_v19 = vsel %vm45_vm3, %v3791_v37, %v3792_v61  ;;  %v3808_v36 = vsel %vm58_vm4, %v3804_v42, %v3801_v33  ;;  %v3805_v56 = vsel %vm58_vm4, %v3803_v5, %v3804_v42 }
 0xf77   :  { %8066 = vmatprep.mubr.msk.bf16.mxu1 %vm71_vm1, %v3815_v40  ;;  %v3795_v15 = vsel %vm45_vm3, %v3789_v57, %v3790_v35  ;;  %v3794_v38 = vsel %vm45_vm3, %v3790_v35, %v3791_v37  ;;  %v3806_v23 = vsel %vm58_vm4, %v3802_v29, %v3803_v5  ;;  %v3807_v11 = vsel %vm58_vm4, %v3801_v33, %v3802_v29 }
 0xf78   :  { %8067 = vmatmul.mubr.msk.bf16.vlgmr.msra.gmra.mxu1 %vm71_vm1, %v3816_v30  ;;  %v3813_v10 = vpack.c.bf16 %v3795_v15, %v3797_v3  ;;  %v3799_v59 = vsel %vm37_vm2, %v3794_v38, 0.0  ;;  %v3810_v31 = vsel %vm40_vm5, %v3806_v23, 0.0  ;;  %v3812_v44 = vsel %vm40_vm5, %v3808_v36, 0.0 }
 0xf79   :  { %8077 = vmatpush3.bf16.msra.mxu1 %v8827_v12  ;;  %v3814_v28 = vpack.c.bf16 %v3793_v19, %v3799_v59  ;;  %v3927_v62 = vpack.c.bf16 %v3810_v31, %v3807_v11  ;;  %v3928_v9 = vpack.c.bf16 %v3812_v44, %v3805_v56 }
 0xf7a   :  { %8072 = vmatprep.mubr.msk.bf16.mxu0 %vm71_vm1, %v3813_v10  ;;  %8403 = vmatprep.subr.msk.bf16.mxu1 %vm78_vm0, %v9719_v58 }
 0xf7b   :  { %8073 = vmatmul.mubr.msk.bf16.vlgmr.msra.gmra.mxu0 %vm71_vm1, %v3814_v28  ;;  %8078 = vmatprep.mubr.msk.bf16.mxu1 %vm71_vm1, %v3927_v62 }
 0xf7c   :  { %8083 = vmatpush3.bf16.msra.mxu0 %v8797_v4 }
 0xf7d   :  { %8404 = vmatprep.subr.msk.bf16.mxu0 %vm78_vm0, %v9733_v2 }
 0xf80   :  { %8079 = vmatmul.mubr.msk.bf16.vlgmr.msra.gmra.mxu1 %vm71_vm1, %v3928_v9 }
 0xf81   :  { %8089 = vmatpush3.bf16.msra.mxu1 %v8836_v14 }
 0xf82   :  { %8405 = vmatprep.subr.msk.bf16.mxu1 %vm78_vm0, %v9742_v24 }
0x1038   :  { %v8068_v60 = vpop.f32.mrf.mxu1 }
0x103a   :  { %v3857_v25 = vpop.f32.mrf.mxu1 }
0x103b   :  { %v8074_v41 = vpop.f32.mrf.mxu0 }
0x103c   :  { %v8069_v49 = vpop.f32.mrf.mxu1  ;;  %v3921_v1 = vadd.f32 %v8074_v41, %v8068_v60 }
0x103d   :  { %v3912_v34 = vpop.f32.mrf.mxu0 }
0x103e   :  { %v3860_v8 = vpop.f32.mrf.mxu1  ;;  %v3913_v26 = vadd.f32 %v3912_v34, %v3857_v25 }
0x103f   :  { %v8075_v55 = vpop.f32.mrf.mxu0 }
0x1040   :  { %v8080_v32 = vpop.f32.mrf.mxu1  ;;  %v3924_v27 = vadd.f32 %v8075_v55, %v8069_v49 }
0x1041   :  { %v3986_v6 = vadd.f32 %v8080_v32, %v3921_v1  ;;  %v3915_v45 = vpop.f32.mrf.mxu0 }
0x1042   :  { %v3969_v46 = vpop.f32.mrf.mxu1  ;;  %v3916_v20 = vadd.f32 %v3915_v45, %v3860_v8 }
0x1043   :  { %v3990_v17 = vadd.f32 %v3986_v6, %v8899_v48  ;;  %v3984_v52 = vadd.f32 %v3969_v46, %v3913_v26 }
0x1044   :  { %v8081_v47 = vpop.f32.mrf.mxu1 }
0x1045   :  { %8586 = vtanh.f32 %v3990_v17  ;;  %v3988_v22 = vadd.f32 %v3984_v52, %v8899_v48  ;;  %v3987_v54 = vadd.f32 %v8081_v47, %v3924_v27 }
0x1046   :  { %v3972_v18 = vpop.f32.mrf.mxu1 }
0x1047   :  { %8588 = vtanh.f32 %v3988_v22  ;;  %v3991_v57 = vadd.f32 %v3987_v54, %v8899_v48  ;;  %v3985_v61 = vadd.f32 %v3972_v18, %v3916_v20 }
0x1049   :  { %8590 = vtanh.f32 %v3991_v57  ;;  %v3989_v42 = vadd.f32 %v3985_v61, %v8899_v48 }
0x104b   :  { %8592 = vtanh.f32 %v3989_v42 }
0x1052   :  { %v10002_v37 = vpop.eup %8586 }
0x1053   :  { %v3998_v35 = vmul.f32 0.0625, %v10002_v37 }
0x1054   :  { %v10004_v40 = vpop.eup %8588 }
0x1055   :  { %v3996_v63 = vmul.f32 0.0625, %v10004_v40  ;;  %v4002_v5 = vadd.f32 %v3998_v35, %v9880_v51 }
0x1056   :  { %v10008_v33 = vpop.eup %8590 }
0x1057   :  { %v3999_v30 = vmul.f32 0.0625, %v10008_v33  ;;  %v4000_v29 = vadd.f32 %v3996_v63, %v9876_v43  ;;  %v4006_v23 = vrot.slane %v4002_v5, 7  ;;  %v4018_v56 = vrot.slane %v4002_v5, 1 }
0x1058   :  { %v10011_v3 = vpop.eup %8592 }
0x1059   :  { %v3997_v15 = vmul.f32 0.0625, %v10011_v3  ;;  %v4003_v19 = vadd.f32 %v3999_v30, %v9883_v39  ;;  %v4004_v10 = vrot.slane %v4000_v29, 7  ;;  %v4016_v11 = vrot.slane %v4000_v29, 1 }
0x105b   :  { %v4001_v38 = vadd.f32 %v3997_v15, %v9886_v0  ;;  %v4019_v36 = vrot.slane %v4003_v19, 1  ;;  %v4007_v59 = vrot.slane %v4003_v19, 7  ;;  %v4031_v44 = vpack.c.bf16 %v4003_v19, %v4002_v5 }
0x105d   :  { %v4030_v28 = vpack.c.bf16 %v4001_v38, %v4000_v29  ;;  %v4005_v31 = vrot.slane %v4001_v38, 7  ;;  %v4017_v62 = vrot.slane %v4001_v38, 1  ;;  %v4011_v9 = vsel %vm45_vm3, %v4007_v59, %v4004_v10 }
0x105e   :  { %v4008_v60 = vsel %vm45_vm3, %v4006_v23, %v4007_v59  ;;  %v4023_v25 = vsel %vm58_vm4, %v4019_v36, %v4016_v11  ;;  %v4012_v49 = vsel %vm37_vm2, %v4011_v9, 0.0  ;;  %v4020_v46 = vsel %vm58_vm4, %v4018_v56, %v4019_v36 }
0x105f   :  { %8084 = vmatprep.mubr.msk.bf16.mxu0 %vm71_vm1, %v4030_v28  ;;  %v4010_v41 = vsel %vm45_vm3, %v4004_v10, %v4005_v31  ;;  %v4009_v34 = vsel %vm45_vm3, %v4005_v31, %v4006_v23  ;;  %v4021_v8 = vsel %vm58_vm4, %v4017_v62, %v4018_v56  ;;  %v4022_v32 = vsel %vm58_vm4, %v4016_v11, %v4017_v62 }
0x1060   :  { %8085 = vmatmul.mubr.msk.bf16.vlgmr.msra.gmra.mxu0 %vm71_vm1, %v4031_v44  ;;  %v4028_v1 = vpack.c.bf16 %v4010_v41, %v4012_v49  ;;  %v4014_v55 = vsel %vm37_vm2, %v4009_v34, 0.0  ;;  %v4025_v26 = vsel %vm40_vm5, %v4021_v8, 0.0  ;;  %v4027_v27 = vsel %vm40_vm5, %v4023_v25, 0.0 }
0x1061   :  { %8095 = vmatpush3.bf16.msra.mxu0 %v8827_v12  ;;  %v4029_v6 = vpack.c.bf16 %v4008_v60, %v4014_v55  ;;  %v4142_v45 = vpack.c.bf16 %v4025_v26, %v4022_v32  ;;  %v4143_v17 = vpack.c.bf16 %v4027_v27, %v4020_v46  ;;  %v4428_v62 = vmul.f32 2.0, %v10002_v37 }
0x1062   :  { %8090 = vmatprep.mubr.msk.bf16.mxu1 %vm71_vm1, %v4028_v1  ;;  %8406 = vmatprep.subr.msk.bf16.mxu0 %vm78_vm0, %v9719_v58  ;;  %v4426_v44 = vmul.f32 2.0, %v10004_v40  ;;  %v4429_v41 = vmul.f32 2.0, %v10008_v33  ;;  %v4427_v26 = vmul.f32 2.0, %v10011_v3 }
0x1063   :  { %8091 = vmatmul.mubr.msk.bf16.vlgmr.msra.gmra.mxu1 %vm71_vm1, %v4029_v6  ;;  %8096 = vmatprep.mubr.msk.bf16.mxu0 %vm71_vm1, %v4142_v45  ;;  %v4432_v9 = vadd.f32 %v9943_v7, %v4428_v62 }
0x1064   :  { %8101 = vmatpush3.bf16.msra.mxu1 %v8797_v4  ;;  %v4430_v32 = vadd.f32 %v9945_v53, %v4426_v44  ;;  %v4433_v7 = vadd.f32 %v9949_v16, %v4429_v41 }
0x1065   :  { %8407 = vmatprep.subr.msk.bf16.mxu1 %vm78_vm0, %v9733_v2 }
0x1068   :  { %8097 = vmatmul.mubr.msk.bf16.vlgmr.msra.gmra.mxu0 %vm71_vm1, %v4143_v17 }
0x1069   :  { %8107 = vmatpush3.bf16.msra.mxu0 %v8836_v14 }
0x106a   :  { %8408 = vmatprep.subr.msk.bf16.mxu0 %vm78_vm0, %v9742_v24 }
0x1120   :  { %v8086_v52 = vpop.f32.mrf.mxu0 }
0x1122   :  { %v4072_v47 = vpop.f32.mrf.mxu0 }
0x1123   :  { %v8092_v20 = vpop.f32.mrf.mxu1 }
0x1124   :  { %v8087_v22 = vpop.f32.mrf.mxu0  ;;  %v4136_v57 = vadd.f32 %v8092_v20, %v8086_v52 }
0x1125   :  { %v4127_v54 = vpop.f32.mrf.mxu1 }
0x1126   :  { %v4075_v18 = vpop.f32.mrf.mxu0  ;;  %v4128_v35 = vadd.f32 %v4127_v54, %v4072_v47  ;;  %v4431_v47 = vadd.f32 %v9953_v50, %v4427_v26 }
0x1127   :  { %v8093_v61 = vpop.f32.mrf.mxu1 }
0x1128   :  { %v8098_v42 = vpop.f32.mrf.mxu0  ;;  %v4139_v5 = vadd.f32 %v8093_v61, %v8087_v22 }
0x1129   :  { %v4201_v63 = vadd.f32 %v8098_v42, %v4136_v57  ;;  %v4130_v30 = vpop.f32.mrf.mxu1 }
0x112a   :  { %v4184_v29 = vpop.f32.mrf.mxu0  ;;  %v4131_v36 = vadd.f32 %v4130_v30, %v4075_v18 }
0x112b   :  { %v4205_v15 = vadd.f32 %v4201_v63, %v8899_v48  ;;  %v4199_v19 = vadd.f32 %v4184_v29, %v4128_v35 }
0x112c   :  { %v8099_v38 = vpop.f32.mrf.mxu0 }
0x112d   :  { %8594 = vtanh.f32 %v4205_v15  ;;  %v4203_v10 = vadd.f32 %v4199_v19, %v8899_v48  ;;  %v4202_v59 = vadd.f32 %v8099_v38, %v4139_v5 }
0x112e   :  { %v4187_v23 = vpop.f32.mrf.mxu0 }
0x112f   :  { %8596 = vtanh.f32 %v4203_v10  ;;  %v4206_v11 = vadd.f32 %v4202_v59, %v8899_v48  ;;  %v4200_v28 = vadd.f32 %v4187_v23, %v4131_v36 }
0x1131   :  { %8598 = vtanh.f32 %v4206_v11  ;;  %v4204_v31 = vadd.f32 %v4200_v28, %v8899_v48 }
0x1133   :  { %8600 = vtanh.f32 %v4204_v31 }
0x113a   :  { %v8595_v56 = vpop.eup %8594 }
0x113b   :  { %v4436_v60 = vmul.f32 2.0, %v8595_v56  ;;  %v4213_v49 = vmul.f32 0.125, %v8595_v56 }
0x113c   :  { %v8597_v25 = vpop.eup %8596 }
0x113d   :  { %v4434_v34 = vmul.f32 2.0, %v8597_v25  ;;  %v4211_v8 = vmul.f32 0.125, %v8597_v25  ;;  %v10065_v1 = vadd.f32 %v4436_v60, %v4432_v9  ;;  %v4217_v46 = vadd.f32 %v4213_v49, %v9880_v51 }
0x113e   :  { %v8599_v55 = vpop.eup %8598 }
0x113f   :  { %v4214_v37 = vmul.f32 0.125, %v8599_v55  ;;  %v4437_v6 = vmul.f32 2.0, %v8599_v55  ;;  %v4215_v40 = vadd.f32 %v4211_v8, %v9876_v43  ;;  %v10072_v33 = vadd.f32 %v4434_v34, %v4430_v32 }
0x1140   :  { %v8601_v45 = vpop.eup %8600  ;;  %v4221_v18 = vrot.slane %v4217_v46, 7  ;;  %v4233_v29 = vrot.slane %v4217_v46, 1 }
0x1141   :  { %v4218_v27 = vadd.f32 %v4214_v37, %v9883_v39  ;;  %v4435_v17 = vmul.f32 2.0, %v8601_v45  ;;  %v4212_v52 = vmul.f32 0.125, %v8601_v45  ;;  %v10076_v53 = vadd.f32 %v4437_v6, %v4433_v7 }
0x1142   :  { %v4219_v20 = vrot.slane %v4215_v40, 7  ;;  %v4231_v35 = vrot.slane %v4215_v40, 1 }
0x1143   :  { %v4216_v3 = vadd.f32 %v4212_v52, %v9886_v0  ;;  %v4222_v22 = vrot.slane %v4218_v27, 7  ;;  %v4234_v54 = vrot.slane %v4218_v27, 1  ;;  %v10079_v57 = vadd.f32 %v4435_v17, %v4431_v47 }
0x1144   :  { %v4246_v63 = vpack.c.bf16 %v4218_v27, %v4217_v46 }
0x1145   :  { %v4245_v16 = vpack.c.bf16 %v4216_v3, %v4215_v40  ;;  %v4220_v61 = vrot.slane %v4216_v3, 7  ;;  %v4226_v42 = vsel %vm45_vm3, %v4222_v22, %v4219_v20  ;;  %v4232_v30 = vrot.slane %v4216_v3, 1 }
0x1146   :  { %v4227_v50 = vsel %vm37_vm2, %v4226_v42, 0.0  ;;  %v4223_v19 = vsel %vm45_vm3, %v4221_v18, %v4222_v22  ;;  %v4238_v38 = vsel %vm58_vm4, %v4234_v54, %v4231_v35  ;;  %v4235_v62 = vsel %vm58_vm4, %v4233_v29, %v4234_v54 }
0x1147   :  { %8102 = vmatprep.mubr.msk.bf16.mxu1 %vm71_vm1, %v4245_v16  ;;  %v4224_v5 = vsel %vm45_vm3, %v4220_v61, %v4221_v18  ;;  %v4225_v15 = vsel %vm45_vm3, %v4219_v20, %v4220_v61  ;;  %v4236_v59 = vsel %vm58_vm4, %v4232_v30, %v4233_v29  ;;  %v4237_v23 = vsel %vm58_vm4, %v4231_v35, %v4232_v30 }
0x1148   :  { %8103 = vmatmul.mubr.msk.bf16.vlgmr.msra.gmra.mxu1 %vm71_vm1, %v4246_v63  ;;  %v4243_v36 = vpack.c.bf16 %v4225_v15, %v4227_v50  ;;  %v4229_v10 = vsel %vm37_vm2, %v4224_v5, 0.0  ;;  %v4240_v28 = vsel %vm40_vm5, %v4236_v59, 0.0  ;;  %v4242_v56 = vsel %vm40_vm5, %v4238_v38, 0.0 }
0x1149   :  { %8113 = vmatpush3.bf16.msra.mxu1 %v8827_v12  ;;  %v4244_v11 = vpack.c.bf16 %v4223_v19, %v4229_v10  ;;  %v4357_v31 = vpack.c.bf16 %v4240_v28, %v4237_v23  ;;  %v4358_v44 = vpack.c.bf16 %v4242_v56, %v4235_v62 }
0x114a   :  { %8108 = vmatprep.mubr.msk.bf16.mxu0 %vm71_vm1, %v4243_v36  ;;  %8409 = vmatprep.subr.msk.bf16.mxu1 %vm78_vm0, %v9719_v58 }
0x114b   :  { %8109 = vmatmul.mubr.msk.bf16.vlgmr.msra.gmra.mxu0 %vm71_vm1, %v4244_v11  ;;  %8114 = vmatprep.mubr.msk.bf16.mxu1 %vm71_vm1, %v4357_v31 }
0x114c   :  { %8119 = vmatpush3.bf16.msra.mxu0 %v8797_v4 }
0x114d   :  { %8410 = vmatprep.subr.msk.bf16.mxu0 %vm78_vm0, %v9733_v2 }
0x1150   :  { %8115 = vmatmul.mubr.msk.bf16.vlgmr.msra.gmra.mxu1 %vm71_vm1, %v4358_v44 }
0x1151   :  { %8125 = vmatpush3.bf16.msra.mxu1 %v8836_v14 }
0x1152   :  { %8411 = vmatprep.subr.msk.bf16.mxu1 %vm78_vm0, %v9742_v24 }
0x1208   :  { %v8104_v58 = vpop.f32.mrf.mxu1 }
0x120a   :  { %v4287_v9 = vpop.f32.mrf.mxu1 }
0x120b   :  { %v8110_v60 = vpop.f32.mrf.mxu0 }
0x120c   :  { %v8105_v25 = vpop.f32.mrf.mxu1  ;;  %v4351_v34 = vadd.f32 %v8110_v60, %v8104_v58 }
0x120d   :  { %v4342_v41 = vpop.f32.mrf.mxu0 }
0x120e   :  { %v4290_v49 = vpop.f32.mrf.mxu1  ;;  %v4343_v32 = vadd.f32 %v4342_v41, %v4287_v9 }
0x120f   :  { %v8111_v8 = vpop.f32.mrf.mxu0 }
0x1210   :  { %v8116_v55 = vpop.f32.mrf.mxu1  ;;  %v4354_v6 = vadd.f32 %v8111_v8, %v8105_v25 }
0x1211   :  { %v4416_v26 = vadd.f32 %v8116_v55, %v4351_v34  ;;  %v4345_v2 = vpop.f32.mrf.mxu0  ;;  %v10193_v55 = vld [vmem:[%s10942_s1 + $0x4] sm:$0x3] }
0x1212   :  { %v4399_v37 = vpop.f32.mrf.mxu1  ;;  %v4346_v24 = vadd.f32 %v4345_v2, %v4290_v49  ;;  %v10179_v49 = vld [vmem:[%s10942_s1] sm:$0x3] }
0x1213   :  { %v4420_v40 = vadd.f32 %v4416_v26, %v8899_v48  ;;  %v4414_v45 = vadd.f32 %v4399_v37, %v4343_v32  ;;  %v10202_v26 = vld [vmem:[%s10942_s1 + $0x2] sm:$0x3] }
0x1214   :  { %v8117_v7 = vpop.f32.mrf.mxu1 }
0x1215   :  { %8602 = vtanh.f32 %v4420_v40  ;;  %v4418_v46 = vadd.f32 %v4414_v45, %v8899_v48  ;;  %v4417_v27 = vadd.f32 %v8117_v7, %v4354_v6 }
0x1216   :  { %v4402_v17 = vpop.f32.mrf.mxu1 }
0x1217   :  { %8604 = vtanh.f32 %v4418_v46  ;;  %v4421_v52 = vadd.f32 %v4417_v27, %v8899_v48  ;;  %v4415_v47 = vadd.f32 %v4402_v17, %v4346_v24 }
0x1219   :  { %8606 = vtanh.f32 %v4421_v52  ;;  %v4419_v3 = vadd.f32 %v4415_v47, %v8899_v48 }
0x121b   :  { %8608 = vtanh.f32 %v4419_v3 }
0x1222   :  { %v8603_v20 = vpop.eup %8602 }
0x1223   :  { %v4444_v22 = vadd.f32 %v8603_v20, %v10065_v1 }
0x1224   :  { %v8605_v54 = vpop.eup %8604 }
0x1225   :  { %v4442_v18 = vadd.f32 %v8605_v54, %v10072_v33  ;;  %v4448_v61 = vmul.f32 0.020833334, %v4444_v22 }
0x1226   :  { %v8607_v16 = vpop.eup %8606 }
0x1227   :  { %v4446_v42 = vmul.f32 0.020833334, %v4442_v18  ;;  %v4445_v35 = vadd.f32 %v8607_v16, %v10076_v53  ;;  %v10132_v5 = vadd.f32 %v4448_v61, %v9880_v51 }
0x1228   :  { %v8609_v63 = vpop.eup %8608 }
0x1229   :  { %v10128_v50 = vadd.f32 %v4446_v42, %v9876_v43  ;;  %v4449_v30 = vmul.f32 0.020833334, %v4445_v35  ;;  %v4443_v29 = vadd.f32 %v8609_v63, %v10079_v57  ;;  %v4456_v38 = vrot.slane %v10132_v5, 7 }
0x122a   :  { %v4468_v23 = vrot.slane %v10132_v5, 1 }
0x122b   :  { %v10135_v1 = vadd.f32 %v4449_v30, %v9883_v39  ;;  %v4447_v15 = vmul.f32 0.020833334, %v4443_v29  ;;  %v4454_v19 = vrot.slane %v10128_v50, 7  ;;  %v4466_v36 = vrot.slane %v10128_v50, 1 }
0x122d   :  { %v10138_v33 = vadd.f32 %v4447_v15, %v9886_v0  ;;  %v4457_v53 = vrot.slane %v10135_v1, 7  ;;  %v4469_v43 = vrot.slane %v10135_v1, 1  ;;  %v4481_v0 = vpack.c.bf16 %v10135_v1, %v10132_v5 }
0x122f   :  { %v4480_v57 = vpack.c.bf16 %v10138_v33, %v10128_v50  ;;  %v4455_v51 = vrot.slane %v10138_v33, 7  ;;  %v4461_v39 = vsel %vm45_vm3, %v4457_v53, %v4454_v19  ;;  %v4467_v59 = vrot.slane %v10138_v33, 1 }
0x1230   :  { %v4462_v10 = vsel %vm37_vm2, %v4461_v39, 0.0  ;;  %v4458_v31 = vsel %vm45_vm3, %v4456_v38, %v4457_v53  ;;  %v4473_v62 = vsel %vm58_vm4, %v4469_v43, %v4466_v36  ;;  %v4470_v34 = vsel %vm58_vm4, %v4468_v23, %v4469_v43 }
0x1231   :  { %8120 = vmatprep.mubr.msk.bf16.mxu0 %vm71_vm1, %v4480_v57  ;;  %v4459_v11 = vsel %vm45_vm3, %v4455_v51, %v4456_v38  ;;  %v4460_v28 = vsel %vm45_vm3, %v4454_v19, %v4455_v51  ;;  %v4471_v58 = vsel %vm58_vm4, %v4467_v59, %v4468_v23  ;;  %v4472_v9 = vsel %vm58_vm4, %v4466_v36, %v4467_v59 }
0x1232   :  { %8121 = vmatmul.mubr.msk.bf16.vlgmr.msra.gmra.mxu0 %vm71_vm1, %v4481_v0  ;;  %v4478_v56 = vpack.c.bf16 %v4460_v28, %v4462_v10  ;;  %v4464_v44 = vsel %vm37_vm2, %v4459_v11, 0.0  ;;  %v4475_v25 = vsel %vm40_vm5, %v4471_v58, 0.0  ;;  %v4477_v8 = vsel %vm40_vm5, %v4473_v62, 0.0 }
0x1233   :  { %8131 = vmatpush3.bf16.msra.mxu0 %v8827_v12  ;;  %v4479_v60 = vpack.c.bf16 %v4458_v31, %v4464_v44  ;;  %v4592_v41 = vpack.c.bf16 %v4475_v25, %v4472_v9  ;;  %v4593_v32 = vpack.c.bf16 %v4477_v8, %v4470_v34 }
0x1234   :  { %8126 = vmatprep.mubr.msk.bf16.mxu1 %vm71_vm1, %v4478_v56  ;;  %8412 = vmatprep.subr.msk.bf16.mxu0 %vm78_vm0, %v10179_v49 }
0x1235   :  { %8127 = vmatmul.mubr.msk.bf16.vlgmr.msra.gmra.mxu1 %vm71_vm1, %v4479_v60  ;;  %8132 = vmatprep.mubr.msk.bf16.mxu0 %vm71_vm1, %v4592_v41 }
0x1236   :  { %8137 = vmatpush3.bf16.msra.mxu1 %v8797_v4 }
0x1237   :  { %8413 = vmatprep.subr.msk.bf16.mxu1 %vm78_vm0, %v10193_v55 }
0x123a   :  { %8133 = vmatmul.mubr.msk.bf16.vlgmr.msra.gmra.mxu0 %vm71_vm1, %v4593_v32 }
0x123b   :  { %8143 = vmatpush3.bf16.msra.mxu0 %v8836_v14 }
0x123c   :  { %8414 = vmatprep.subr.msk.bf16.mxu0 %vm78_vm0, %v10202_v26 }
0x12f2   :  { %v8122_v2 = vpop.f32.mrf.mxu0 }
0x12f4   :  { %v4522_v37 = vpop.f32.mrf.mxu0 }
0x12f5   :  { %v8128_v6 = vpop.f32.mrf.mxu1 }
0x12f6   :  { %v8123_v40 = vpop.f32.mrf.mxu0  ;;  %v4586_v24 = vadd.f32 %v8128_v6, %v8122_v2 }
0x12f7   :  { %v4577_v45 = vpop.f32.mrf.mxu1 }
0x12f8   :  { %v4525_v7 = vpop.f32.mrf.mxu0  ;;  %v4578_v17 = vadd.f32 %v4577_v45, %v4522_v37 }
0x12f9   :  { %v8129_v46 = vpop.f32.mrf.mxu1 }
0x12fa   :  { %v8134_v27 = vpop.f32.mrf.mxu0  ;;  %v4589_v20 = vadd.f32 %v8129_v46, %v8123_v40 }
0x12fb   :  { %v4651_v52 = vadd.f32 %v8134_v27, %v4586_v24  ;;  %v4580_v47 = vpop.f32.mrf.mxu1 }
0x12fc   :  { %v4634_v3 = vpop.f32.mrf.mxu0  ;;  %v4581_v16 = vadd.f32 %v4580_v47, %v4525_v7 }
0x12fd   :  { %v4655_v22 = vadd.f32 %v4651_v52, %v8899_v48  ;;  %v4649_v54 = vadd.f32 %v4634_v3, %v4578_v17 }
0x12fe   :  { %v8135_v18 = vpop.f32.mrf.mxu0 }
0x12ff   :  { %8610 = vtanh.f32 %v4655_v22  ;;  %v4653_v61 = vadd.f32 %v4649_v54, %v8899_v48  ;;  %v4652_v42 = vadd.f32 %v8135_v18, %v4589_v20 }
0x1300   :  { %v4637_v35 = vpop.f32.mrf.mxu0 }
0x1301   :  { %8612 = vtanh.f32 %v4653_v61  ;;  %v4656_v63 = vadd.f32 %v4652_v42, %v8899_v48  ;;  %v4650_v30 = vadd.f32 %v4637_v35, %v4581_v16 }
0x1303   :  { %8614 = vtanh.f32 %v4656_v63  ;;  %v4654_v29 = vadd.f32 %v4650_v30, %v8899_v48 }
0x1305   :  { %8616 = vtanh.f32 %v4654_v29 }
0x130c   :  { %v10210_v15 = vpop.eup %8610 }
0x130d   :  { %v4663_v53 = vmul.f32 0.0625, %v10210_v15 }
0x130e   :  { %v10212_v19 = vpop.eup %8612 }
0x130f   :  { %v4661_v43 = vmul.f32 0.0625, %v10212_v19  ;;  %v4667_v36 = vadd.f32 %v4663_v53, %v10132_v5 }
0x1310   :  { %v10216_v38 = vpop.eup %8614 }
0x1311   :  { %v4664_v57 = vmul.f32 0.0625, %v10216_v38  ;;  %v4665_v51 = vadd.f32 %v4661_v43, %v10128_v50  ;;  %v4671_v31 = vrot.slane %v4667_v36, 7  ;;  %v4683_v41 = vrot.slane %v4667_v36, 1 }
0x1312   :  { %v10220_v39 = vpop.eup %8616 }
0x1313   :  { %v4668_v0 = vadd.f32 %v4664_v57, %v10135_v1  ;;  %v4662_v10 = vmul.f32 0.0625, %v10220_v39  ;;  %v4669_v23 = vrot.slane %v4665_v51, 7  ;;  %v4681_v58 = vrot.slane %v4665_v51, 1 }
0x1315   :  { %v4666_v59 = vadd.f32 %v4662_v10, %v10138_v33  ;;  %v4672_v11 = vrot.slane %v4668_v0, 7  ;;  %v4684_v28 = vrot.slane %v4668_v0, 1  ;;  %v4696_v9 = vpack.c.bf16 %v4668_v0, %v4667_v36 }
0x1317   :  { %v4695_v62 = vpack.c.bf16 %v4666_v59, %v4665_v51  ;;  %v4670_v56 = vrot.slane %v4666_v59, 7  ;;  %v4676_v44 = vsel %vm45_vm3, %v4672_v11, %v4669_v23  ;;  %v4682_v25 = vrot.slane %v4666_v59, 1 }
0x1318   :  { %v4677_v60 = vsel %vm37_vm2, %v4676_v44, 0.0  ;;  %v4673_v32 = vsel %vm45_vm3, %v4671_v31, %v4672_v11  ;;  %v4688_v2 = vsel %vm58_vm4, %v4684_v28, %v4681_v58  ;;  %v4685_v27 = vsel %vm58_vm4, %v4683_v41, %v4684_v28 }
0x1319   :  { %8138 = vmatprep.mubr.msk.bf16.mxu1 %vm71_vm1, %v4695_v62  ;;  %v4674_v34 = vsel %vm45_vm3, %v4670_v56, %v4671_v31  ;;  %v4675_v8 = vsel %vm45_vm3, %v4669_v23, %v4670_v56  ;;  %v4686_v40 = vsel %vm58_vm4, %v4682_v25, %v4683_v41  ;;  %v4687_v45 = vsel %vm58_vm4, %v4681_v58, %v4682_v25 }
0x131a   :  { %8139 = vmatmul.mubr.msk.bf16.vlgmr.msra.gmra.mxu1 %vm71_vm1, %v4696_v9  ;;  %v4693_v37 = vpack.c.bf16 %v4675_v8, %v4677_v60  ;;  %v4679_v6 = vsel %vm37_vm2, %v4674_v34, 0.0  ;;  %v4690_v24 = vsel %vm40_vm5, %v4686_v40, 0.0  ;;  %v4692_v17 = vsel %vm40_vm5, %v4688_v2, 0.0 }
0x131b   :  { %8149 = vmatpush3.bf16.msra.mxu1 %v8827_v12  ;;  %v4694_v7 = vpack.c.bf16 %v4673_v32, %v4679_v6  ;;  %v4807_v46 = vpack.c.bf16 %v4690_v24, %v4687_v45  ;;  %v4808_v52 = vpack.c.bf16 %v4692_v17, %v4685_v27 }
0x131c   :  { %8144 = vmatprep.mubr.msk.bf16.mxu0 %vm71_vm1, %v4693_v37  ;;  %8415 = vmatprep.subr.msk.bf16.mxu1 %vm78_vm0, %v10179_v49 }
0x131d   :  { %8145 = vmatmul.mubr.msk.bf16.vlgmr.msra.gmra.mxu0 %vm71_vm1, %v4694_v7  ;;  %8150 = vmatprep.mubr.msk.bf16.mxu1 %vm71_vm1, %v4807_v46 }
0x131e   :  { %8155 = vmatpush3.bf16.msra.mxu0 %v8797_v4 }
0x131f   :  { %8416 = vmatprep.subr.msk.bf16.mxu0 %vm78_vm0, %v10193_v55 }
0x1322   :  { %8151 = vmatmul.mubr.msk.bf16.vlgmr.msra.gmra.mxu1 %vm71_vm1, %v4808_v52 }
0x1323   :  { %8161 = vmatpush3.bf16.msra.mxu1 %v8836_v14 }
0x1324   :  { %8417 = vmatprep.subr.msk.bf16.mxu1 %vm78_vm0, %v10202_v26 }
0x13da   :  { %v8140_v47 = vpop.f32.mrf.mxu1 }
0x13dc   :  { %v4737_v3 = vpop.f32.mrf.mxu1 }
0x13dd   :  { %v8146_v20 = vpop.f32.mrf.mxu0 }
0x13de   :  { %v8141_v22 = vpop.f32.mrf.mxu1  ;;  %v4801_v16 = vadd.f32 %v8146_v20, %v8140_v47 }
0x13df   :  { %v4792_v54 = vpop.f32.mrf.mxu0 }
0x13e0   :  { %v4740_v18 = vpop.f32.mrf.mxu1  ;;  %v4793_v35 = vadd.f32 %v4792_v54, %v4737_v3 }
0x13e1   :  { %v8147_v61 = vpop.f32.mrf.mxu0 }
0x13e2   :  { %v8152_v42 = vpop.f32.mrf.mxu1  ;;  %v4804_v53 = vadd.f32 %v8147_v61, %v8141_v22 }
0x13e3   :  { %v4866_v63 = vadd.f32 %v8152_v42, %v4801_v16  ;;  %v4795_v30 = vpop.f32.mrf.mxu0 }
0x13e4   :  { %v4849_v29 = vpop.f32.mrf.mxu1  ;;  %v4796_v36 = vadd.f32 %v4795_v30, %v4740_v18 }
0x13e5   :  { %v4870_v43 = vadd.f32 %v4866_v63, %v8899_v48  ;;  %v4864_v57 = vadd.f32 %v4849_v29, %v4793_v35 }
0x13e6   :  { %v8153_v51 = vpop.f32.mrf.mxu1 }
0x13e7   :  { %8618 = vtanh.f32 %v4870_v43  ;;  %v4868_v0 = vadd.f32 %v4864_v57, %v8899_v48  ;;  %v4867_v10 = vadd.f32 %v8153_v51, %v4804_v53 }
0x13e8   :  { %v4852_v59 = vpop.f32.mrf.mxu1 }
0x13e9   :  { %8620 = vtanh.f32 %v4868_v0  ;;  %v4871_v23 = vadd.f32 %v4867_v10, %v8899_v48  ;;  %v4865_v11 = vadd.f32 %v4852_v59, %v4796_v36 }
0x13eb   :  { %8622 = vtanh.f32 %v4871_v23  ;;  %v4869_v28 = vadd.f32 %v4865_v11, %v8899_v48 }
0x13ed   :  { %8624 = vtanh.f32 %v4869_v28 }
0x13f4   :  { %v10269_v31 = vpop.eup %8618 }
0x13f5   :  { %v4878_v56 = vmul.f32 0.0625, %v10269_v31 }
0x13f6   :  { %v10271_v62 = vpop.eup %8620 }
0x13f7   :  { %v4876_v44 = vmul.f32 0.0625, %v10271_v62  ;;  %v4882_v41 = vadd.f32 %v4878_v56, %v10132_v5 }
0x13f8   :  { %v10275_v58 = vpop.eup %8622 }
0x13f9   :  { %v4879_v9 = vmul.f32 0.0625, %v10275_v58  ;;  %v4880_v60 = vadd.f32 %v4876_v44, %v10128_v50  ;;  %v4886_v6 = vrot.slane %v4882_v41, 7  ;;  %v4898_v47 = vrot.slane %v4882_v41, 1 }
0x13fa   :  { %v10279_v25 = vpop.eup %8624 }
0x13fb   :  { %v4883_v34 = vadd.f32 %v4879_v9, %v10135_v1  ;;  %v4877_v8 = vmul.f32 0.0625, %v10279_v25  ;;  %v4884_v2 = vrot.slane %v4880_v60, 7  ;;  %v4896_v46 = vrot.slane %v4880_v60, 1 }
0x13fd   :  { %v4881_v32 = vadd.f32 %v4877_v8, %v10138_v33  ;;  %v4887_v37 = vrot.slane %v4883_v34, 7  ;;  %v4899_v40 = vrot.slane %v4883_v34, 1  ;;  %v4911_v27 = vpack.c.bf16 %v4883_v34, %v4882_v41 }
0x13ff   :  { %v4910_v45 = vpack.c.bf16 %v4881_v32, %v4880_v60  ;;  %v4885_v7 = vrot.slane %v4881_v32, 7  ;;  %v4891_v24 = vsel %vm45_vm3, %v4887_v37, %v4884_v2  ;;  %v4897_v52 = vrot.slane %v4881_v32, 1 }
0x1400   :  { %v4892_v17 = vsel %vm37_vm2, %v4891_v24, 0.0  ;;  %v4888_v22 = vsel %vm45_vm3, %v4886_v6, %v4887_v37  ;;  %v4903_v54 = vsel %vm58_vm4, %v4899_v40, %v4896_v46  ;;  %v4900_v29 = vsel %vm58_vm4, %v4898_v47, %v4899_v40 }
0x1401   :  { %8156 = vmatprep.mubr.msk.bf16.mxu0 %vm71_vm1, %v4910_v45  ;;  %v4889_v3 = vsel %vm45_vm3, %v4885_v7, %v4886_v6  ;;  %v4890_v20 = vsel %vm45_vm3, %v4884_v2, %v4885_v7  ;;  %v4901_v61 = vsel %vm58_vm4, %v4897_v52, %v4898_v47  ;;  %v4902_v42 = vsel %vm58_vm4, %v4896_v46, %v4897_v52 }
0x1402   :  { %8157 = vmatmul.mubr.msk.bf16.vlgmr.msra.gmra.mxu0 %vm71_vm1, %v4911_v27  ;;  %v4908_v18 = vpack.c.bf16 %v4890_v20, %v4892_v17  ;;  %v4894_v16 = vsel %vm37_vm2, %v4889_v3, 0.0  ;;  %v4905_v63 = vsel %vm40_vm5, %v4901_v61, 0.0  ;;  %v4907_v53 = vsel %vm40_vm5, %v4903_v54, 0.0 }
0x1403   :  { %8167 = vmatpush3.bf16.msra.mxu0 %v8827_v12  ;;  %v4909_v35 = vpack.c.bf16 %v4888_v22, %v4894_v16  ;;  %v5022_v30 = vpack.c.bf16 %v4905_v63, %v4902_v42  ;;  %v5023_v43 = vpack.c.bf16 %v4907_v53, %v4900_v29  ;;  %v5308_v46 = vmul.f32 2.0, %v10269_v31 }
0x1404   :  { %8162 = vmatprep.mubr.msk.bf16.mxu1 %vm71_vm1, %v4908_v18  ;;  %8418 = vmatprep.subr.msk.bf16.mxu0 %vm78_vm0, %v10179_v49  ;;  %v5306_v17 = vmul.f32 2.0, %v10271_v62  ;;  %v5309_v20 = vmul.f32 2.0, %v10275_v58 }
0x1405   :  { %8163 = vmatmul.mubr.msk.bf16.vlgmr.msra.gmra.mxu1 %vm71_vm1, %v4909_v35  ;;  %8168 = vmatprep.mubr.msk.bf16.mxu0 %vm71_vm1, %v5022_v30  ;;  %v5312_v52 = vadd.f32 %v10210_v15, %v5308_v46  ;;  %v5307_v35 = vmul.f32 2.0, %v10279_v25 }
0x1406   :  { %8173 = vmatpush3.bf16.msra.mxu1 %v8797_v4  ;;  %v5310_v42 = vadd.f32 %v10212_v19, %v5306_v17  ;;  %v5313_v15 = vadd.f32 %v10216_v38, %v5309_v20 }
0x1407   :  { %8419 = vmatprep.subr.msk.bf16.mxu1 %vm78_vm0, %v10193_v55 }
0x140a   :  { %8169 = vmatmul.mubr.msk.bf16.vlgmr.msra.gmra.mxu0 %vm71_vm1, %v5023_v43 }
0x140b   :  { %8179 = vmatpush3.bf16.msra.mxu0 %v8836_v14 }
0x140c   :  { %8420 = vmatprep.subr.msk.bf16.mxu0 %vm78_vm0, %v10202_v26 }
0x14c2   :  { %v8158_v57 = vpop.f32.mrf.mxu0 }
0x14c4   :  { %v4952_v51 = vpop.f32.mrf.mxu0 }
0x14c5   :  { %v8164_v36 = vpop.f32.mrf.mxu1 }
0x14c6   :  { %v8159_v0 = vpop.f32.mrf.mxu0  ;;  %v5016_v23 = vadd.f32 %v8164_v36, %v8158_v57 }
0x14c7   :  { %v5007_v10 = vpop.f32.mrf.mxu1 }
0x14c8   :  { %v4955_v59 = vpop.f32.mrf.mxu0  ;;  %v5008_v56 = vadd.f32 %v5007_v10, %v4952_v51  ;;  %v5311_v51 = vadd.f32 %v10220_v39, %v5307_v35 }
0x14c9   :  { %v8165_v11 = vpop.f32.mrf.mxu1 }
0x14ca   :  { %v8170_v28 = vpop.f32.mrf.mxu0  ;;  %v5019_v41 = vadd.f32 %v8165_v11, %v8159_v0 }
0x14cb   :  { %v5081_v44 = vadd.f32 %v8170_v28, %v5016_v23  ;;  %v5010_v9 = vpop.f32.mrf.mxu1 }
0x14cc   :  { %v5064_v60 = vpop.f32.mrf.mxu0  ;;  %v5011_v2 = vadd.f32 %v5010_v9, %v4955_v59 }
0x14cd   :  { %v5085_v34 = vadd.f32 %v5081_v44, %v8899_v48  ;;  %v5079_v8 = vadd.f32 %v5064_v60, %v5008_v56 }
0x14ce   :  { %v8171_v32 = vpop.f32.mrf.mxu0 }
0x14cf   :  { %8626 = vtanh.f32 %v5085_v34  ;;  %v5083_v37 = vadd.f32 %v5079_v8, %v8899_v48  ;;  %v5082_v6 = vadd.f32 %v8171_v32, %v5019_v41 }
0x14d0   :  { %v5067_v40 = vpop.f32.mrf.mxu0 }
0x14d1   :  { %8628 = vtanh.f32 %v5083_v37  ;;  %v5086_v45 = vadd.f32 %v5082_v6, %v8899_v48  ;;  %v5080_v7 = vadd.f32 %v5067_v40, %v5011_v2 }
0x14d3   :  { %8630 = vtanh.f32 %v5086_v45  ;;  %v5084_v24 = vadd.f32 %v5080_v7, %v8899_v48 }
0x14d5   :  { %8632 = vtanh.f32 %v5084_v24 }
0x14dc   :  { %v8627_v27 = vpop.eup %8626 }
0x14dd   :  { %v5316_v47 = vmul.f32 2.0, %v8627_v27  ;;  %v5093_v22 = vmul.f32 0.125, %v8627_v27 }
0x14de   :  { %v8629_v3 = vpop.eup %8628 }
0x14df   :  { %v5314_v54 = vmul.f32 2.0, %v8629_v3  ;;  %v5091_v18 = vmul.f32 0.125, %v8629_v3  ;;  %v10332_v16 = vadd.f32 %v5316_v47, %v5312_v52  ;;  %v5097_v29 = vadd.f32 %v5093_v22, %v10132_v5 }
0x14e0   :  { %v8631_v61 = vpop.eup %8630 }
0x14e1   :  { %v5094_v31 = vmul.f32 0.125, %v8631_v61  ;;  %v5317_v63 = vmul.f32 2.0, %v8631_v61  ;;  %v5095_v62 = vadd.f32 %v5091_v18, %v10128_v50  ;;  %v10339_v58 = vadd.f32 %v5314_v54, %v5310_v42 }
0x14e2   :  { %v8633_v30 = vpop.eup %8632  ;;  %v5101_v59 = vrot.slane %v5097_v29, 7  ;;  %v5113_v60 = vrot.slane %v5097_v29, 1 }
0x14e3   :  { %v5098_v53 = vadd.f32 %v5094_v31, %v10135_v1  ;;  %v5315_v43 = vmul.f32 2.0, %v8633_v30  ;;  %v5092_v57 = vmul.f32 0.125, %v8633_v30  ;;  %v10343_v19 = vadd.f32 %v5317_v63, %v5313_v15 }
0x14e4   :  { %v5099_v36 = vrot.slane %v5095_v62, 7  ;;  %v5111_v56 = vrot.slane %v5095_v62, 1 }
0x14e5   :  { %v5096_v25 = vadd.f32 %v5092_v57, %v10138_v33  ;;  %v5102_v0 = vrot.slane %v5098_v53, 7  ;;  %v5114_v10 = vrot.slane %v5098_v53, 1  ;;  %v10346_v23 = vadd.f32 %v5315_v43, %v5311_v51 }
0x14e6   :  { %v5126_v44 = vpack.c.bf16 %v5098_v53, %v5097_v29 }
0x14e7   :  { %v5125_v38 = vpack.c.bf16 %v5096_v25, %v5095_v62  ;;  %v5100_v11 = vrot.slane %v5096_v25, 7  ;;  %v5106_v28 = vsel %vm45_vm3, %v5102_v0, %v5099_v36  ;;  %v5112_v9 = vrot.slane %v5096_v25, 1 }
0x14e8   :  { %v5107_v39 = vsel %vm37_vm2, %v5106_v28, 0.0  ;;  %v5103_v8 = vsel %vm45_vm3, %v5101_v59, %v5102_v0  ;;  %v5118_v32 = vsel %vm58_vm4, %v5114_v10, %v5111_v56  ;;  %v5115_v46 = vsel %vm58_vm4, %v5113_v60, %v5114_v10 }
0x14e9   :  { %8174 = vmatprep.mubr.msk.bf16.mxu1 %vm71_vm1, %v5125_v38  ;;  %v5104_v41 = vsel %vm45_vm3, %v5100_v11, %v5101_v59  ;;  %v5105_v34 = vsel %vm45_vm3, %v5099_v36, %v5100_v11  ;;  %v5116_v6 = vsel %vm58_vm4, %v5112_v9, %v5113_v60  ;;  %v5117_v40 = vsel %vm58_vm4, %v5111_v56, %v5112_v9 }
0x14ea   :  { %8175 = vmatmul.mubr.msk.bf16.vlgmr.msra.gmra.mxu1 %vm71_vm1, %v5126_v44  ;;  %v5123_v2 = vpack.c.bf16 %v5105_v34, %v5107_v39  ;;  %v5109_v37 = vsel %vm37_vm2, %v5104_v41, 0.0  ;;  %v5120_v7 = vsel %vm40_vm5, %v5116_v6, 0.0  ;;  %v5122_v27 = vsel %vm40_vm5, %v5118_v32, 0.0 }
0x14eb   :  { %8185 = vmatpush3.bf16.msra.mxu1 %v8827_v12  ;;  %v5124_v45 = vpack.c.bf16 %v5103_v8, %v5109_v37  ;;  %v5237_v24 = vpack.c.bf16 %v5120_v7, %v5117_v40  ;;  %v5238_v17 = vpack.c.bf16 %v5122_v27, %v5115_v46 }
0x14ec   :  { %8180 = vmatprep.mubr.msk.bf16.mxu0 %vm71_vm1, %v5123_v2  ;;  %8421 = vmatprep.subr.msk.bf16.mxu1 %vm78_vm0, %v10179_v49 }
0x14ed   :  { %8181 = vmatmul.mubr.msk.bf16.vlgmr.msra.gmra.mxu0 %vm71_vm1, %v5124_v45  ;;  %8186 = vmatprep.mubr.msk.bf16.mxu1 %vm71_vm1, %v5237_v24 }
0x14ee   :  { %8191 = vmatpush3.bf16.msra.mxu0 %v8797_v4 }
0x14ef   :  { %8422 = vmatprep.subr.msk.bf16.mxu0 %vm78_vm0, %v10193_v55 }
0x14f2   :  { %8187 = vmatmul.mubr.msk.bf16.vlgmr.msra.gmra.mxu1 %vm71_vm1, %v5238_v17 }
0x14f3   :  { %8197 = vmatpush3.bf16.msra.mxu1 %v8836_v14 }
0x14f4   :  { %8423 = vmatprep.subr.msk.bf16.mxu1 %vm78_vm0, %v10202_v26 }
0x15aa   :  { %v8176_v52 = vpop.f32.mrf.mxu1 }
0x15ac   :  { %v5167_v47 = vpop.f32.mrf.mxu1 }
0x15ad   :  { %v8182_v3 = vpop.f32.mrf.mxu0 }
0x15ae   :  { %v8177_v20 = vpop.f32.mrf.mxu1  ;;  %v5231_v18 = vadd.f32 %v8182_v3, %v8176_v52 }
0x15af   :  { %v5222_v22 = vpop.f32.mrf.mxu0 }
0x15b0   :  { %v5170_v54 = vpop.f32.mrf.mxu1  ;;  %v5223_v35 = vadd.f32 %v5222_v22, %v5167_v47 }
0x15b1   :  { %v8183_v61 = vpop.f32.mrf.mxu0 }
0x15b2   :  { %v8188_v42 = vpop.f32.mrf.mxu1  ;;  %v5234_v30 = vadd.f32 %v8183_v61, %v8177_v20 }
0x15b3   :  { %v5296_v31 = vadd.f32 %v8188_v42, %v5231_v18  ;;  %v5225_v63 = vpop.f32.mrf.mxu0 }
0x15b4   :  { %v5279_v62 = vpop.f32.mrf.mxu1  ;;  %v5226_v43 = vadd.f32 %v5225_v63, %v5170_v54 }
0x15b5   :  { %v5300_v15 = vadd.f32 %v5296_v31, %v8899_v48  ;;  %v5294_v29 = vadd.f32 %v5279_v62, %v5223_v35 }
0x15b6   :  { %v8189_v53 = vpop.f32.mrf.mxu1 }
0x15b7   :  { %8634 = vtanh.f32 %v5300_v15  ;;  %v5298_v57 = vadd.f32 %v5294_v29, %v8899_v48  ;;  %v5297_v51 = vadd.f32 %v8189_v53, %v5234_v30 }
0x15b8   :  { %v5282_v25 = vpop.f32.mrf.mxu1 }
0x15b9   :  { %8636 = vtanh.f32 %v5298_v57  ;;  %v5301_v36 = vadd.f32 %v5297_v51, %v8899_v48  ;;  %v5295_v0 = vadd.f32 %v5282_v25, %v5226_v43 }
0x15bb   :  { %8638 = vtanh.f32 %v5301_v36  ;;  %v5299_v10 = vadd.f32 %v5295_v0, %v8899_v48 }
0x15bd   :  { %8640 = vtanh.f32 %v5299_v10 }
0x15c4   :  { %v8635_v59 = vpop.eup %8634 }
0x15c5   :  { %v5324_v38 = vadd.f32 %v8635_v59, %v10332_v16 }
0x15c6   :  { %v8637_v11 = vpop.eup %8636 }
0x15c7   :  { %v5322_v28 = vadd.f32 %v8637_v11, %v10339_v58  ;;  %v5328_v44 = vmul.f32 0.020833334, %v5324_v38 }
0x15c8   :  { %v8639_v56 = vpop.eup %8638 }
0x15c9   :  { %v5326_v39 = vmul.f32 0.020833334, %v5322_v28  ;;  %v5325_v9 = vadd.f32 %v8639_v56, %v10343_v19  ;;  %v10399_v32 = vadd.f32 %v5328_v44, %v10132_v5 }
0x15ca   :  { %v8641_v60 = vpop.eup %8640 }
0x15cb   :  { %v10395_v41 = vadd.f32 %v5326_v39, %v10128_v50  ;;  %v5329_v34 = vmul.f32 0.020833334, %v5325_v9  ;;  %v5323_v8 = vadd.f32 %v8641_v60, %v10346_v23  ;;  %v5336_v6 = vrot.slane %v10399_v32, 7 }
0x15cc   :  { %v5348_v24 = vrot.slane %v10399_v32, 1 }
0x15cd   :  { %v10402_v16 = vadd.f32 %v5329_v34, %v10135_v1  ;;  %v5327_v2 = vmul.f32 0.020833334, %v5323_v8  ;;  %v5334_v37 = vrot.slane %v10395_v41, 7  ;;  %v5346_v40 = vrot.slane %v10395_v41, 1 }
0x15cf   :  { %v10405_v58 = vadd.f32 %v5327_v2, %v10138_v33  ;;  %v5337_v19 = vrot.slane %v10402_v16, 7  ;;  %v5349_v50 = vrot.slane %v10402_v16, 1  ;;  %v5361_v33 = vpack.c.bf16 %v10402_v16, %v10399_v32 }
0x15d1   :  { %v5360_v23 = vpack.c.bf16 %v10405_v58, %v10395_v41  ;;  %v5335_v5 = vrot.slane %v10405_v58, 7  ;;  %v5341_v1 = vsel %vm45_vm3, %v5337_v19, %v5334_v37  ;;  %v5347_v7 = vrot.slane %v10405_v58, 1 }
0x15d2   :  { %v5342_v45 = vsel %vm37_vm2, %v5341_v1, 0.0  ;;  %v5338_v17 = vsel %vm45_vm3, %v5336_v6, %v5337_v19  ;;  %v5353_v52 = vsel %vm58_vm4, %v5349_v50, %v5346_v40  ;;  %v5350_v42 = vsel %vm58_vm4, %v5348_v24, %v5349_v50 }
0x15d3   :  { %8192 = vmatprep.mubr.msk.bf16.mxu0 %vm71_vm1, %v5360_v23  ;;  %v5339_v46 = vsel %vm45_vm3, %v5335_v5, %v5336_v6  ;;  %v5340_v27 = vsel %vm45_vm3, %v5334_v37, %v5335_v5  ;;  %v5351_v20 = vsel %vm58_vm4, %v5347_v7, %v5348_v24  ;;  %v5352_v22 = vsel %vm58_vm4, %v5346_v40, %v5347_v7 }
0x15d4   :  { %8193 = vmatmul.mubr.msk.bf16.vlgmr.msra.gmra.mxu0 %vm71_vm1, %v5361_v33  ;;  %v5358_v47 = vpack.c.bf16 %v5340_v27, %v5342_v45  ;;  %v5344_v3 = vsel %vm37_vm2, %v5339_v46, 0.0  ;;  %v5355_v18 = vsel %vm40_vm5, %v5351_v20, 0.0  ;;  %v5357_v35 = vsel %vm40_vm5, %v5353_v52, 0.0 }
0x15d5   :  { %8203 = vmatpush3.bf16.msra.mxu0 %v8827_v12  ;;  %v5359_v54 = vpack.c.bf16 %v5338_v17, %v5344_v3  ;;  %v5472_v61 = vpack.c.bf16 %v5355_v18, %v5352_v22  ;;  %v5473_v31 = vpack.c.bf16 %v5357_v35, %v5350_v42 }
0x15d6   :  { %8198 = vmatprep.mubr.msk.bf16.mxu1 %vm71_vm1, %v5358_v47  ;;  %8424 = vmatprep.subr.msk.bf16.mxu0 %vm78_vm0, %v10179_v49 }
0x15d7   :  { %8199 = vmatmul.mubr.msk.bf16.vlgmr.msra.gmra.mxu1 %vm71_vm1, %v5359_v54  ;;  %8204 = vmatprep.mubr.msk.bf16.mxu0 %vm71_vm1, %v5472_v61 }
0x15d8   :  { %8209 = vmatpush3.bf16.msra.mxu1 %v8797_v4 }
0x15d9   :  { %8425 = vmatprep.subr.msk.bf16.mxu1 %vm78_vm0, %v10193_v55 }
0x15dc   :  { %8205 = vmatmul.mubr.msk.bf16.vlgmr.msra.gmra.mxu0 %vm71_vm1, %v5473_v31 }
0x15dd   :  { %8215 = vmatpush3.bf16.msra.mxu0 %v8836_v14 }
0x15de   :  { %8426 = vmatprep.subr.msk.bf16.mxu0 %vm78_vm0, %v10202_v26 }
0x1694   :  { %v8194_v63 = vpop.f32.mrf.mxu0 }
0x1696   :  { %v5402_v62 = vpop.f32.mrf.mxu0 }
0x1697   :  { %v8200_v30 = vpop.f32.mrf.mxu1 }
0x1698   :  { %v8195_v15 = vpop.f32.mrf.mxu0  ;;  %v5466_v43 = vadd.f32 %v8200_v30, %v8194_v63 }
0x1699   :  { %v5457_v29 = vpop.f32.mrf.mxu1 }
0x169a   :  { %v5405_v53 = vpop.f32.mrf.mxu0  ;;  %v5458_v25 = vadd.f32 %v5457_v29, %v5402_v62 }
0x169b   :  { %v8201_v57 = vpop.f32.mrf.mxu1 }
0x169c   :  { %v8206_v51 = vpop.f32.mrf.mxu0  ;;  %v5469_v59 = vadd.f32 %v8201_v57, %v8195_v15 }
0x169d   :  { %v5531_v36 = vadd.f32 %v8206_v51, %v5466_v43  ;;  %v5460_v0 = vpop.f32.mrf.mxu1 }
0x169e   :  { %v5514_v10 = vpop.f32.mrf.mxu0  ;;  %v5461_v56 = vadd.f32 %v5460_v0, %v5405_v53 }
0x169f   :  { %v5535_v38 = vadd.f32 %v5531_v36, %v8899_v48  ;;  %v5529_v11 = vadd.f32 %v5514_v10, %v5458_v25 }
0x16a0   :  { %v8207_v28 = vpop.f32.mrf.mxu0 }
0x16a1   :  { %8642 = vtanh.f32 %v5535_v38  ;;  %v5533_v44 = vadd.f32 %v5529_v11, %v8899_v48  ;;  %v5532_v39 = vadd.f32 %v8207_v28, %v5469_v59 }
0x16a2   :  { %v5517_v9 = vpop.f32.mrf.mxu0 }
0x16a3   :  { %8644 = vtanh.f32 %v5533_v44  ;;  %v5536_v60 = vadd.f32 %v5532_v39, %v8899_v48  ;;  %v5530_v34 = vadd.f32 %v5517_v9, %v5461_v56 }
0x16a5   :  { %8646 = vtanh.f32 %v5536_v60  ;;  %v5534_v8 = vadd.f32 %v5530_v34, %v8899_v48 }
0x16a7   :  { %8648 = vtanh.f32 %v5534_v8 }
0x16ae   :  { %v10462_v2 = vpop.eup %8642 }
0x16af   :  { %v5543_v19 = vmul.f32 0.0625, %v10462_v2 }
0x16b0   :  { %v10464_v37 = vpop.eup %8644 }
0x16b1   :  { %v5541_v50 = vmul.f32 0.0625, %v10464_v37  ;;  %v5547_v40 = vadd.f32 %v5543_v19, %v10399_v32 }
0x16b2   :  { %v10468_v6 = vpop.eup %8646 }
0x16b3   :  { %v5544_v23 = vmul.f32 0.0625, %v10468_v6  ;;  %v5545_v5 = vadd.f32 %v5541_v50, %v10395_v41  ;;  %v5551_v17 = vrot.slane %v5547_v40, 7  ;;  %v5563_v61 = vrot.slane %v5547_v40, 1 }
0x16b4   :  { %v10472_v1 = vpop.eup %8648 }
0x16b5   :  { %v5548_v33 = vadd.f32 %v5544_v23, %v10402_v16  ;;  %v5542_v45 = vmul.f32 0.0625, %v10472_v1  ;;  %v5549_v24 = vrot.slane %v5545_v5, 7  ;;  %v5561_v20 = vrot.slane %v5545_v5, 1 }
0x16b7   :  { %v5546_v7 = vadd.f32 %v5542_v45, %v10405_v58  ;;  %v5552_v46 = vrot.slane %v5548_v33, 7  ;;  %v5564_v27 = vrot.slane %v5548_v33, 1  ;;  %v5576_v22 = vpack.c.bf16 %v5548_v33, %v5547_v40 }
0x16b9   :  { %v5575_v52 = vpack.c.bf16 %v5546_v7, %v5545_v5  ;;  %v5550_v47 = vrot.slane %v5546_v7, 7  ;;  %v5556_v3 = vsel %vm45_vm3, %v5552_v46, %v5549_v24  ;;  %v5562_v18 = vrot.slane %v5546_v7, 1 }
0x16ba   :  { %v5557_v54 = vsel %vm37_vm2, %v5556_v3, 0.0  ;;  %v5553_v31 = vsel %vm45_vm3, %v5551_v17, %v5552_v46  ;;  %v5568_v63 = vsel %vm58_vm4, %v5564_v27, %v5561_v20  ;;  %v5565_v51 = vsel %vm58_vm4, %v5563_v61, %v5564_v27 }
0x16bb   :  { %8210 = vmatprep.mubr.msk.bf16.mxu1 %vm71_vm1, %v5575_v52  ;;  %v5554_v42 = vsel %vm45_vm3, %v5550_v47, %v5551_v17  ;;  %v5555_v35 = vsel %vm45_vm3, %v5549_v24, %v5550_v47  ;;  %v5566_v15 = vsel %vm58_vm4, %v5562_v18, %v5563_v61  ;;  %v5567_v29 = vsel %vm58_vm4, %v5561_v20, %v5562_v18 }
0x16bc   :  { %8211 = vmatmul.mubr.msk.bf16.vlgmr.msra.gmra.mxu1 %vm71_vm1, %v5576_v22  ;;  %v5573_v62 = vpack.c.bf16 %v5555_v35, %v5557_v54  ;;  %v5559_v30 = vsel %vm37_vm2, %v5554_v42, 0.0  ;;  %v5570_v43 = vsel %vm40_vm5, %v5566_v15, 0.0  ;;  %v5572_v25 = vsel %vm40_vm5, %v5568_v63, 0.0 }
0x16bd   :  { %8221 = vmatpush3.bf16.msra.mxu1 %v8827_v12  ;;  %v5574_v53 = vpack.c.bf16 %v5553_v31, %v5559_v30  ;;  %v5687_v57 = vpack.c.bf16 %v5570_v43, %v5567_v29  ;;  %v5688_v36 = vpack.c.bf16 %v5572_v25, %v5565_v51 }
0x16be   :  { %8216 = vmatprep.mubr.msk.bf16.mxu0 %vm71_vm1, %v5573_v62  ;;  %8427 = vmatprep.subr.msk.bf16.mxu1 %vm78_vm0, %v10179_v49 }
0x16bf   :  { %8217 = vmatmul.mubr.msk.bf16.vlgmr.msra.gmra.mxu0 %vm71_vm1, %v5574_v53  ;;  %8222 = vmatprep.mubr.msk.bf16.mxu1 %vm71_vm1, %v5687_v57 }
0x16c0   :  { %8227 = vmatpush3.bf16.msra.mxu0 %v8797_v4 }
0x16c1   :  { %8428 = vmatprep.subr.msk.bf16.mxu0 %vm78_vm0, %v10193_v55 }
0x16c4   :  { %8223 = vmatmul.mubr.msk.bf16.vlgmr.msra.gmra.mxu1 %vm71_vm1, %v5688_v36 }
0x16c5   :  { %8233 = vmatpush3.bf16.msra.mxu1 %v8836_v14 }
0x16c6   :  { %8429 = vmatprep.subr.msk.bf16.mxu1 %vm78_vm0, %v10202_v26 }
0x177c   :  { %v8212_v0 = vpop.f32.mrf.mxu1 }
0x177e   :  { %v5617_v10 = vpop.f32.mrf.mxu1 }
0x177f   :  { %v8218_v59 = vpop.f32.mrf.mxu0 }
0x1780   :  { %v8213_v38 = vpop.f32.mrf.mxu1  ;;  %v5681_v56 = vadd.f32 %v8218_v59, %v8212_v0 }
0x1781   :  { %v5672_v11 = vpop.f32.mrf.mxu0 }
0x1782   :  { %v5620_v28 = vpop.f32.mrf.mxu1  ;;  %v5673_v9 = vadd.f32 %v5672_v11, %v5617_v10 }
0x1783   :  { %v8219_v44 = vpop.f32.mrf.mxu0 }
0x1784   :  { %v8224_v39 = vpop.f32.mrf.mxu1  ;;  %v5684_v19 = vadd.f32 %v8219_v44, %v8213_v38 }
0x1785   :  { %v5746_v60 = vadd.f32 %v8224_v39, %v5681_v56  ;;  %v5675_v34 = vpop.f32.mrf.mxu0 }
0x1786   :  { %v5729_v8 = vpop.f32.mrf.mxu1  ;;  %v5676_v40 = vadd.f32 %v5675_v34, %v5620_v28 }
0x1787   :  { %v5750_v50 = vadd.f32 %v5746_v60, %v8899_v48  ;;  %v5744_v23 = vadd.f32 %v5729_v8, %v5673_v9 }
0x1788   :  { %v8225_v5 = vpop.f32.mrf.mxu1 }
0x1789   :  { %8650 = vtanh.f32 %v5750_v50  ;;  %v5748_v33 = vadd.f32 %v5744_v23, %v8899_v48  ;;  %v5747_v45 = vadd.f32 %v8225_v5, %v5684_v19 }
0x178a   :  { %v5732_v7 = vpop.f32.mrf.mxu1 }
0x178b   :  { %8652 = vtanh.f32 %v5748_v33  ;;  %v5751_v24 = vadd.f32 %v5747_v45, %v8899_v48  ;;  %v5745_v46 = vadd.f32 %v5732_v7, %v5676_v40 }
0x178d   :  { %8654 = vtanh.f32 %v5751_v24  ;;  %v5749_v27 = vadd.f32 %v5745_v46, %v8899_v48 }
0x178f   :  { %8656 = vtanh.f32 %v5749_v27 }
0x1796   :  { %v10521_v17 = vpop.eup %8650 }
0x1797   :  { %v5758_v47 = vmul.f32 0.0625, %v10521_v17 }
0x1798   :  { %v10523_v52 = vpop.eup %8652 }
0x1799   :  { %v5756_v3 = vmul.f32 0.0625, %v10523_v52  ;;  %v5762_v61 = vadd.f32 %v5758_v47, %v10399_v32 }
0x179a   :  { %v10527_v20 = vpop.eup %8654 }
0x179b   :  { %v5759_v22 = vmul.f32 0.0625, %v10527_v20  ;;  %v5760_v54 = vadd.f32 %v5756_v3, %v10395_v41  ;;  %v5766_v30 = vrot.slane %v5762_v61, 7  ;;  %v5778_v0 = vrot.slane %v5762_v61, 1 }
0x179c   :  { %v10531_v18 = vpop.eup %8656 }
0x179d   :  { %v5763_v42 = vadd.f32 %v5759_v22, %v10402_v16  ;;  %v5757_v35 = vmul.f32 0.0625, %v10531_v18  ;;  %v5764_v63 = vrot.slane %v5760_v54, 7  ;;  %v5776_v57 = vrot.slane %v5760_v54, 1 }
0x179f   :  { %v5761_v31 = vadd.f32 %v5757_v35, %v10405_v58  ;;  %v5767_v62 = vrot.slane %v5763_v42, 7  ;;  %v5779_v15 = vrot.slane %v5763_v42, 1  ;;  %v5791_v51 = vpack.c.bf16 %v5763_v42, %v5762_v61 }
0x17a1   :  { %v5790_v29 = vpack.c.bf16 %v5761_v31, %v5760_v54  ;;  %v5765_v53 = vrot.slane %v5761_v31, 7  ;;  %v5771_v43 = vsel %vm45_vm3, %v5767_v62, %v5764_v63  ;;  %v5777_v36 = vrot.slane %v5761_v31, 1 }
0x17a2   :  { %v5772_v25 = vsel %vm37_vm2, %v5771_v43, 0.0  ;;  %v5768_v38 = vsel %vm45_vm3, %v5766_v30, %v5767_v62  ;;  %v5783_v11 = vsel %vm58_vm4, %v5779_v15, %v5776_v57  ;;  %v5780_v8 = vsel %vm58_vm4, %v5778_v0, %v5779_v15 }
0x17a3   :  { %8228 = vmatprep.mubr.msk.bf16.mxu0 %vm71_vm1, %v5790_v29  ;;  %v5769_v10 = vsel %vm45_vm3, %v5765_v53, %v5766_v30  ;;  %v5770_v59 = vsel %vm45_vm3, %v5764_v63, %v5765_v53  ;;  %v5781_v44 = vsel %vm58_vm4, %v5777_v36, %v5778_v0  ;;  %v5782_v39 = vsel %vm58_vm4, %v5776_v57, %v5777_v36 }
0x17a4   :  { %8229 = vmatmul.mubr.msk.bf16.vlgmr.msra.gmra.mxu0 %vm71_vm1, %v5791_v51  ;;  %v5788_v28 = vpack.c.bf16 %v5770_v59, %v5772_v25  ;;  %v5774_v56 = vsel %vm37_vm2, %v5769_v10, 0.0  ;;  %v5785_v60 = vsel %vm40_vm5, %v5781_v44, 0.0  ;;  %v5787_v19 = vsel %vm40_vm5, %v5783_v11, 0.0 }
0x17a5   :  { %8239 = vmatpush3.bf16.msra.mxu0 %v8827_v12  ;;  %v5789_v9 = vpack.c.bf16 %v5768_v38, %v5774_v56  ;;  %v5902_v34 = vpack.c.bf16 %v5785_v60, %v5782_v39  ;;  %v5903_v50 = vpack.c.bf16 %v5787_v19, %v5780_v8  ;;  %v6188_v29 = vmul.f32 2.0, %v10521_v17 }
0x17a6   :  { %8234 = vmatprep.mubr.msk.bf16.mxu1 %vm71_vm1, %v5788_v28  ;;  %8430 = vmatprep.subr.msk.bf16.mxu0 %vm78_vm0, %v10179_v49  ;;  %v6186_v43 = vmul.f32 2.0, %v10523_v52  ;;  %v6189_v36 = vmul.f32 2.0, %v10527_v20  ;;  %v6187_v56 = vmul.f32 2.0, %v10531_v18 }
0x17a7   :  { %8235 = vmatmul.mubr.msk.bf16.vlgmr.msra.gmra.mxu1 %vm71_vm1, %v5789_v9  ;;  %8240 = vmatprep.mubr.msk.bf16.mxu0 %vm71_vm1, %v5902_v34  ;;  %v6192_v57 = vadd.f32 %v10462_v2, %v6188_v29  ;;  %v10641_v29 = vld [vmem:[%s10942_s1 + $0x4] sm:$0x3] }
0x17a8   :  { %8245 = vmatpush3.bf16.msra.mxu1 %v8797_v4  ;;  %v6190_v28 = vadd.f32 %v10464_v37, %v6186_v43  ;;  %v6193_v2 = vadd.f32 %v10468_v6, %v6189_v36  ;;  %v6191_v19 = vadd.f32 %v10472_v1, %v6187_v56  ;;  %v10650_v43 = vld [vmem:[%s10942_s1 + $0x2] sm:$0x3] }
0x17a9   :  { %8431 = vmatprep.subr.msk.bf16.mxu1 %vm78_vm0, %v10193_v55 }
0x17ac   :  { %8241 = vmatmul.mubr.msk.bf16.vlgmr.msra.gmra.mxu0 %vm71_vm1, %v5903_v50 }
0x17ad   :  { %8251 = vmatpush3.bf16.msra.mxu0 %v8836_v14 }
0x17ae   :  { %8432 = vmatprep.subr.msk.bf16.mxu0 %vm78_vm0, %v10202_v26 }
0x1864   :  { %v8230_v49 = vpop.f32.mrf.mxu0 }
0x1866   :  { %v5832_v23 = vpop.f32.mrf.mxu0 }
0x1867   :  { %v8236_v5 = vpop.f32.mrf.mxu1 }
0x1868   :  { %v8231_v40 = vpop.f32.mrf.mxu0  ;;  %v5896_v7 = vadd.f32 %v8236_v5, %v8230_v49 }
0x1869   :  { %v5887_v33 = vpop.f32.mrf.mxu1 }
0x186a   :  { %v5835_v45 = vpop.f32.mrf.mxu0  ;;  %v5888_v27 = vadd.f32 %v5887_v33, %v5832_v23 }
0x186b   :  { %v8237_v24 = vpop.f32.mrf.mxu1 }
0x186c   :  { %v8242_v46 = vpop.f32.mrf.mxu0  ;;  %v5899_v22 = vadd.f32 %v8237_v24, %v8231_v40 }
0x186d   :  { %v5961_v47 = vadd.f32 %v8242_v46, %v5896_v7  ;;  %v5890_v55 = vpop.f32.mrf.mxu1 }
0x186e   :  { %v5944_v3 = vpop.f32.mrf.mxu0  ;;  %v5891_v26 = vadd.f32 %v5890_v55, %v5835_v45 }
0x186f   :  { %v5965_v54 = vadd.f32 %v5961_v47, %v8899_v48  ;;  %v5959_v61 = vadd.f32 %v5944_v3, %v5888_v27 }
0x1870   :  { %v8243_v42 = vpop.f32.mrf.mxu0 }
0x1871   :  { %8658 = vtanh.f32 %v5965_v54  ;;  %v5963_v35 = vadd.f32 %v5959_v61, %v8899_v48  ;;  %v5962_v31 = vadd.f32 %v8243_v42, %v5899_v22 }
0x1872   :  { %v5947_v63 = vpop.f32.mrf.mxu0 }
0x1873   :  { %8660 = vtanh.f32 %v5963_v35  ;;  %v5966_v62 = vadd.f32 %v5962_v31, %v8899_v48  ;;  %v5960_v30 = vadd.f32 %v5947_v63, %v5891_v26 }
0x1875   :  { %8662 = vtanh.f32 %v5966_v62  ;;  %v5964_v15 = vadd.f32 %v5960_v30, %v8899_v48  ;;  %v10627_v62 = vld [vmem:[%s10942_s1] sm:$0x3] }
0x1877   :  { %8664 = vtanh.f32 %v5964_v15 }
0x187e   :  { %v8659_v53 = vpop.eup %8658 }
0x187f   :  { %v6196_v51 = vmul.f32 2.0, %v8659_v53  ;;  %v5973_v0 = vmul.f32 0.125, %v8659_v53 }
0x1880   :  { %v8661_v25 = vpop.eup %8660 }
0x1881   :  { %v6194_v10 = vmul.f32 2.0, %v8661_v25  ;;  %v5971_v59 = vmul.f32 0.125, %v8661_v25  ;;  %v10584_v38 = vadd.f32 %v6196_v51, %v6192_v57  ;;  %v5977_v9 = vadd.f32 %v5973_v0, %v10399_v32 }
0x1882   :  { %v8663_v11 = vpop.eup %8662 }
0x1883   :  { %v5974_v17 = vmul.f32 0.125, %v8663_v11  ;;  %v6197_v44 = vmul.f32 2.0, %v8663_v11  ;;  %v5975_v52 = vadd.f32 %v5971_v59, %v10395_v41  ;;  %v10591_v20 = vadd.f32 %v6194_v10, %v6190_v28 }
0x1884   :  { %v8665_v39 = vpop.eup %8664  ;;  %v5981_v5 = vrot.slane %v5977_v9, 7  ;;  %v5993_v27 = vrot.slane %v5977_v9, 1 }
0x1885   :  { %v5978_v60 = vadd.f32 %v5974_v17, %v10402_v16  ;;  %v6195_v34 = vmul.f32 2.0, %v8665_v39  ;;  %v5972_v8 = vmul.f32 0.125, %v8665_v39  ;;  %v10595_v37 = vadd.f32 %v6197_v44, %v6193_v2 }
0x1886   :  { %v5979_v50 = vrot.slane %v5975_v52, 7  ;;  %v5991_v7 = vrot.slane %v5975_v52, 1 }
0x1887   :  { %v5976_v18 = vadd.f32 %v5972_v8, %v10405_v58  ;;  %v5982_v49 = vrot.slane %v5978_v60, 7  ;;  %v5994_v23 = vrot.slane %v5978_v60, 1  ;;  %v10598_v40 = vadd.f32 %v6195_v34, %v6191_v19 }
0x1888   :  { %v6006_v24 = vpack.c.bf16 %v5978_v60, %v5977_v9 }
0x1889   :  { %v6005_v6 = vpack.c.bf16 %v5976_v18, %v5975_v52  ;;  %v5980_v33 = vrot.slane %v5976_v18, 7  ;;  %v5986_v45 = vsel %vm45_vm3, %v5982_v49, %v5979_v50  ;;  %v5992_v46 = vrot.slane %v5976_v18, 1 }
0x188a   :  { %v5987_v1 = vsel %vm37_vm2, %v5986_v45, 0.0  ;;  %v5983_v3 = vsel %vm45_vm3, %v5981_v5, %v5982_v49  ;;  %v5998_v22 = vsel %vm58_vm4, %v5994_v23, %v5991_v7  ;;  %v5995_v30 = vsel %vm58_vm4, %v5993_v27, %v5994_v23 }
0x188b   :  { %8246 = vmatprep.mubr.msk.bf16.mxu1 %vm71_vm1, %v6005_v6  ;;  %v5984_v47 = vsel %vm45_vm3, %v5980_v33, %v5981_v5  ;;  %v5985_v55 = vsel %vm45_vm3, %v5979_v50, %v5980_v33  ;;  %v5996_v42 = vsel %vm58_vm4, %v5992_v46, %v5993_v27  ;;  %v5997_v26 = vsel %vm58_vm4, %v5991_v7, %v5992_v46 }
0x188c   :  { %8247 = vmatmul.mubr.msk.bf16.vlgmr.msra.gmra.mxu1 %vm71_vm1, %v6006_v24  ;;  %v6003_v54 = vpack.c.bf16 %v5985_v55, %v5987_v1  ;;  %v5989_v61 = vsel %vm37_vm2, %v5984_v47, 0.0  ;;  %v6000_v31 = vsel %vm40_vm5, %v5996_v42, 0.0  ;;  %v6002_v15 = vsel %vm40_vm5, %v5998_v22, 0.0 }
0x188d   :  { %8257 = vmatpush3.bf16.msra.mxu1 %v8827_v12  ;;  %v6004_v35 = vpack.c.bf16 %v5983_v3, %v5989_v61  ;;  %v6117_v63 = vpack.c.bf16 %v6000_v31, %v5997_v26  ;;  %v6118_v53 = vpack.c.bf16 %v6002_v15, %v5995_v30 }
0x188e   :  { %8252 = vmatprep.mubr.msk.bf16.mxu0 %vm71_vm1, %v6003_v54  ;;  %8433 = vmatprep.subr.msk.bf16.mxu1 %vm78_vm0, %v10627_v62 }
0x188f   :  { %8253 = vmatmul.mubr.msk.bf16.vlgmr.msra.gmra.mxu0 %vm71_vm1, %v6004_v35  ;;  %8258 = vmatprep.mubr.msk.bf16.mxu1 %vm71_vm1, %v6117_v63 }
0x1890   :  { %8263 = vmatpush3.bf16.msra.mxu0 %v8797_v4 }
0x1891   :  { %8434 = vmatprep.subr.msk.bf16.mxu0 %vm78_vm0, %v10641_v29 }
0x1894   :  { %8259 = vmatmul.mubr.msk.bf16.vlgmr.msra.gmra.mxu1 %vm71_vm1, %v6118_v53 }
0x1895   :  { %8269 = vmatpush3.bf16.msra.mxu1 %v8836_v14 }
0x1896   :  { %8435 = vmatprep.subr.msk.bf16.mxu1 %vm78_vm0, %v10650_v43 }
0x194c   :  { %v8248_v57 = vpop.f32.mrf.mxu1 }
0x194e   :  { %v6047_v51 = vpop.f32.mrf.mxu1 }
0x194f   :  { %v8254_v25 = vpop.f32.mrf.mxu0 }
0x1950   :  { %v8249_v36 = vpop.f32.mrf.mxu1  ;;  %v6111_v59 = vadd.f32 %v8254_v25, %v8248_v57 }
0x1951   :  { %v6102_v0 = vpop.f32.mrf.mxu0 }
0x1952   :  { %v6050_v10 = vpop.f32.mrf.mxu1  ;;  %v6103_v56 = vadd.f32 %v6102_v0, %v6047_v51 }
0x1953   :  { %v8255_v11 = vpop.f32.mrf.mxu0 }
0x1954   :  { %v8260_v28 = vpop.f32.mrf.mxu1  ;;  %v6114_v39 = vadd.f32 %v8255_v11, %v8249_v36 }
0x1955   :  { %v6176_v17 = vadd.f32 %v8260_v28, %v6111_v59  ;;  %v6105_v44 = vpop.f32.mrf.mxu0 }
0x1956   :  { %v6159_v52 = vpop.f32.mrf.mxu1  ;;  %v6106_v34 = vadd.f32 %v6105_v44, %v6050_v10 }
0x1957   :  { %v6180_v2 = vadd.f32 %v6176_v17, %v8899_v48  ;;  %v6174_v9 = vadd.f32 %v6159_v52, %v6103_v56 }
0x1958   :  { %v8261_v60 = vpop.f32.mrf.mxu1 }
0x1959   :  { %8666 = vtanh.f32 %v6180_v2  ;;  %v6178_v8 = vadd.f32 %v6174_v9, %v8899_v48  ;;  %v6177_v19 = vadd.f32 %v8261_v60, %v6114_v39 }
0x195a   :  { %v6162_v18 = vpop.f32.mrf.mxu1 }
0x195b   :  { %8668 = vtanh.f32 %v6178_v8  ;;  %v6181_v50 = vadd.f32 %v6177_v19, %v8899_v48  ;;  %v6175_v49 = vadd.f32 %v6162_v18, %v6106_v34 }
0x195d   :  { %8670 = vtanh.f32 %v6181_v50  ;;  %v6179_v23 = vadd.f32 %v6175_v49, %v8899_v48 }
0x195f   :  { %8672 = vtanh.f32 %v6179_v23 }
0x1966   :  { %v8667_v5 = vpop.eup %8666 }
0x1967   :  { %v6204_v6 = vadd.f32 %v8667_v5, %v10584_v38 }
0x1968   :  { %v8669_v33 = vpop.eup %8668 }
0x1969   :  { %v6202_v45 = vadd.f32 %v8669_v33, %v10591_v20  ;;  %v6208_v24 = vmul.f32 0.020833334, %v6204_v6 }
0x196a   :  { %v8671_v7 = vpop.eup %8670 }
0x196b   :  { %v6206_v1 = vmul.f32 0.020833334, %v6202_v45  ;;  %v6205_v46 = vadd.f32 %v8671_v7, %v10595_v37  ;;  %v10666_v22 = vadd.f32 %v6208_v24, %v10399_v32 }
0x196c   :  { %v8673_v27 = vpop.eup %8672 }
0x196d   :  { %v10662_v47 = vadd.f32 %v6206_v1, %v10395_v41  ;;  %v6209_v55 = vmul.f32 0.020833334, %v6205_v46  ;;  %v6203_v3 = vadd.f32 %v8673_v27, %v10598_v40  ;;  %v6216_v42 = vrot.slane %v10666_v22, 7 }
0x196e   :  { %v6228_v63 = vrot.slane %v10666_v22, 1 }
0x196f   :  { %v10669_v38 = vadd.f32 %v6209_v55, %v10402_v16  ;;  %v6207_v54 = vmul.f32 0.020833334, %v6203_v3  ;;  %v6214_v61 = vrot.slane %v10662_v47, 7  ;;  %v6226_v26 = vrot.slane %v10662_v47, 1 }
0x1971   :  { %v10672_v20 = vadd.f32 %v6207_v54, %v10405_v58  ;;  %v6217_v37 = vrot.slane %v10669_v38, 7  ;;  %v6229_v41 = vrot.slane %v10669_v38, 1  ;;  %v6241_v58 = vpack.c.bf16 %v10669_v38, %v10666_v22 }
0x1973   :  { %v6240_v40 = vpack.c.bf16 %v10672_v20, %v10662_v47  ;;  %v6215_v32 = vrot.slane %v10672_v20, 7  ;;  %v6221_v16 = vsel %vm45_vm3, %v6217_v37, %v6214_v61  ;;  %v6227_v31 = vrot.slane %v10672_v20, 1 }
0x1974   :  { %v6222_v35 = vsel %vm37_vm2, %v6221_v16, 0.0  ;;  %v6218_v53 = vsel %vm45_vm3, %v6216_v42, %v6217_v37  ;;  %v6233_v57 = vsel %vm58_vm4, %v6229_v41, %v6226_v26  ;;  %v6230_v28 = vsel %vm58_vm4, %v6228_v63, %v6229_v41 }
0x1975   :  { %8264 = vmatprep.mubr.msk.bf16.mxu0 %vm71_vm1, %v6240_v40  ;;  %v6219_v30 = vsel %vm45_vm3, %v6215_v32, %v6216_v42  ;;  %v6220_v15 = vsel %vm45_vm3, %v6214_v61, %v6215_v32  ;;  %v6231_v36 = vsel %vm58_vm4, %v6227_v31, %v6228_v63  ;;  %v6232_v0 = vsel %vm58_vm4, %v6226_v26, %v6227_v31 }
0x1976   :  { %8265 = vmatmul.mubr.msk.bf16.vlgmr.msra.gmra.mxu0 %vm71_vm1, %v6241_v58  ;;  %v6238_v51 = vpack.c.bf16 %v6220_v15, %v6222_v35  ;;  %v6224_v25 = vsel %vm37_vm2, %v6219_v30, 0.0  ;;  %v6235_v59 = vsel %vm40_vm5, %v6231_v36, 0.0  ;;  %v6237_v56 = vsel %vm40_vm5, %v6233_v57, 0.0 }
0x1977   :  { %8275 = vmatpush3.bf16.msra.mxu0 %v8827_v12  ;;  %v6239_v10 = vpack.c.bf16 %v6218_v53, %v6224_v25  ;;  %v6352_v11 = vpack.c.bf16 %v6235_v59, %v6232_v0  ;;  %v6353_v17 = vpack.c.bf16 %v6237_v56, %v6230_v28 }
0x1978   :  { %8270 = vmatprep.mubr.msk.bf16.mxu1 %vm71_vm1, %v6238_v51  ;;  %8436 = vmatprep.subr.msk.bf16.mxu0 %vm78_vm0, %v10627_v62 }
0x1979   :  { %8271 = vmatmul.mubr.msk.bf16.vlgmr.msra.gmra.mxu1 %vm71_vm1, %v6239_v10  ;;  %8276 = vmatprep.mubr.msk.bf16.mxu0 %vm71_vm1, %v6352_v11 }
0x197a   :  { %8281 = vmatpush3.bf16.msra.mxu1 %v8797_v4 }
0x197b   :  { %8437 = vmatprep.subr.msk.bf16.mxu1 %vm78_vm0, %v10641_v29 }
0x197e   :  { %8277 = vmatmul.mubr.msk.bf16.vlgmr.msra.gmra.mxu0 %vm71_vm1, %v6353_v17 }
0x197f   :  { %8287 = vmatpush3.bf16.msra.mxu0 %v8836_v14 }
0x1980   :  { %8438 = vmatprep.subr.msk.bf16.mxu0 %vm78_vm0, %v10650_v43 }
0x1a36   :  { %v8266_v44 = vpop.f32.mrf.mxu0 }
0x1a38   :  { %v6282_v52 = vpop.f32.mrf.mxu0 }
0x1a39   :  { %v8272_v39 = vpop.f32.mrf.mxu1 }
0x1a3a   :  { %v8267_v2 = vpop.f32.mrf.mxu0  ;;  %v6346_v34 = vadd.f32 %v8272_v39, %v8266_v44 }
0x1a3b   :  { %v6337_v9 = vpop.f32.mrf.mxu1 }
0x1a3c   :  { %v6285_v60 = vpop.f32.mrf.mxu0  ;;  %v6338_v18 = vadd.f32 %v6337_v9, %v6282_v52 }
0x1a3d   :  { %v8273_v8 = vpop.f32.mrf.mxu1 }
0x1a3e   :  { %v8278_v19 = vpop.f32.mrf.mxu0  ;;  %v6349_v5 = vadd.f32 %v8273_v8, %v8267_v2 }
0x1a3f   :  { %v6411_v50 = vadd.f32 %v8278_v19, %v6346_v34  ;;  %v6340_v49 = vpop.f32.mrf.mxu1 }
0x1a40   :  { %v6394_v23 = vpop.f32.mrf.mxu0  ;;  %v6341_v7 = vadd.f32 %v6340_v49, %v6285_v60 }
0x1a41   :  { %v6415_v6 = vadd.f32 %v6411_v50, %v8899_v48  ;;  %v6409_v33 = vadd.f32 %v6394_v23, %v6338_v18 }
0x1a42   :  { %v8279_v45 = vpop.f32.mrf.mxu0 }
0x1a43   :  { %8674 = vtanh.f32 %v6415_v6  ;;  %v6413_v24 = vadd.f32 %v6409_v33, %v8899_v48  ;;  %v6412_v1 = vadd.f32 %v8279_v45, %v6349_v5 }
0x1a44   :  { %v6397_v46 = vpop.f32.mrf.mxu0 }
0x1a45   :  { %8676 = vtanh.f32 %v6413_v24  ;;  %v6416_v27 = vadd.f32 %v6412_v1, %v8899_v48  ;;  %v6410_v55 = vadd.f32 %v6397_v46, %v6341_v7 }
0x1a47   :  { %8678 = vtanh.f32 %v6416_v27  ;;  %v6414_v3 = vadd.f32 %v6410_v55, %v8899_v48 }
0x1a49   :  { %8680 = vtanh.f32 %v6414_v3 }
0x1a50   :  { %v10729_v54 = vpop.eup %8674 }
0x1a51   :  { %v6423_v37 = vmul.f32 0.0625, %v10729_v54 }
0x1a52   :  { %v10731_v61 = vpop.eup %8676 }
0x1a53   :  { %v6421_v41 = vmul.f32 0.0625, %v10731_v61  ;;  %v6427_v26 = vadd.f32 %v6423_v37, %v10666_v22 }
0x1a54   :  { %v10735_v42 = vpop.eup %8678 }
0x1a55   :  { %v6424_v40 = vmul.f32 0.0625, %v10735_v42  ;;  %v6425_v32 = vadd.f32 %v6421_v41, %v10662_v47  ;;  %v6431_v53 = vrot.slane %v6427_v26, 7  ;;  %v6443_v11 = vrot.slane %v6427_v26, 1 }
0x1a56   :  { %v10739_v16 = vpop.eup %8680 }
0x1a57   :  { %v6428_v58 = vadd.f32 %v6424_v40, %v10669_v38  ;;  %v6422_v35 = vmul.f32 0.0625, %v10739_v16  ;;  %v6429_v63 = vrot.slane %v6425_v32, 7  ;;  %v6441_v36 = vrot.slane %v6425_v32, 1 }
0x1a59   :  { %v6426_v31 = vadd.f32 %v6422_v35, %v10672_v20  ;;  %v6432_v30 = vrot.slane %v6428_v58, 7  ;;  %v6444_v15 = vrot.slane %v6428_v58, 1  ;;  %v6456_v0 = vpack.c.bf16 %v6428_v58, %v6427_v26 }
0x1a5b   :  { %v6455_v57 = vpack.c.bf16 %v6426_v31, %v6425_v32  ;;  %v6430_v51 = vrot.slane %v6426_v31, 7  ;;  %v6436_v25 = vsel %vm45_vm3, %v6432_v30, %v6429_v63  ;;  %v6442_v59 = vrot.slane %v6426_v31, 1 }
0x1a5c   :  { %v6437_v10 = vsel %vm37_vm2, %v6436_v25, 0.0  ;;  %v6433_v17 = vsel %vm45_vm3, %v6431_v53, %v6432_v30  ;;  %v6448_v44 = vsel %vm58_vm4, %v6444_v15, %v6441_v36  ;;  %v6445_v19 = vsel %vm58_vm4, %v6443_v11, %v6444_v15 }
0x1a5d   :  { %8282 = vmatprep.mubr.msk.bf16.mxu1 %vm71_vm1, %v6455_v57  ;;  %v6434_v28 = vsel %vm45_vm3, %v6430_v51, %v6431_v53  ;;  %v6435_v56 = vsel %vm45_vm3, %v6429_v63, %v6430_v51  ;;  %v6446_v2 = vsel %vm58_vm4, %v6442_v59, %v6443_v11  ;;  %v6447_v9 = vsel %vm58_vm4, %v6441_v36, %v6442_v59 }
0x1a5e   :  { %8283 = vmatmul.mubr.msk.bf16.vlgmr.msra.gmra.mxu1 %vm71_vm1, %v6456_v0  ;;  %v6453_v52 = vpack.c.bf16 %v6435_v56, %v6437_v10  ;;  %v6439_v39 = vsel %vm37_vm2, %v6434_v28, 0.0  ;;  %v6450_v34 = vsel %vm40_vm5, %v6446_v2, 0.0  ;;  %v6452_v18 = vsel %vm40_vm5, %v6448_v44, 0.0 }
0x1a5f   :  { %8293 = vmatpush3.bf16.msra.mxu1 %v8827_v12  ;;  %v6454_v60 = vpack.c.bf16 %v6433_v17, %v6439_v39  ;;  %v6567_v8 = vpack.c.bf16 %v6450_v34, %v6447_v9  ;;  %v6568_v50 = vpack.c.bf16 %v6452_v18, %v6445_v19 }
0x1a60   :  { %8288 = vmatprep.mubr.msk.bf16.mxu0 %vm71_vm1, %v6453_v52  ;;  %8439 = vmatprep.subr.msk.bf16.mxu1 %vm78_vm0, %v10627_v62 }
0x1a61   :  { %8289 = vmatmul.mubr.msk.bf16.vlgmr.msra.gmra.mxu0 %vm71_vm1, %v6454_v60  ;;  %8294 = vmatprep.mubr.msk.bf16.mxu1 %vm71_vm1, %v6567_v8 }
0x1a62   :  { %8299 = vmatpush3.bf16.msra.mxu0 %v8797_v4 }
0x1a63   :  { %8440 = vmatprep.subr.msk.bf16.mxu0 %vm78_vm0, %v10641_v29 }
0x1a66   :  { %8295 = vmatmul.mubr.msk.bf16.vlgmr.msra.gmra.mxu1 %vm71_vm1, %v6568_v50 }
0x1a67   :  { %8305 = vmatpush3.bf16.msra.mxu1 %v8836_v14 }
0x1a68   :  { %8441 = vmatprep.subr.msk.bf16.mxu1 %vm78_vm0, %v10650_v43 }
0x1b1e   :  { %v8284_v49 = vpop.f32.mrf.mxu1 }
0x1b20   :  { %v6497_v23 = vpop.f32.mrf.mxu1 }
0x1b21   :  { %v8290_v5 = vpop.f32.mrf.mxu0 }
0x1b22   :  { %v8285_v6 = vpop.f32.mrf.mxu1  ;;  %v6561_v7 = vadd.f32 %v8290_v5, %v8284_v49 }
0x1b23   :  { %v6552_v33 = vpop.f32.mrf.mxu0 }
0x1b24   :  { %v6500_v45 = vpop.f32.mrf.mxu1  ;;  %v6553_v46 = vadd.f32 %v6552_v33, %v6497_v23 }
0x1b25   :  { %v8291_v24 = vpop.f32.mrf.mxu0 }
0x1b26   :  { %v8296_v1 = vpop.f32.mrf.mxu1  ;;  %v6564_v37 = vadd.f32 %v8291_v24, %v8285_v6 }
0x1b27   :  { %v6626_v27 = vadd.f32 %v8296_v1, %v6561_v7  ;;  %v6555_v55 = vpop.f32.mrf.mxu0 }
0x1b28   :  { %v6609_v3 = vpop.f32.mrf.mxu1  ;;  %v6556_v43 = vadd.f32 %v6555_v55, %v6500_v45 }
0x1b29   :  { %v6630_v41 = vadd.f32 %v6626_v27, %v8899_v48  ;;  %v6624_v40 = vadd.f32 %v6609_v3, %v6553_v46 }
0x1b2a   :  { %v8297_v32 = vpop.f32.mrf.mxu1 }
0x1b2b   :  { %8682 = vtanh.f32 %v6630_v41  ;;  %v6628_v26 = vadd.f32 %v6624_v40, %v8899_v48  ;;  %v6627_v58 = vadd.f32 %v8297_v32, %v6564_v37 }
0x1b2c   :  { %v6612_v35 = vpop.f32.mrf.mxu1 }
0x1b2d   :  { %8684 = vtanh.f32 %v6628_v26  ;;  %v6631_v31 = vadd.f32 %v6627_v58, %v8899_v48  ;;  %v6625_v63 = vadd.f32 %v6612_v35, %v6556_v43 }
0x1b2f   :  { %8686 = vtanh.f32 %v6631_v31  ;;  %v6629_v30 = vadd.f32 %v6625_v63, %v8899_v48 }
0x1b31   :  { %8688 = vtanh.f32 %v6629_v30 }
0x1b38   :  { %v10788_v15 = vpop.eup %8682 }
0x1b39   :  { %v6638_v57 = vmul.f32 0.0625, %v10788_v15 }
0x1b3a   :  { %v10790_v53 = vpop.eup %8684 }
0x1b3b   :  { %v6636_v51 = vmul.f32 0.0625, %v10790_v53  ;;  %v6642_v59 = vadd.f32 %v6638_v57, %v10666_v22 }
0x1b3c   :  { %v10794_v25 = vpop.eup %8686 }
0x1b3d   :  { %v6639_v36 = vmul.f32 0.0625, %v10794_v25  ;;  %v6640_v0 = vadd.f32 %v6636_v51, %v10662_v47  ;;  %v6646_v39 = vrot.slane %v6642_v59, 7  ;;  %v6658_v50 = vrot.slane %v6642_v59, 1 }
0x1b3e   :  { %v10798_v10 = vpop.eup %8688 }
0x1b3f   :  { %v6643_v11 = vadd.f32 %v6639_v36, %v10669_v38  ;;  %v6637_v28 = vmul.f32 0.0625, %v10798_v10  ;;  %v6644_v17 = vrot.slane %v6640_v0, 7  ;;  %v6656_v34 = vrot.slane %v6640_v0, 1 }
0x1b41   :  { %v6641_v56 = vadd.f32 %v6637_v28, %v10672_v20  ;;  %v6647_v44 = vrot.slane %v6643_v11, 7  ;;  %v6659_v52 = vrot.slane %v6643_v11, 1  ;;  %v6671_v8 = vpack.c.bf16 %v6643_v11, %v6642_v59 }
0x1b43   :  { %v6670_v2 = vpack.c.bf16 %v6641_v56, %v6640_v0  ;;  %v6645_v9 = vrot.slane %v6641_v56, 7  ;;  %v6651_v60 = vsel %vm45_vm3, %v6647_v44, %v6644_v17  ;;  %v6657_v18 = vrot.slane %v6641_v56, 1 }
0x1b44   :  { %v6652_v19 = vsel %vm37_vm2, %v6651_v60, 0.0  ;;  %v6648_v5 = vsel %vm45_vm3, %v6646_v39, %v6647_v44  ;;  %v6663_v6 = vsel %vm58_vm4, %v6659_v52, %v6656_v34  ;;  %v6660_v55 = vsel %vm58_vm4, %v6658_v50, %v6659_v52 }
0x1b45   :  { %8300 = vmatprep.mubr.msk.bf16.mxu0 %vm71_vm1, %v6670_v2  ;;  %v6649_v49 = vsel %vm45_vm3, %v6645_v9, %v6646_v39  ;;  %v6650_v23 = vsel %vm45_vm3, %v6644_v17, %v6645_v9  ;;  %v6661_v7 = vsel %vm58_vm4, %v6657_v18, %v6658_v50  ;;  %v6662_v24 = vsel %vm58_vm4, %v6656_v34, %v6657_v18 }
0x1b46   :  { %8301 = vmatmul.mubr.msk.bf16.vlgmr.msra.gmra.mxu0 %vm71_vm1, %v6671_v8  ;;  %v6668_v33 = vpack.c.bf16 %v6650_v23, %v6652_v19  ;;  %v6654_v45 = vsel %vm37_vm2, %v6649_v49, 0.0  ;;  %v6665_v46 = vsel %vm40_vm5, %v6661_v7, 0.0  ;;  %v6667_v3 = vsel %vm40_vm5, %v6663_v6, 0.0 }
0x1b47   :  { %8311 = vmatpush3.bf16.msra.mxu0 %v8827_v12  ;;  %v6669_v1 = vpack.c.bf16 %v6648_v5, %v6654_v45  ;;  %v6782_v27 = vpack.c.bf16 %v6665_v46, %v6662_v24  ;;  %v6783_v37 = vpack.c.bf16 %v6667_v3, %v6660_v55  ;;  %v7068_v52 = vmul.f32 2.0, %v10788_v15 }
0x1b48   :  { %8306 = vmatprep.mubr.msk.bf16.mxu1 %vm71_vm1, %v6668_v33  ;;  %8442 = vmatprep.subr.msk.bf16.mxu0 %vm78_vm0, %v10627_v62  ;;  %v7066_v2 = vmul.f32 2.0, %v10790_v53  ;;  %v7069_v8 = vmul.f32 2.0, %v10794_v25  ;;  %v7067_v5 = vmul.f32 2.0, %v10798_v10 }
0x1b49   :  { %8307 = vmatmul.mubr.msk.bf16.vlgmr.msra.gmra.mxu1 %vm71_vm1, %v6669_v1  ;;  %8312 = vmatprep.mubr.msk.bf16.mxu0 %vm71_vm1, %v6782_v27  ;;  %v7072_v9 = vadd.f32 %v10729_v54, %v7068_v52 }
0x1b4a   :  { %8317 = vmatpush3.bf16.msra.mxu1 %v8797_v4  ;;  %v7070_v6 = vadd.f32 %v10731_v61, %v7066_v2  ;;  %v7073_v54 = vadd.f32 %v10735_v42, %v7069_v8  ;;  %v7071_v10 = vadd.f32 %v10739_v16, %v7067_v5 }
0x1b4b   :  { %8443 = vmatprep.subr.msk.bf16.mxu1 %vm78_vm0, %v10641_v29 }
0x1b4e   :  { %8313 = vmatmul.mubr.msk.bf16.vlgmr.msra.gmra.mxu0 %vm71_vm1, %v6783_v37 }
0x1b4f   :  { %8323 = vmatpush3.bf16.msra.mxu0 %v8836_v14 }
0x1c06   :  { %v8302_v62 = vpop.f32.mrf.mxu0 }
0x1c08   :  { %v6712_v41 = vpop.f32.mrf.mxu0 }
0x1c09   :  { %v8308_v40 = vpop.f32.mrf.mxu1 }
0x1c0a   :  { %v8303_v32 = vpop.f32.mrf.mxu0  ;;  %v6776_v58 = vadd.f32 %v8308_v40, %v8302_v62 }
0x1c0b   :  { %v6767_v43 = vpop.f32.mrf.mxu1 }
0x1c0c   :  { %v6715_v26 = vpop.f32.mrf.mxu0  ;;  %v6768_v63 = vadd.f32 %v6767_v43, %v6712_v41 }
0x1c0d   :  { %v8309_v35 = vpop.f32.mrf.mxu1 }
0x1c0e   :  { %v8314_v31 = vpop.f32.mrf.mxu0  ;;  %v6779_v51 = vadd.f32 %v8309_v35, %v8303_v32 }
0x1c0f   :  { %v6841_v30 = vadd.f32 %v8314_v31, %v6776_v58  ;;  %v6770_v4 = vpop.f32.mrf.mxu1 }
0x1c10   :  { %v6824_v57 = vpop.f32.mrf.mxu0  ;;  %v6771_v14 = vadd.f32 %v6770_v4, %v6715_v26 }
0x1c11   :  { %v6845_v29 = vadd.f32 %v6841_v30, %v8899_v48  ;;  %v6839_v36 = vadd.f32 %v6824_v57, %v6768_v63 }
0x1c12   :  { %v8315_v0 = vpop.f32.mrf.mxu0 }
0x1c13   :  { %8690 = vtanh.f32 %v6845_v29  ;;  %v6843_v59 = vadd.f32 %v6839_v36, %v8899_v48  ;;  %v6842_v11 = vadd.f32 %v8315_v0, %v6779_v51 }
0x1c14   :  { %v6827_v28 = vpop.f32.mrf.mxu0 }
0x1c15   :  { %8692 = vtanh.f32 %v6843_v59  ;;  %v6846_v56 = vadd.f32 %v6842_v11, %v8899_v48  ;;  %v6840_v17 = vadd.f32 %v6827_v28, %v6771_v14 }
0x1c17   :  { %8694 = vtanh.f32 %v6846_v56  ;;  %v6844_v44 = vadd.f32 %v6840_v17, %v8899_v48 }
0x1c19   :  { %8696 = vtanh.f32 %v6844_v44 }
0x1c20   :  { %v8691_v39 = vpop.eup %8690 }
0x1c21   :  { %v7076_v60 = vmul.f32 2.0, %v8691_v39  ;;  %v6853_v19 = vmul.f32 0.125, %v8691_v39 }
0x1c22   :  { %v8693_v34 = vpop.eup %8692 }
0x1c23   :  { %v7074_v18 = vmul.f32 2.0, %v8693_v34  ;;  %v6851_v50 = vmul.f32 0.125, %v8693_v34  ;;  %v10849_v49 = vadd.f32 %v7076_v60, %v7072_v9  ;;  %v6857_v7 = vadd.f32 %v6853_v19, %v10666_v22 }
0x1c24   :  { %v8695_v23 = vpop.eup %8694 }
0x1c25   :  { %v6854_v15 = vmul.f32 0.125, %v8695_v23  ;;  %v7077_v33 = vmul.f32 2.0, %v8695_v23  ;;  %v6855_v53 = vadd.f32 %v6851_v50, %v10662_v47  ;;  %v10856_v25 = vadd.f32 %v7074_v18, %v7070_v6 }
0x1c26   :  { %v8697_v45 = vpop.eup %8696  ;;  %v6861_v62 = vrot.slane %v6857_v7, 7  ;;  %v6873_v16 = vrot.slane %v6857_v7, 1 }
0x1c27   :  { %v6858_v24 = vadd.f32 %v6854_v15, %v10669_v38  ;;  %v7075_v1 = vmul.f32 2.0, %v8697_v45  ;;  %v6852_v46 = vmul.f32 0.125, %v8697_v45  ;;  %v10859_v27 = vadd.f32 %v7077_v33, %v7073_v54 }
0x1c28   :  { %v6859_v55 = vrot.slane %v6855_v53, 7  ;;  %v6871_v43 = vrot.slane %v6855_v53, 1 }
0x1c29   :  { %v6856_v61 = vadd.f32 %v6852_v46, %v10672_v20  ;;  %v6862_v3 = vrot.slane %v6858_v24, 7  ;;  %v6874_v37 = vrot.slane %v6858_v24, 1  ;;  %v10863_v41 = vadd.f32 %v7075_v1, %v7071_v10 }
0x1c2a   :  { %v6886_v26 = vpack.c.bf16 %v6858_v24, %v6857_v7 }
0x1c2b   :  { %v6885_v42 = vpack.c.bf16 %v6856_v61, %v6855_v53  ;;  %v6860_v40 = vrot.slane %v6856_v61, 7  ;;  %v6866_v32 = vsel %vm45_vm3, %v6862_v3, %v6859_v55  ;;  %v6872_v35 = vrot.slane %v6856_v61, 1 }
0x1c2c   :  { %v6867_v58 = vsel %vm37_vm2, %v6866_v32, 0.0  ;;  %v6863_v30 = vsel %vm45_vm3, %v6861_v62, %v6862_v3  ;;  %v6878_v4 = vsel %vm58_vm4, %v6874_v37, %v6871_v43  ;;  %v6875_v11 = vsel %vm58_vm4, %v6873_v16, %v6874_v37 }
0x1c2d   :  { %8318 = vmatprep.mubr.msk.bf16.mxu1 %vm71_vm1, %v6885_v42  ;;  %v6864_v31 = vsel %vm45_vm3, %v6860_v40, %v6861_v62  ;;  %v6865_v63 = vsel %vm45_vm3, %v6859_v55, %v6860_v40  ;;  %v6876_v29 = vsel %vm58_vm4, %v6872_v35, %v6873_v16  ;;  %v6877_v36 = vsel %vm58_vm4, %v6871_v43, %v6872_v35 }
0x1c2e   :  { %8319 = vmatmul.mubr.msk.bf16.vlgmr.msra.gmra.mxu1 %vm71_vm1, %v6886_v26  ;;  %v6883_v57 = vpack.c.bf16 %v6865_v63, %v6867_v58  ;;  %v6869_v51 = vsel %vm37_vm2, %v6864_v31, 0.0  ;;  %v6880_v14 = vsel %vm40_vm5, %v6876_v29, 0.0  ;;  %v6882_v28 = vsel %vm40_vm5, %v6878_v4, 0.0  ;;  %v8448_v4 = vld [vmem:[%s10944_s3 + $0x8] sm:$0xff]  }
0x1c2f   :  { %8329 = vmatpush3.bf16.msra.mxu1 %v8827_v12  ;;  %v6884_v0 = vpack.c.bf16 %v6863_v30, %v6869_v51  ;;  %v6997_v59 = vpack.c.bf16 %v6880_v14, %v6877_v36  ;;  %v6998_v56 = vpack.c.bf16 %v6882_v28, %v6875_v11  ;;  %v7100_v12 = vld [vmem:[%s10943_s2] sm:$0x3]  ;;  %v7103_v51 = vsub.s32 1, %v8829_v13 }
0x1c30   :  { %8324 = vmatprep.mubr.msk.bf16.mxu0 %vm71_vm1, %v6883_v57  ;;  %8444 = vmatprep.subr.msk.bf16.mxu0 %vm78_vm0, %v7100_v12  ;;  %v7112_v17 = vsel %vm78_vm0, %v7100_v12, 0  ;;  %v8449_v57 = vld [vmem:[%s10944_s3] sm:$0xff]   ;;  %s8745_s3 = smov [#allocation2]  }
0x1c31   :  { %8325 = vmatmul.mubr.msk.bf16.vlgmr.msra.gmra.mxu0 %vm71_vm1, %v6884_v0  ;;  %8330 = vmatprep.mubr.msk.bf16.mxu1 %vm71_vm1, %v6997_v59  ;;  %v8722_v36 = vld [vmem:[%s10945_s4] sm:$0x7]  ;;  %s7254_s4 = sshll.u32 %s8745_s3, 4  ;;  %s7255_s4 = int_to_ptr.vmem [resolvable:$true] %s7254_s4 }
0x1c32   :  { %8335 = vmatpush3.bf16.msra.mxu0 %v7112_v17  ;;  %8340 = vmatprep.subr.bf16.mxu1 %v8448_v4  ;;  %v7104_v0 = vrot.slane %v8722_v36, %v7103_v51  ;;  %s8723_s21 = scalar_lea.vmem %s7255_s4, 512  ;;  %p8728_p1 = scmp.lt.s32.totalorder %s7255_s4, %s7255_s4 }
0x1c33   :  { %p8724_p0 = scmp.ne.s32.totalorder %s7255_s4, %s8723_s21  ;;  %p8729_p2 = scmp.lt.s32.totalorder %s8723_s21, %s8723_s21 }
0x1c35   :  { %p8730_p3 = por %p8729_p2, %p8728_p1 }
0x1c36   :  { %8331 = vmatmul.mubr.msk.bf16.vlgmr.msra.gmra.mxu1 %vm71_vm1, %v6998_v56 }
0x1c37   :  { %8341 = vmatpush3.bf16.msra.mxu1 %v8448_v4  ;;  %p8731_p4 = pnand %p8730_p3, %p8724_p0 }
0x1c38   :  { %8342 = vmatprep.subr.bf16.mxu1 %v8449_v57 }
0x1c3b   :  { %8343 = vmatpush3.bf16.msra.mxu1 %v8449_v57 }
0x1cee   :  { %v8320_v44 = vpop.f32.mrf.mxu1 }
0x1cf0   :  { %v6927_v52 = vpop.f32.mrf.mxu1 }
0x1cf1   :  { %v8326_v39 = vpop.f32.mrf.mxu0 }
0x1cf2   :  { %v8321_v2 = vpop.f32.mrf.mxu1  ;;  %v6991_v60 = vadd.f32 %v8326_v39, %v8320_v44 }
0x1cf3   :  { %v6982_v21 = vpop.f32.mrf.mxu0 }
0x1cf4   :  { %v6930_v9 = vpop.f32.mrf.mxu1  ;;  %v6983_v19 = vadd.f32 %v6982_v21, %v6927_v52 }
0x1cf5   :  { %v8327_v34 = vpop.f32.mrf.mxu0 }
0x1cf6   :  { %v8332_v8 = vpop.f32.mrf.mxu1  ;;  %v6994_v5 = vadd.f32 %v8327_v34, %v8321_v2 }
0x1cf7   :  { %v7056_v18 = vadd.f32 %v8332_v8, %v6991_v60  ;;  %v6985_v50 = vpop.f32.mrf.mxu0  ;;  %v7175_v60 = vsub.s32 2, %v8829_v13 }
0x1cf8   :  { %v7039_v23 = vpop.f32.mrf.mxu1  ;;  %v6986_v53 = vadd.f32 %v6985_v50, %v6930_v9 }
0x1cf9   :  { %v7060_v6 = vadd.f32 %v7056_v18, %v8899_v48  ;;  %v7054_v15 = vadd.f32 %v7039_v23, %v6983_v19  ;;  %v7176_v34 = vrot.slane %v8722_v36, %v7175_v60 }
0x1cfa   :  { %v8333_v33 = vpop.f32.mrf.mxu1 }
0x1cfb   :  { %8698 = vtanh.f32 %v7060_v6  ;;  %v7058_v45 = vadd.f32 %v7054_v15, %v8899_v48  ;;  %v7057_v54 = vadd.f32 %v8333_v33, %v6994_v5 }
0x1cfc   :  { %v7042_v7 = vpop.f32.mrf.mxu1 }
0x1cfd   :  { %8700 = vtanh.f32 %v7058_v45  ;;  %v7061_v24 = vadd.f32 %v7057_v54, %v8899_v48  ;;  %v7055_v1 = vadd.f32 %v7042_v7, %v6986_v53 }
0x1cff   :  { %8702 = vtanh.f32 %v7061_v24  ;;  %v7059_v46 = vadd.f32 %v7055_v1, %v8899_v48 }
0x1d01   :  { %8704 = vtanh.f32 %v7059_v46 }
0x1d08   :  { %v8699_v10 = vpop.eup %8698 }
0x1d09   :  { %v7084_v61 = vadd.f32 %v8699_v10, %v10849_v49 }
0x1d0a   :  { %v8701_v55 = vpop.eup %8700 }
0x1d0b   :  { %v7088_v3 = vmul.f32 0.020833334, %v7084_v61  ;;  %v7082_v37 = vadd.f32 %v8701_v55, %v10856_v25  ;;  %v8718_v25 = vld [vmem:[%s10941_s0 + $0x10] sm:$0xff] }
0x1d0c   :  { %v8703_v62 = vpop.eup %8702 }
0x1d0d   :  { %v7085_v42 = vadd.f32 %v8703_v62, %v10859_v27  ;;  %v7086_v40 = vmul.f32 0.020833334, %v7082_v37  ;;  %v7092_v43 = vadd.f32 %v7088_v3, %v10666_v22  ;;  %v8719_v27 = vld [vmem:[%s10941_s0 + $0x18] sm:$0xff] }
0x1d0e   :  { %v8705_v32 = vpop.eup %8704 }
0x1d0f   :  { %v7089_v26 = vmul.f32 0.020833334, %v7085_v42  ;;  %v7083_v58 = vadd.f32 %v8705_v32, %v10863_v41  ;;  %v7090_v16 = vadd.f32 %v7086_v40, %v10662_v47  ;;  %v7096_v31 = vadd.f32 %v8718_v25, %v7092_v43  ;;  %v8720_v41 = vld [vmem:[%s10941_s0] sm:$0xff]  ;;  %v8721_v47 = vld [vmem:[%s10941_s0 + $0x8] sm:$0xff] }
0x1d11   :  { %v7093_v48 = vadd.f32 %v7089_v26, %v10669_v38  ;;  %v7087_v35 = vmul.f32 0.020833334, %v7083_v58  ;;  %v7094_v38 = vadd.f32 %v8720_v41, %v7090_v16 }
0x1d13   :  { %v7091_v49 = vadd.f32 %v7087_v35, %v10672_v20  ;;  %v7097_v22 = vadd.f32 %v8719_v27, %v7093_v48 }
0x1d15   :  { %v7095_v20 = vadd.f32 %v8721_v47, %v7091_v49  ;;  %v7099_v63 = vpack.c.bf16 %v7097_v22, %v7096_v31 }
0x1d17   :  { %v7098_v30 = vpack.c.bf16 %v7095_v20, %v7094_v38 }
0x1d19   :  { %8336 = vmatprep.mubr.msk.bf16.mxu0 %vm71_vm1, %v7098_v30 }
0x1d1a   :  { %8337 = vmatmul.mubr.msk.bf16.vlgmr.msra.gmra.mxu0 %vm71_vm1, %v7099_v63 }
0x1dda   :  { %v8338_v29 = vpop.f32.mrf.mxu0 }
0x1ddb   :  { %v7157_v56 = vadd.f32 %v8338_v29, %v7104_v0 }
0x1ddc   :  { %v7148_v14 = vpop.f32.mrf.mxu0 }
0x1ddd   :  { %v7149_v11 = vadd.f32 %v7148_v14, %v7104_v0  ;;  %v7165_v2 = vmax.f32 %v7157_v56, 0.0 }
0x1dde   :  { %v8339_v59 = vpop.f32.mrf.mxu0 }
0x1ddf   :  { %v7160_v28 = vadd.f32 %v8339_v59, %v7104_v0  ;;  %v7163_v52 = vmax.f32 %v7149_v11, 0.0 }
0x1de0   :  { %v7151_v12 = vpop.f32.mrf.mxu0 }
0x1de1   :  { %v7152_v17 = vadd.f32 %v7151_v12, %v7104_v0  ;;  %v7166_v44 = vmax.f32 %v7160_v28, 0.0 }
0x1de3   :  { %v7164_v39 = vmax.f32 %v7152_v17, 0.0  ;;  %v7168_v9 = vpack.c.bf16 %v7166_v44, %v7165_v2 }
0x1de5   :  { %v7167_v21 = vpack.c.bf16 %v7164_v39, %v7163_v52 }
0x1de7   :  { %8344 = vmatprep.mubr.msk.bf16.mxu1 %vm7189_vm6, %v7167_v21 }
0x1de8   :  { %8345 = vmatmul.mubr.msk.bf16.vlgmr.msra.gmra.mxu1 %vm7189_vm6, %v7168_v9 }
0x1ea8   :  { %v8346_v8 = vpop.f32.mrf.mxu1 }
0x1ea9   :  { %v7239_v19 = vadd.f32 %v8346_v8, %v7176_v34 }
0x1eaa   :  { %v7230_v18 = vpop.f32.mrf.mxu1 }
0x1eab   :  { %7247 = vst [vmem:[#allocation2 + $0x10] sm:$0xff] %v7239_v19  ;;  %v7231_v50 = vadd.f32 %v7230_v18, %v7176_v34 }
0x1eac   :  { %v8347_v23 = vpop.f32.mrf.mxu1 }
0x1ead   :  { %7245 = vst [vmem:[#allocation2] sm:$0xff] %v7231_v50  ;;  %v7242_v5 = vadd.f32 %v8347_v23, %v7176_v34 }
0x1eae   :  { %v7233_v6 = vpop.f32.mrf.mxu1 }
0x1eaf   :  { %7248 = vst [vmem:[#allocation2 + $0x18] sm:$0xff] %v7242_v5  ;;  %v7234_v15 = vadd.f32 %v7233_v6, %v7176_v34 }
0x1eb1   :  { %7246 = vst [vmem:[#allocation2 + $0x8] sm:$0xff] %v7234_v15 }
0x1eb2   :  { %8734 = shalt.err (!%p8731_p4)
}
0x1eb3   :  { %s8746_s22 = smov 128   ;;  %s8747_s23 = smov 8  }
0x1eb4   :  { %7260 = dma.vmem_to_hbm [thread:$0]  %s7255_s4, 512, %s10946_s5, [#allocation3], %s8746_s22, %s8746_s22, %s8747_s23  }
0x1eb5   :  { %8743 = dma.done.wait [#allocation3], 512  }
0x1eb6   :  { %8744 = vsyncadd [#allocation3], 4294966784 }
0x1eb7   :  { %7264 = vsyncpa [#allocation3], 1 }

</bundles_post_ra>
